<compile_context>
chip_gen: v5e
topology: v5e:2x2
jax: 0.10.0
libtpu: 0.0.40
codegen_flags: <defaults>
</compile_context>

<pallas_src>
import functools

import jax
import jax.numpy as jnp
from jax import lax
from jax.experimental import pallas as pl
from jax.experimental.pallas import tpu as pltpu


_MM = jnp.bfloat16        # MXU operand dtype (fp32 accumulation everywhere)
_EPS = 1e-5               # torch.nn.LayerNorm default (timm Block uses default)

_CP = pltpu.CompilerParams(
    dimension_semantics=("parallel",),
    vmem_limit_bytes=32 * 1024 * 1024,
)


# ------------------------------ spec helpers --------------------------------

def _const_spec(shape):
    """Full-array block whose index_map is constant (weights / biases / pos)."""
    nd = len(shape)

    def idx(i):
        return (0,) * nd

    return pl.BlockSpec(shape, idx)


# ------------------------------ kernel math ----------------------------------

def _matmul(a, b):
    """bf16 x bf16 MXU matmul with fp32 accumulation."""
    return jnp.dot(a.astype(_MM), b.astype(_MM),
                   preferred_element_type=jnp.float32)


def _layer_norm(x, g_ref, b_ref, eps):
    mu = jnp.mean(x, axis=-1, keepdims=True)
    var = jnp.mean(jnp.square(x - mu), axis=-1, keepdims=True)
    return (x - mu) * lax.rsqrt(var + eps) * g_ref[...] + b_ref[...]


def _block_math(x, g1_ref, b1_ref, wqkv_ref, bqkv_ref, wproj_ref, bproj_ref,
                g2_ref, b2_ref, w1_ref, bb1_ref, w2_ref, bb2_ref,
                *, num_head, eps):
    """Pre-norm transformer block on one batch element.  x: (T, D) fp32."""
    t, d = x.shape
    hd = d // num_head
    scale = hd ** -0.5

    # ---------------- multi-head self-attention ----------------
    xn = _layer_norm(x, g1_ref, b1_ref, eps)
    # Single QKV projection in "transposed" layout: wqkv rows are ordered
    # (q|k|v, head, unit), so qkv is (3*H*hd, T) and per-head Q/K/V are
    # 8-aligned sublane row-slices (no lane sub-slicing, no lane concat).
    qkv = lax.dot_general(wqkv_ref[...], xn.astype(_MM),
                          (((1,), (1,)), ((), ())),
                          preferred_element_type=jnp.float32)      # (3*H*hd, T)
    qkv = qkv + bqkv_ref[...]                                      # (3*H*hd, 1)

    attn = jnp.zeros((t, d), jnp.float32)
    for h in range(num_head):                       # unrolled; H is small
        q = qkv[h * hd:(h + 1) * hd]                               # (hd, T)
        k = qkv[(num_head + h) * hd:(num_head + h + 1) * hd]       # (hd, T)
        v = qkv[(2 * num_head + h) * hd:(2 * num_head + h + 1) * hd]
        s = _matmul(q.T, k) * scale                                # (T, T)
        m = jnp.max(s, axis=-1, keepdims=True)
        p = jnp.exp(s - m)
        p = p * pl.reciprocal(jnp.sum(p, axis=-1, keepdims=True), approx=True)
        o = lax.dot_general(p.astype(_MM), v.astype(_MM),
                            (((1,), (1,)), ((), ())),
                            preferred_element_type=jnp.float32)    # (T, hd)
        # Accumulate output projection per head -> no lane-axis concatenate.
        attn = attn + _matmul(o, wproj_ref[h])
    x = x + attn + bproj_ref[...]

    # ---------------------------- MLP ---------------------------
    xn2 = _layer_norm(x, g2_ref, b2_ref, eps)
    hidden = _matmul(xn2, w1_ref[...]) + bb1_ref[...]
    # TODO(synk): PyTorch nn.GELU default is exact erf; tanh approximation here.
    hidden = jax.nn.gelu(hidden, approximate=True)
    return x + _matmul(hidden, w2_ref[...]) + bb2_ref[...]


# ------------------------------ fused kernels --------------------------------

def _block_kernel(x_ref, g1, b1, wqkv, bqkv, wproj, bproj, g2, b2,
                  w1, bb1, w2, bb2, o_ref, *, num_head, eps):
    x = x_ref[0].astype(jnp.float32)
    out = _block_math(x, g1, b1, wqkv, bqkv, wproj, bproj, g2, b2,
                      w1, bb1, w2, bb2, num_head=num_head, eps=eps)
    o_ref[0] = out.astype(o_ref.dtype)


def _block_pred_kernel(x_ref, g1, b1, wqkv, bqkv, wproj, bproj, g2, b2,
                       w1, bb1, w2, bb2, gf, bf, wp, bp, pred_ref,
                       *, num_head, eps, mid):
    """Last decoder block fused with final LayerNorm + pred on the middle token."""
    x = x_ref[0].astype(jnp.float32)
    out = _block_math(x, g1, b1, wqkv, bqkv, wproj, bproj, g2, b2,
                      w1, bb1, w2, bb2, num_head=num_head, eps=eps)
    mid_tok = out[mid:mid + 1, :]                                  # (1, D)
    mid_tok = _layer_norm(mid_tok, gf, bf, eps)
    pred_ref[0] = (_matmul(mid_tok, wp[...]) + bp[...]).astype(pred_ref.dtype)


def _embed_pos_kernel(x_ref, w_ref, b_ref, pos_ref, o_ref):
    """out = x @ W + b + pos_embed (input embedding with pos add fused)."""
    x = x_ref[0].astype(jnp.float32)
    o_ref[0] = (_matmul(x, w_ref[...]) + b_ref[...] + pos_ref[0]).astype(o_ref.dtype)


def _ln_linear_pos_kernel(x_ref, g_ref, b_ref, w_ref, bias_ref, pos_ref, o_ref,
                          *, eps):
    """out = LN(x) @ W + b + pos  (encoder-final norm + decoder embed fused)."""
    x = x_ref[0].astype(jnp.float32)
    xn = _layer_norm(x, g_ref, b_ref, eps)
    o_ref[0] = (_matmul(xn, w_ref[...]) + bias_ref[...] + pos_ref[0]).astype(o_ref.dtype)


# ------------------------------ wrappers -------------------------------------

def _block_param_arrays(p, num_head):
    """Rearrange PyTorch-layout block weights into kernel-friendly layouts
    (bf16 matmul weights).  One-time per call; hoist in a real deployment."""
    d = p["ln1_g"].shape[0]
    hd = d // num_head
    hdim = p["fc1_w"].shape[1]
    return [
        p["ln1_g"].reshape(1, d), p["ln1_b"].reshape(1, d),
        p["qkv_w"].T.astype(_MM),                       # (3*H*hd, D)
        p["qkv_b"].reshape(3 * num_head * hd, 1),
        p["proj_w"].reshape(num_head, hd, d).astype(_MM),
        p["proj_b"].reshape(1, d),
        p["ln2_g"].reshape(1, d), p["ln2_b"].reshape(1, d),
        p["fc1_w"].astype(_MM), p["fc1_b"].reshape(1, hdim),
        p["fc2_w"].astype(_MM), p["fc2_b"].reshape(1, d),
    ]


def _block_param_specs(d, num_head, hdim):
    hd = d // num_head
    return [
        _const_spec((1, d)), _const_spec((1, d)),
        _const_spec((3 * num_head * hd, d)),
        _const_spec((3 * num_head * hd, 1)),
        _const_spec((num_head, hd, d)),
        _const_spec((1, d)),
        _const_spec((1, d)), _const_spec((1, d)),
        _const_spec((d, hdim)), _const_spec((1, hdim)),
        _const_spec((hdim, d)), _const_spec((1, d)),
    ]


def transformer_block(x, p, num_head, eps=_EPS):
    """One fused pallas_call per block: x (B, T, D) -> (B, T, D)."""
    b, t, d = x.shape
    assert d % num_head == 0
    hdim = p["fc1_w"].shape[1]
    return pl.pallas_call(
        functools.partial(_block_kernel, num_head=num_head, eps=eps),
        out_shape=jax.ShapeDtypeStruct((b, t, d), x.dtype),
        grid=(b,),
        in_specs=[pl.BlockSpec((1, t, d), lambda i: (i, 0, 0))]
                 + _block_param_specs(d, num_head, hdim),
        out_specs=pl.BlockSpec((1, t, d), lambda i: (i, 0, 0)),
        compiler_params=_CP,
    )(x, *_block_param_arrays(p, num_head))


def transformer_block_pred(x, p, num_head, norm_g, norm_b, pred_w, pred_b,
                           mid, eps=_EPS):
    """Last decoder block fused with dec-norm + pred Linear on the middle token."""
    b, t, d = x.shape
    assert d % num_head == 0
    hdim = p["fc1_w"].shape[1]
    din = pred_w.shape[1]
    extra = [norm_g.reshape(1, d), norm_b.reshape(1, d),
             pred_w.astype(_MM), pred_b.reshape(1, din)]
    extra_specs = [_const_spec((1, d)), _const_spec((1, d)),
                   _const_spec((d, din)), _const_spec((1, din))]
    return pl.pallas_call(
        functools.partial(_block_pred_kernel, num_head=num_head, eps=eps,
                          mid=mid),
        out_shape=jax.ShapeDtypeStruct((b, 1, din), jnp.float32),
        grid=(b,),
        in_specs=[pl.BlockSpec((1, t, d), lambda i: (i, 0, 0))]
                 + _block_param_specs(d, num_head, hdim) + extra_specs,
        out_specs=pl.BlockSpec((1, 1, din), lambda i: (i, 0, 0)),
        compiler_params=_CP,
    )(x, *_block_param_arrays(p, num_head), *extra)


def embed_pos(x, w, b, pos):
    """x: (B, T, Din) -> (B, T, D) = x @ w + b + pos_embed (fused)."""
    bsz, t, din = x.shape
    d = w.shape[1]
    return pl.pallas_call(
        _embed_pos_kernel,
        out_shape=jax.ShapeDtypeStruct((bsz, t, d), jnp.float32),
        grid=(bsz,),
        in_specs=[pl.BlockSpec((1, t, din), lambda i: (i, 0, 0)),
                  _const_spec((din, d)), _const_spec((1, d)),
                  _const_spec((1, t, d))],
        out_specs=pl.BlockSpec((1, t, d), lambda i: (i, 0, 0)),
        compiler_params=_CP,
    )(x, w.astype(_MM), b.reshape(1, d), pos)


def ln_linear_pos(x, g, b, w, bias, pos, eps=_EPS):
    """x: (B, T, D) -> (B, T, Dout) = LN(x) @ w + b + pos (fused)."""
    bsz, t, d = x.shape
    dout = w.shape[1]
    return pl.pallas_call(
        functools.partial(_ln_linear_pos_kernel, eps=eps),
        out_shape=jax.ShapeDtypeStruct((bsz, t, dout), jnp.float32),
        grid=(bsz,),
        in_specs=[pl.BlockSpec((1, t, d), lambda i: (i, 0, 0)),
                  _const_spec((1, d)), _const_spec((1, d)),
                  _const_spec((d, dout)), _const_spec((1, dout)),
                  _const_spec((1, t, dout))],
        out_specs=pl.BlockSpec((1, t, dout), lambda i: (i, 0, 0)),
        compiler_params=_CP,
    )(x, g.reshape(1, d), b.reshape(1, d), w.astype(_MM),
      bias.reshape(1, dout), pos)


# ----------------------------- model (glue) ----------------------------------

def gmm_forward(params, x, seqlen, num_head, dec_head, is_train=False):
    """GMM.forward (inference branch).  x: (B, T, Din) -> (B, 1, Din)."""
    if is_train:
        raise NotImplementedError(
            "TODO(synk): training path (random masking) not implemented")

    # ---- forward_encoder (mask_flag=False, mask_ratio=0.0) ----
    h = embed_pos(x, params["embed_w"], params["embed_b"], params["pos_embed"])
    for blk in params["enc_blocks"]:
        h = transformer_block(h, blk, num_head)

    # ---- forward_decoder (identity ids_restore: no masked tokens) ----
    dx = ln_linear_pos(h, params["enc_norm_g"], params["enc_norm_b"],
                       params["dec_embed_w"], params["dec_embed_b"],
                       params["dec_pos_embed"])
    dec_blocks = params["dec_blocks"]
    assert len(dec_blocks) >= 1
    for blk in dec_blocks[:-1]:
        dx = transformer_block(dx, blk, dec_head)
    # Last decoder block fused with decoder_norm + decoder_pred, applied only
    # to the middle token (the only token the inference output uses).
    return transformer_block_pred(dx, dec_blocks[-1], dec_head,
                                  params["dec_norm_g"], params["dec_norm_b"],
                                  params["dec_pred_w"], params["dec_pred_b"],
                                  mid=seqlen // 2)                 # (B, 1, Din)


# ----------------------------- parameter init ---------------------------------

def _block_params(key, dim, mlp_hidden, std=0.02):
    ks = jax.random.split(key, 4)
    f32 = jnp.float32
    return dict(
        ln1_g=jnp.ones((dim,), f32), ln1_b=jnp.zeros((dim,), f32),
        qkv_w=jax.random.normal(ks[0], (dim, 3 * dim), f32) * std,
        qkv_b=jnp.zeros((3 * dim,), f32),
        proj_w=jax.random.normal(ks[1], (dim, dim), f32) * std,
        proj_b=jnp.zeros((dim,), f32),
        ln2_g=jnp.ones((dim,), f32), ln2_b=jnp.zeros((dim,), f32),
        fc1_w=jax.random.normal(ks[2], (dim, mlp_hidden), f32) * std,
        fc1_b=jnp.zeros((mlp_hidden,), f32),
        fc2_w=jax.random.normal(ks[3], (mlp_hidden, dim), f32) * std,
        fc2_b=jnp.zeros((dim,), f32),
    )


def build_gmm_params(key, *, seqlen, in_dim, d_model, n_layers, dec_dim,
                     std=0.02):
    f32 = jnp.float32
    keys = jax.random.split(key, 8 + 2 * n_layers)
    return dict(
        embed_w=jax.random.normal(keys[0], (in_dim, d_model), f32) * std,
        embed_b=jnp.zeros((d_model,), f32),
        pos_embed=jax.random.normal(keys[1], (1, seqlen, d_model), f32) * std,
        enc_norm_g=jnp.ones((d_model,), f32),
        enc_norm_b=jnp.zeros((d_model,), f32),
        dec_embed_w=jax.random.normal(keys[2], (d_model, dec_dim), f32) * std,
        dec_embed_b=jnp.zeros((dec_dim,), f32),
        dec_pos_embed=jax.random.normal(keys[3], (1, seqlen, dec_dim), f32) * std,
        dec_norm_g=jnp.ones((dec_dim,), f32),
        dec_norm_b=jnp.zeros((dec_dim,), f32),
        dec_pred_w=jax.random.normal(keys[4], (dec_dim, in_dim), f32) * std,
        dec_pred_b=jnp.zeros((in_dim,), f32),
        enc_blocks=[_block_params(keys[8 + i], d_model, 4 * d_model)
                    for i in range(n_layers)],
        dec_blocks=[_block_params(keys[8 + n_layers + i], dec_dim, 4 * dec_dim)
                    for i in range(n_layers)],
    )


# --------------------------------- main ---------------------------------------

if __name__ == "__main__":
    # Small, TPU-friendly synthetic configuration with 128-multiple lane dims
    # (module defaults scaled down: d_model 512 -> 128, heads 8 -> 4, SPIN
    # 2048-d input features -> 128-d).
    B, SEQLEN, IN_DIM = 2, 8, 128
    D_MODEL, NUM_HEAD, N_LAYERS = 128, 4, 2
    DEC_DIM, DEC_HEAD = 128, 4

    key = jax.random.PRNGKey(0)
    kx, kp = jax.random.split(key)
    x = jax.random.normal(kx, (B, SEQLEN, IN_DIM), jnp.float32)

    params = build_gmm_params(kp, seqlen=SEQLEN, in_dim=IN_DIM,
                              d_model=D_MODEL, n_layers=N_LAYERS,
                              dec_dim=DEC_DIM)

    fwd = jax.jit(lambda p, xx: gmm_forward(p, xx, SEQLEN, NUM_HEAD, DEC_HEAD,
                                            is_train=False))
    out = jax.block_until_ready(fwd(params, x))

    assert out.shape == (B, 1, IN_DIM), out.shape
    assert jnp.all(jnp.isfinite(out))
    print("KERNEL_OK")
</pallas_src>

<mosaic_0001>
module attributes {stable_mosaic.version = 11 : i64} {
  func.func @_embed_pos_kernel(%arg0: i32, %arg1: memref<1x8x128xf32, #tpu.memory_space<vmem>>, %arg2: memref<128x128xbf16, #tpu.memory_space<vmem>>, %arg3: memref<1x128xf32, #tpu.memory_space<vmem>>, %arg4: memref<1x8x128xf32, #tpu.memory_space<vmem>>, %arg5: memref<1x8x128xf32, #tpu.memory_space<vmem>>) attributes {dimension_semantics = [#tpu.dimension_semantics<parallel>], iteration_bounds = array<i64: 2>, scalar_prefetch = 0 : i64, scratch_operands = 0 : i64, tpu.core_type = #tpu.core_type<tc>, window_params = [{transform_indices = @transform_0, window_bounds = array<i64: 1, 8, 128>}, {pipeline_mode = #tpu.pipeline_mode<synchronous>, transform_indices = @transform_1, window_bounds = array<i64: 128, 128>}, {pipeline_mode = #tpu.pipeline_mode<synchronous>, transform_indices = @transform_2, window_bounds = array<i64: 1, 128>}, {pipeline_mode = #tpu.pipeline_mode<synchronous>, transform_indices = @transform_3, window_bounds = array<i64: 1, 8, 128>}, {transform_indices = @transform_4, window_bounds = array<i64: 1, 8, 128>}]} {
    %c0 = arith.constant 0 : index
    %c0_0 = arith.constant 0 : index
    %c0_1 = arith.constant 0 : index
    %0 = vector.load %arg1[%c0, %c0_0, %c0_1] : memref<1x8x128xf32, #tpu.memory_space<vmem>>, vector<1x8x128xf32>
    %1 = vector.shape_cast %0 : vector<1x8x128xf32> to vector<8x128xf32>
    %c0_2 = arith.constant 0 : index
    %c0_3 = arith.constant 0 : index
    %2 = vector.load %arg2[%c0_2, %c0_3] : memref<128x128xbf16, #tpu.memory_space<vmem>>, vector<128x128xbf16>
    %3 = arith.truncf %1 : vector<8x128xf32> to vector<8x128xbf16>
    %cst = arith.constant dense<0.000000e+00> : vector<8x128xf32>
    %4 = tpu.matmul %3, %2, %cst {dimension_numbers = #tpu.dot_dimension_numbers<[1], [0], [0], [1], [0, 0, 1, 1], [], []>} : vector<8x128xbf16>, vector<128x128xbf16>, vector<8x128xf32> -> vector<8x128xf32>
    %c0_4 = arith.constant 0 : index
    %c0_5 = arith.constant 0 : index
    %5 = vector.load %arg3[%c0_4, %c0_5] : memref<1x128xf32, #tpu.memory_space<vmem>>, vector<1x128xf32>
    %6 = vector.broadcast %5 : vector<1x128xf32> to vector<8x128xf32>
    %7 = arith.addf %4, %6 : vector<8x128xf32>
    %c0_6 = arith.constant 0 : index
    %c0_7 = arith.constant 0 : index
    %c0_8 = arith.constant 0 : index
    %8 = vector.load %arg4[%c0_6, %c0_7, %c0_8] : memref<1x8x128xf32, #tpu.memory_space<vmem>>, vector<1x8x128xf32>
    %9 = vector.shape_cast %8 : vector<1x8x128xf32> to vector<8x128xf32>
    %10 = arith.addf %7, %9 : vector<8x128xf32>
    %c0_9 = arith.constant 0 : index
    %c0_10 = arith.constant 0 : index
    %c0_11 = arith.constant 0 : index
    %11 = vector.load %arg5[%c0_9, %c0_10, %c0_11] : memref<1x8x128xf32, #tpu.memory_space<vmem>>, vector<1x8x128xf32>
    %12 = vector.shape_cast %11 : vector<1x8x128xf32> to vector<8x128xf32>
    %13 = vector.shape_cast %10 : vector<8x128xf32> to vector<1x8x128xf32>
    tpu.vector_store %arg5[%c0_9, %c0_10, %c0_11], %13 {strides = array<i32>} : memref<1x8x128xf32, #tpu.memory_space<vmem>>, vector<1x8x128xf32>,
    return
  }
  func.func @transform_0(%arg0: i32) -> (i32, i32, i32) {
    %c0_i32 = arith.constant 0 : i32
    %c0_i32_0 = arith.constant 0 : i32
    %c0_i32_1 = arith.constant 0 : i32
    return %arg0, %c0_i32, %c0_i32_0 : i32, i32, i32
  }
  func.func @transform_1(%arg0: i32) -> (i32, i32) {
    %c0_i32 = arith.constant 0 : i32
    %c0_i32_0 = arith.constant 0 : i32
    %c0_i32_1 = arith.constant 0 : i32
    return %c0_i32, %c0_i32_0 : i32, i32
  }
  func.func @transform_2(%arg0: i32) -> (i32, i32) {
    %c0_i32 = arith.constant 0 : i32
    %c0_i32_0 = arith.constant 0 : i32
    %c0_i32_1 = arith.constant 0 : i32
    return %c0_i32, %c0_i32_0 : i32, i32
  }
  func.func @transform_3(%arg0: i32) -> (i32, i32, i32) {
    %c0_i32 = arith.constant 0 : i32
    %c0_i32_0 = arith.constant 0 : i32
    %c0_i32_1 = arith.constant 0 : i32
    %c0_i32_2 = arith.constant 0 : i32
    return %c0_i32, %c0_i32_0, %c0_i32_1 : i32, i32, i32
  }
  func.func @transform_4(%arg0: i32) -> (i32, i32, i32) {
    %c0_i32 = arith.constant 0 : i32
    %c0_i32_0 = arith.constant 0 : i32
    %c0_i32_1 = arith.constant 0 : i32
    return %arg0, %c0_i32, %c0_i32_0 : i32, i32, i32
  }
}

module attributes {stable_mosaic.version = 11 : i64} {
  func.func @_ln_linear_pos_kernel(%arg0: i32, %arg1: memref<1x8x128xf32, #tpu.memory_space<vmem>>, %arg2: memref<1x128xf32, #tpu.memory_space<vmem>>, %arg3: memref<1x128xf32, #tpu.memory_space<vmem>>, %arg4: memref<128x128xbf16, #tpu.memory_space<vmem>>, %arg5: memref<1x128xf32, #tpu.memory_space<vmem>>, %arg6: memref<1x8x128xf32, #tpu.memory_space<vmem>>, %arg7: memref<1x8x128xf32, #tpu.memory_space<vmem>>) attributes {dimension_semantics = [#tpu.dimension_semantics<parallel>], iteration_bounds = array<i64: 2>, scalar_prefetch = 0 : i64, scratch_operands = 0 : i64, tpu.core_type = #tpu.core_type<tc>, window_params = [{transform_indices = @transform_0, window_bounds = array<i64: 1, 8, 128>}, {pipeline_mode = #tpu.pipeline_mode<synchronous>, transform_indices = @transform_1, window_bounds = array<i64: 1, 128>}, {pipeline_mode = #tpu.pipeline_mode<synchronous>, transform_indices = @transform_2, window_bounds = array<i64: 1, 128>}, {pipeline_mode = #tpu.pipeline_mode<synchronous>, transform_indices = @transform_3, window_bounds = array<i64: 128, 128>}, {pipeline_mode = #tpu.pipeline_mode<synchronous>, transform_indices = @transform_4, window_bounds = array<i64: 1, 128>}, {pipeline_mode = #tpu.pipeline_mode<synchronous>, transform_indices = @transform_5, window_bounds = array<i64: 1, 8, 128>}, {transform_indices = @transform_6, window_bounds = array<i64: 1, 8, 128>}]} {
    %c0 = arith.constant 0 : index
    %c0_0 = arith.constant 0 : index
    %c0_1 = arith.constant 0 : index
    %0 = vector.load %arg1[%c0, %c0_0, %c0_1] : memref<1x8x128xf32, #tpu.memory_space<vmem>>, vector<1x8x128xf32>
    %1 = vector.shape_cast %0 : vector<1x8x128xf32> to vector<8x128xf32>
    %cst = arith.constant dense<0.000000e+00> : vector<8xf32>
    %2 = vector.multi_reduction <add>, %1, %cst [1] : vector<8x128xf32> to vector<8xf32>
    %3 = vector.shape_cast %2 : vector<8xf32> to vector<8x1xf32>
    %cst_2 = arith.constant 1.280000e+02 : f32
    %4 = vector.broadcast %cst_2 : f32 to vector<8x1xf32>
    %5 = arith.divf %3, %4 : vector<8x1xf32>
    %6 = vector.broadcast %5 : vector<8x1xf32> to vector<8x128xf32>
    %7 = arith.subf %1, %6 : vector<8x128xf32>
    %8 = arith.mulf %7, %7 : vector<8x128xf32>
    %cst_3 = arith.constant dense<0.000000e+00> : vector<8xf32>
    %9 = vector.multi_reduction <add>, %8, %cst_3 [1] : vector<8x128xf32> to vector<8xf32>
    %10 = vector.shape_cast %9 : vector<8xf32> to vector<8x1xf32>
    %cst_4 = arith.constant 1.280000e+02 : f32
    %11 = vector.broadcast %cst_4 : f32 to vector<8x1xf32>
    %12 = arith.divf %10, %11 : vector<8x1xf32>
    %13 = vector.broadcast %5 : vector<8x1xf32> to vector<8x128xf32>
    %14 = arith.subf %1, %13 : vector<8x128xf32>
    %cst_5 = arith.constant 9.99999974E-6 : f32
    %15 = vector.broadcast %cst_5 : f32 to vector<8x1xf32>
    %16 = arith.addf %12, %15 : vector<8x1xf32>
    %17 = math.rsqrt %16 : vector<8x1xf32>
    %18 = vector.broadcast %17 : vector<8x1xf32> to vector<8x128xf32>
    %19 = arith.mulf %14, %18 : vector<8x128xf32>
    %c0_6 = arith.constant 0 : index
    %c0_7 = arith.constant 0 : index
    %20 = vector.load %arg2[%c0_6, %c0_7] : memref<1x128xf32, #tpu.memory_space<vmem>>, vector<1x128xf32>
    %21 = vector.broadcast %20 : vector<1x128xf32> to vector<8x128xf32>
    %22 = arith.mulf %19, %21 : vector<8x128xf32>
    %c0_8 = arith.constant 0 : index
    %c0_9 = arith.constant 0 : index
    %23 = vector.load %arg3[%c0_8, %c0_9] : memref<1x128xf32, #tpu.memory_space<vmem>>, vector<1x128xf32>
    %24 = vector.broadcast %23 : vector<1x128xf32> to vector<8x128xf32>
    %25 = arith.addf %22, %24 : vector<8x128xf32>
    %c0_10 = arith.constant 0 : index
    %c0_11 = arith.constant 0 : index
    %26 = vector.load %arg4[%c0_10, %c0_11] : memref<128x128xbf16, #tpu.memory_space<vmem>>, vector<128x128xbf16>
    %27 = arith.truncf %25 : vector<8x128xf32> to vector<8x128xbf16>
    %cst_12 = arith.constant dense<0.000000e+00> : vector<8x128xf32>
    %28 = tpu.matmul %27, %26, %cst_12 {dimension_numbers = #tpu.dot_dimension_numbers<[1], [0], [0], [1], [0, 0, 1, 1], [], []>} : vector<8x128xbf16>, vector<128x128xbf16>, vector<8x128xf32> -> vector<8x128xf32>
    %c0_13 = arith.constant 0 : index
    %c0_14 = arith.constant 0 : index
    %29 = vector.load %arg5[%c0_13, %c0_14] : memref<1x128xf32, #tpu.memory_space<vmem>>, vector<1x128xf32>
    %30 = vector.broadcast %29 : vector<1x128xf32> to vector<8x128xf32>
    %31 = arith.addf %28, %30 : vector<8x128xf32>
    %c0_15 = arith.constant 0 : index
    %c0_16 = arith.constant 0 : index
    %c0_17 = arith.constant 0 : index
    %32 = vector.load %arg6[%c0_15, %c0_16, %c0_17] : memref<1x8x128xf32, #tpu.memory_space<vmem>>, vector<1x8x128xf32>
    %33 = vector.shape_cast %32 : vector<1x8x128xf32> to vector<8x128xf32>
    %34 = arith.addf %31, %33 : vector<8x128xf32>
    %c0_18 = arith.constant 0 : index
    %c0_19 = arith.constant 0 : index
    %c0_20 = arith.constant 0 : index
    %35 = vector.load %arg7[%c0_18, %c0_19, %c0_20] : memref<1x8x128xf32, #tpu.memory_space<vmem>>, vector<1x8x128xf32>
    %36 = vector.shape_cast %35 : vector<1x8x128xf32> to vector<8x128xf32>
    %37 = vector.shape_cast %34 : vector<8x128xf32> to vector<1x8x128xf32>
    tpu.vector_store %arg7[%c0_18, %c0_19, %c0_20], %37 {strides = array<i32>} : memref<1x8x128xf32, #tpu.memory_space<vmem>>, vector<1x8x128xf32>,
    return
  }
  func.func @transform_0(%arg0: i32) -> (i32, i32, i32) {
    %c0_i32 = arith.constant 0 : i32
    %c0_i32_0 = arith.constant 0 : i32
    %c0_i32_1 = arith.constant 0 : i32
    return %arg0, %c0_i32, %c0_i32_0 : i32, i32, i32
  }
  func.func @transform_1(%arg0: i32) -> (i32, i32) {
    %c0_i32 = arith.constant 0 : i32
    %c0_i32_0 = arith.constant 0 : i32
    %c0_i32_1 = arith.constant 0 : i32
    return %c0_i32, %c0_i32_0 : i32, i32
  }
  func.func @transform_2(%arg0: i32) -> (i32, i32) {
    %c0_i32 = arith.constant 0 : i32
    %c0_i32_0 = arith.constant 0 : i32
    %c0_i32_1 = arith.constant 0 : i32
    return %c0_i32, %c0_i32_0 : i32, i32
  }
  func.func @transform_3(%arg0: i32) -> (i32, i32) {
    %c0_i32 = arith.constant 0 : i32
    %c0_i32_0 = arith.constant 0 : i32
    %c0_i32_1 = arith.constant 0 : i32
    return %c0_i32, %c0_i32_0 : i32, i32
  }
  func.func @transform_4(%arg0: i32) -> (i32, i32) {
    %c0_i32 = arith.constant 0 : i32
    %c0_i32_0 = arith.constant 0 : i32
    %c0_i32_1 = arith.constant 0 : i32
    return %c0_i32, %c0_i32_0 : i32, i32
  }
  func.func @transform_5(%arg0: i32) -> (i32, i32, i32) {
    %c0_i32 = arith.constant 0 : i32
    %c0_i32_0 = arith.constant 0 : i32
    %c0_i32_1 = arith.constant 0 : i32
    %c0_i32_2 = arith.constant 0 : i32
    return %c0_i32, %c0_i32_0, %c0_i32_1 : i32, i32, i32
  }
  func.func @transform_6(%arg0: i32) -> (i32, i32, i32) {
    %c0_i32 = arith.constant 0 : i32
    %c0_i32_0 = arith.constant 0 : i32
    %c0_i32_1 = arith.constant 0 : i32
    return %arg0, %c0_i32, %c0_i32_0 : i32, i32, i32
  }
}

module attributes {stable_mosaic.version = 11 : i64} {
  func.func @_block_kernel(%arg0: i32, %arg1: memref<1x8x128xf32, #tpu.memory_space<vmem>>, %arg2: memref<1x128xf32, #tpu.memory_space<vmem>>, %arg3: memref<1x128xf32, #tpu.memory_space<vmem>>, %arg4: memref<384x128xbf16, #tpu.memory_space<vmem>>, %arg5: memref<384x1xf32, #tpu.memory_space<vmem>>, %arg6: memref<4x32x128xbf16, #tpu.memory_space<vmem>>, %arg7: memref<1x128xf32, #tpu.memory_space<vmem>>, %arg8: memref<1x128xf32, #tpu.memory_space<vmem>>, %arg9: memref<1x128xf32, #tpu.memory_space<vmem>>, %arg10: memref<128x512xbf16, #tpu.memory_space<vmem>>, %arg11: memref<1x512xf32, #tpu.memory_space<vmem>>, %arg12: memref<512x128xbf16, #tpu.memory_space<vmem>>, %arg13: memref<1x128xf32, #tpu.memory_space<vmem>>, %arg14: memref<1x8x128xf32, #tpu.memory_space<vmem>>) attributes {dimension_semantics = [#tpu.dimension_semantics<parallel>], iteration_bounds = array<i64: 2>, scalar_prefetch = 0 : i64, scratch_operands = 0 : i64, tpu.core_type = #tpu.core_type<tc>, window_params = [{transform_indices = @transform_0, window_bounds = array<i64: 1, 8, 128>}, {pipeline_mode = #tpu.pipeline_mode<synchronous>, transform_indices = @transform_1, window_bounds = array<i64: 1, 128>}, {pipeline_mode = #tpu.pipeline_mode<synchronous>, transform_indices = @transform_2, window_bounds = array<i64: 1, 128>}, {pipeline_mode = #tpu.pipeline_mode<synchronous>, transform_indices = @transform_3, window_bounds = array<i64: 384, 128>}, {pipeline_mode = #tpu.pipeline_mode<synchronous>, transform_indices = @transform_4, window_bounds = array<i64: 384, 1>}, {pipeline_mode = #tpu.pipeline_mode<synchronous>, transform_indices = @transform_5, window_bounds = array<i64: 4, 32, 128>}, {pipeline_mode = #tpu.pipeline_mode<synchronous>, transform_indices = @transform_6, window_bounds = array<i64: 1, 128>}, {pipeline_mode = #tpu.pipeline_mode<synchronous>, transform_indices = @transform_7, window_bounds = array<i64: 1, 128>}, {pipeline_mode = #tpu.pipeline_mode<synchronous>, transform_indices = @transform_8, window_bounds = array<i64: 1, 128>}, {pipeline_mode = #tpu.pipeline_mode<synchronous>, transform_indices = @transform_9, window_bounds = array<i64: 128, 512>}, {pipeline_mode = #tpu.pipeline_mode<synchronous>, transform_indices = @transform_10, window_bounds = array<i64: 1, 512>}, {pipeline_mode = #tpu.pipeline_mode<synchronous>, transform_indices = @transform_11, window_bounds = array<i64: 512, 128>}, {pipeline_mode = #tpu.pipeline_mode<synchronous>, transform_indices = @transform_12, window_bounds = array<i64: 1, 128>}, {transform_indices = @transform_13, window_bounds = array<i64: 1, 8, 128>}]} {
    %c0 = arith.constant 0 : index
    %c0_0 = arith.constant 0 : index
    %c0_1 = arith.constant 0 : index
    %0 = vector.load %arg1[%c0, %c0_0, %c0_1] : memref<1x8x128xf32, #tpu.memory_space<vmem>>, vector<1x8x128xf32>
    %1 = vector.shape_cast %0 : vector<1x8x128xf32> to vector<8x128xf32>
    %cst = arith.constant dense<0.000000e+00> : vector<8xf32>
    %2 = vector.multi_reduction <add>, %1, %cst [1] : vector<8x128xf32> to vector<8xf32>
    %3 = vector.shape_cast %2 : vector<8xf32> to vector<8x1xf32>
    %cst_2 = arith.constant 1.280000e+02 : f32
    %4 = vector.broadcast %cst_2 : f32 to vector<8x1xf32>
    %5 = arith.divf %3, %4 : vector<8x1xf32>
    %6 = vector.broadcast %5 : vector<8x1xf32> to vector<8x128xf32>
    %7 = arith.subf %1, %6 : vector<8x128xf32>
    %8 = arith.mulf %7, %7 : vector<8x128xf32>
    %cst_3 = arith.constant dense<0.000000e+00> : vector<8xf32>
    %9 = vector.multi_reduction <add>, %8, %cst_3 [1] : vector<8x128xf32> to vector<8xf32>
    %10 = vector.shape_cast %9 : vector<8xf32> to vector<8x1xf32>
    %cst_4 = arith.constant 1.280000e+02 : f32
    %11 = vector.broadcast %cst_4 : f32 to vector<8x1xf32>
    %12 = arith.divf %10, %11 : vector<8x1xf32>
    %13 = vector.broadcast %5 : vector<8x1xf32> to vector<8x128xf32>
    %14 = arith.subf %1, %13 : vector<8x128xf32>
    %cst_5 = arith.constant 9.99999974E-6 : f32
    %15 = vector.broadcast %cst_5 : f32 to vector<8x1xf32>
    %16 = arith.addf %12, %15 : vector<8x1xf32>
    %17 = math.rsqrt %16 : vector<8x1xf32>
    %18 = vector.broadcast %17 : vector<8x1xf32> to vector<8x128xf32>
    %19 = arith.mulf %14, %18 : vector<8x128xf32>
    %c0_6 = arith.constant 0 : index
    %c0_7 = arith.constant 0 : index
    %20 = vector.load %arg2[%c0_6, %c0_7] : memref<1x128xf32, #tpu.memory_space<vmem>>, vector<1x128xf32>
    %21 = vector.broadcast %20 : vector<1x128xf32> to vector<8x128xf32>
    %22 = arith.mulf %19, %21 : vector<8x128xf32>
    %c0_8 = arith.constant 0 : index
    %c0_9 = arith.constant 0 : index
    %23 = vector.load %arg3[%c0_8, %c0_9] : memref<1x128xf32, #tpu.memory_space<vmem>>, vector<1x128xf32>
    %24 = vector.broadcast %23 : vector<1x128xf32> to vector<8x128xf32>
    %25 = arith.addf %22, %24 : vector<8x128xf32>
    %c0_10 = arith.constant 0 : index
    %c0_11 = arith.constant 0 : index
    %26 = vector.load %arg4[%c0_10, %c0_11] : memref<384x128xbf16, #tpu.memory_space<vmem>>, vector<384x128xbf16>
    %27 = arith.truncf %25 : vector<8x128xf32> to vector<8x128xbf16>
    %cst_12 = arith.constant dense<0.000000e+00> : vector<384x8xf32>
    %28 = tpu.matmul %26, %27, %cst_12 {dimension_numbers = #tpu.dot_dimension_numbers<[1], [1], [0], [0], [0, 0, 1, 0], [], []>} : vector<384x128xbf16>, vector<8x128xbf16>, vector<384x8xf32> -> vector<384x8xf32>
    %c0_13 = arith.constant 0 : index
    %c0_14 = arith.constant 0 : index
    %29 = vector.load %arg5[%c0_13, %c0_14] : memref<384x1xf32, #tpu.memory_space<vmem>>, vector<384x1xf32>
    %30 = vector.broadcast %29 : vector<384x1xf32> to vector<384x8xf32>
    %31 = arith.addf %28, %30 : vector<384x8xf32>
    %cst_15 = arith.constant 0.000000e+00 : f32
    %32 = vector.broadcast %cst_15 : f32 to vector<8x128xf32>
    %33 = vector.extract_strided_slice %31 {offsets = [0, 0], sizes = [32, 8], strides = [1, 1]} : vector<384x8xf32> to vector<32x8xf32>
    %34 = vector.extract_strided_slice %31 {offsets = [128, 0], sizes = [32, 8], strides = [1, 1]} : vector<384x8xf32> to vector<32x8xf32>
    %35 = vector.extract_strided_slice %31 {offsets = [256, 0], sizes = [32, 8], strides = [1, 1]} : vector<384x8xf32> to vector<32x8xf32>
    %36 = tpu.transpose %33, [1, 0] : vector<32x8xf32> -> vector<8x32xf32>
    %37 = arith.truncf %36 : vector<8x32xf32> to vector<8x32xbf16>
    %38 = arith.truncf %34 : vector<32x8xf32> to vector<32x8xbf16>
    %cst_16 = arith.constant dense<0.000000e+00> : vector<8x8xf32>
    %39 = tpu.matmul %37, %38, %cst_16 {dimension_numbers = #tpu.dot_dimension_numbers<[1], [0], [0], [1], [0, 0, 1, 1], [], []>} : vector<8x32xbf16>, vector<32x8xbf16>, vector<8x8xf32> -> vector<8x8xf32>
    %cst_17 = arith.constant 0.176776692 : f32
    %40 = vector.broadcast %cst_17 : f32 to vector<8x8xf32>
    %41 = arith.mulf %39, %40 : vector<8x8xf32>
    %cst_18 = arith.constant dense<0xFF800000> : vector<8xf32>
    %42 = vector.multi_reduction <maximumf>, %41, %cst_18 [1] : vector<8x8xf32> to vector<8xf32>
    %43 = vector.shape_cast %42 : vector<8xf32> to vector<8x1xf32>
    %44 = vector.broadcast %43 : vector<8x1xf32> to vector<8x8xf32>
    %45 = arith.subf %41, %44 : vector<8x8xf32>
    %46 = math.exp %45 : vector<8x8xf32>
    %cst_19 = arith.constant dense<0.000000e+00> : vector<8xf32>
    %47 = vector.multi_reduction <add>, %46, %cst_19 [1] : vector<8x8xf32> to vector<8xf32>
    %48 = vector.shape_cast %47 : vector<8xf32> to vector<8x1xf32>
    %49 = tpu.reciprocal %48 {approx = true} : vector<8x1xf32> -> vector<8x1xf32>
    %50 = vector.broadcast %49 : vector<8x1xf32> to vector<8x8xf32>
    %51 = arith.mulf %46, %50 : vector<8x8xf32>
    %52 = arith.truncf %51 : vector<8x8xf32> to vector<8x8xbf16>
    %53 = arith.truncf %35 : vector<32x8xf32> to vector<32x8xbf16>
    %cst_20 = arith.constant dense<0.000000e+00> : vector<8x32xf32>
    %54 = tpu.matmul %52, %53, %cst_20 {dimension_numbers = #tpu.dot_dimension_numbers<[1], [1], [0], [0], [0, 0, 1, 0], [], []>} : vector<8x8xbf16>, vector<32x8xbf16>, vector<8x32xf32> -> vector<8x32xf32>
    %c0_21 = arith.constant 0 : index
    %c0_22 = arith.constant 0 : index
    %c0_23 = arith.constant 0 : index
    %55 = vector.load %arg6[%c0_21, %c0_22, %c0_23] : memref<4x32x128xbf16, #tpu.memory_space<vmem>>, vector<1x32x128xbf16>
    %56 = vector.shape_cast %55 : vector<1x32x128xbf16> to vector<32x128xbf16>
    %57 = arith.truncf %54 : vector<8x32xf32> to vector<8x32xbf16>
    %cst_24 = arith.constant dense<0.000000e+00> : vector<8x128xf32>
    %58 = tpu.matmul %57, %56, %cst_24 {dimension_numbers = #tpu.dot_dimension_numbers<[1], [0], [0], [1], [0, 0, 1, 1], [], []>} : vector<8x32xbf16>, vector<32x128xbf16>, vector<8x128xf32> -> vector<8x128xf32>
    %59 = arith.addf %32, %58 : vector<8x128xf32>
    %60 = vector.extract_strided_slice %31 {offsets = [32, 0], sizes = [32, 8], strides = [1, 1]} : vector<384x8xf32> to vector<32x8xf32>
    %61 = vector.extract_strided_slice %31 {offsets = [160, 0], sizes = [32, 8], strides = [1, 1]} : vector<384x8xf32> to vector<32x8xf32>
    %62 = vector.extract_strided_slice %31 {offsets = [288, 0], sizes = [32, 8], strides = [1, 1]} : vector<384x8xf32> to vector<32x8xf32>
    %63 = tpu.transpose %60, [1, 0] : vector<32x8xf32> -> vector<8x32xf32>
    %64 = arith.truncf %63 : vector<8x32xf32> to vector<8x32xbf16>
    %65 = arith.truncf %61 : vector<32x8xf32> to vector<32x8xbf16>
    %cst_25 = arith.constant dense<0.000000e+00> : vector<8x8xf32>
    %66 = tpu.matmul %64, %65, %cst_25 {dimension_numbers = #tpu.dot_dimension_numbers<[1], [0], [0], [1], [0, 0, 1, 1], [], []>} : vector<8x32xbf16>, vector<32x8xbf16>, vector<8x8xf32> -> vector<8x8xf32>
    %cst_26 = arith.constant 0.176776692 : f32
    %67 = vector.broadcast %cst_26 : f32 to vector<8x8xf32>
    %68 = arith.mulf %66, %67 : vector<8x8xf32>
    %cst_27 = arith.constant dense<0xFF800000> : vector<8xf32>
    %69 = vector.multi_reduction <maximumf>, %68, %cst_27 [1] : vector<8x8xf32> to vector<8xf32>
    %70 = vector.shape_cast %69 : vector<8xf32> to vector<8x1xf32>
    %71 = vector.broadcast %70 : vector<8x1xf32> to vector<8x8xf32>
    %72 = arith.subf %68, %71 : vector<8x8xf32>
    %73 = math.exp %72 : vector<8x8xf32>
    %cst_28 = arith.constant dense<0.000000e+00> : vector<8xf32>
    %74 = vector.multi_reduction <add>, %73, %cst_28 [1] : vector<8x8xf32> to vector<8xf32>
    %75 = vector.shape_cast %74 : vector<8xf32> to vector<8x1xf32>
    %76 = tpu.reciprocal %75 {approx = true} : vector<8x1xf32> -> vector<8x1xf32>
    %77 = vector.broadcast %76 : vector<8x1xf32> to vector<8x8xf32>
    %78 = arith.mulf %73, %77 : vector<8x8xf32>
    %79 = arith.truncf %78 : vector<8x8xf32> to vector<8x8xbf16>
    %80 = arith.truncf %62 : vector<32x8xf32> to vector<32x8xbf16>
    %cst_29 = arith.constant dense<0.000000e+00> : vector<8x32xf32>
    %81 = tpu.matmul %79, %80, %cst_29 {dimension_numbers = #tpu.dot_dimension_numbers<[1], [1], [0], [0], [0, 0, 1, 0], [], []>} : vector<8x8xbf16>, vector<32x8xbf16>, vector<8x32xf32> -> vector<8x32xf32>
    %c1 = arith.constant 1 : index
    %c0_30 = arith.constant 0 : index
    %c0_31 = arith.constant 0 : index
    %82 = vector.load %arg6[%c1, %c0_30, %c0_31] : memref<4x32x128xbf16, #tpu.memory_space<vmem>>, vector<1x32x128xbf16>
    %83 = vector.shape_cast %82 : vector<1x32x128xbf16> to vector<32x128xbf16>
    %84 = arith.truncf %81 : vector<8x32xf32> to vector<8x32xbf16>
    %cst_32 = arith.constant dense<0.000000e+00> : vector<8x128xf32>
    %85 = tpu.matmul %84, %83, %cst_32 {dimension_numbers = #tpu.dot_dimension_numbers<[1], [0], [0], [1], [0, 0, 1, 1], [], []>} : vector<8x32xbf16>, vector<32x128xbf16>, vector<8x128xf32> -> vector<8x128xf32>
    %86 = arith.addf %59, %85 : vector<8x128xf32>
    %87 = vector.extract_strided_slice %31 {offsets = [64, 0], sizes = [32, 8], strides = [1, 1]} : vector<384x8xf32> to vector<32x8xf32>
    %88 = vector.extract_strided_slice %31 {offsets = [192, 0], sizes = [32, 8], strides = [1, 1]} : vector<384x8xf32> to vector<32x8xf32>
    %89 = vector.extract_strided_slice %31 {offsets = [320, 0], sizes = [32, 8], strides = [1, 1]} : vector<384x8xf32> to vector<32x8xf32>
    %90 = tpu.transpose %87, [1, 0] : vector<32x8xf32> -> vector<8x32xf32>
    %91 = arith.truncf %90 : vector<8x32xf32> to vector<8x32xbf16>
    %92 = arith.truncf %88 : vector<32x8xf32> to vector<32x8xbf16>
    %cst_33 = arith.constant dense<0.000000e+00> : vector<8x8xf32>
    %93 = tpu.matmul %91, %92, %cst_33 {dimension_numbers = #tpu.dot_dimension_numbers<[1], [0], [0], [1], [0, 0, 1, 1], [], []>} : vector<8x32xbf16>, vector<32x8xbf16>, vector<8x8xf32> -> vector<8x8xf32>
    %cst_34 = arith.constant 0.176776692 : f32
    %94 = vector.broadcast %cst_34 : f32 to vector<8x8xf32>
    %95 = arith.mulf %93, %94 : vector<8x8xf32>
    %cst_35 = arith.constant dense<0xFF800000> : vector<8xf32>
    %96 = vector.multi_reduction <maximumf>, %95, %cst_35 [1] : vector<8x8xf32> to vector<8xf32>
    %97 = vector.shape_cast %96 : vector<8xf32> to vector<8x1xf32>
    %98 = vector.broadcast %97 : vector<8x1xf32> to vector<8x8xf32>
    %99 = arith.subf %95, %98 : vector<8x8xf32>
    %100 = math.exp %99 : vector<8x8xf32>
    %cst_36 = arith.constant dense<0.000000e+00> : vector<8xf32>
    %101 = vector.multi_reduction <add>, %100, %cst_36 [1] : vector<8x8xf32> to vector<8xf32>
    %102 = vector.shape_cast %101 : vector<8xf32> to vector<8x1xf32>
    %103 = tpu.reciprocal %102 {approx = true} : vector<8x1xf32> -> vector<8x1xf32>
    %104 = vector.broadcast %103 : vector<8x1xf32> to vector<8x8xf32>
    %105 = arith.mulf %100, %104 : vector<8x8xf32>
    %106 = arith.truncf %105 : vector<8x8xf32> to vector<8x8xbf16>
    %107 = arith.truncf %89 : vector<32x8xf32> to vector<32x8xbf16>
    %cst_37 = arith.constant dense<0.000000e+00> : vector<8x32xf32>
    %108 = tpu.matmul %106, %107, %cst_37 {dimension_numbers = #tpu.dot_dimension_numbers<[1], [1], [0], [0], [0, 0, 1, 0], [], []>} : vector<8x8xbf16>, vector<32x8xbf16>, vector<8x32xf32> -> vector<8x32xf32>
    %c2 = arith.constant 2 : index
    %c0_38 = arith.constant 0 : index
    %c0_39 = arith.constant 0 : index
    %109 = vector.load %arg6[%c2, %c0_38, %c0_39] : memref<4x32x128xbf16, #tpu.memory_space<vmem>>, vector<1x32x128xbf16>
    %110 = vector.shape_cast %109 : vector<1x32x128xbf16> to vector<32x128xbf16>
    %111 = arith.truncf %108 : vector<8x32xf32> to vector<8x32xbf16>
    %cst_40 = arith.constant dense<0.000000e+00> : vector<8x128xf32>
    %112 = tpu.matmul %111, %110, %cst_40 {dimension_numbers = #tpu.dot_dimension_numbers<[1], [0], [0], [1], [0, 0, 1, 1], [], []>} : vector<8x32xbf16>, vector<32x128xbf16>, vector<8x128xf32> -> vector<8x128xf32>
    %113 = arith.addf %86, %112 : vector<8x128xf32>
    %114 = vector.extract_strided_slice %31 {offsets = [96, 0], sizes = [32, 8], strides = [1, 1]} : vector<384x8xf32> to vector<32x8xf32>
    %115 = vector.extract_strided_slice %31 {offsets = [224, 0], sizes = [32, 8], strides = [1, 1]} : vector<384x8xf32> to vector<32x8xf32>
    %116 = vector.extract_strided_slice %31 {offsets = [352, 0], sizes = [32, 8], strides = [1, 1]} : vector<384x8xf32> to vector<32x8xf32>
    %117 = tpu.transpose %114, [1, 0] : vector<32x8xf32> -> vector<8x32xf32>
    %118 = arith.truncf %117 : vector<8x32xf32> to vector<8x32xbf16>
    %119 = arith.truncf %115 : vector<32x8xf32> to vector<32x8xbf16>
    %cst_41 = arith.constant dense<0.000000e+00> : vector<8x8xf32>
    %120 = tpu.matmul %118, %119, %cst_41 {dimension_numbers = #tpu.dot_dimension_numbers<[1], [0], [0], [1], [0, 0, 1, 1], [], []>} : vector<8x32xbf16>, vector<32x8xbf16>, vector<8x8xf32> -> vector<8x8xf32>
    %cst_42 = arith.constant 0.176776692 : f32
    %121 = vector.broadcast %cst_42 : f32 to vector<8x8xf32>
    %122 = arith.mulf %120, %121 : vector<8x8xf32>
    %cst_43 = arith.constant dense<0xFF800000> : vector<8xf32>
    %123 = vector.multi_reduction <maximumf>, %122, %cst_43 [1] : vector<8x8xf32> to vector<8xf32>
    %124 = vector.shape_cast %123 : vector<8xf32> to vector<8x1xf32>
    %125 = vector.broadcast %124 : vector<8x1xf32> to vector<8x8xf32>
    %126 = arith.subf %122, %125 : vector<8x8xf32>
    %127 = math.exp %126 : vector<8x8xf32>
    %cst_44 = arith.constant dense<0.000000e+00> : vector<8xf32>
    %128 = vector.multi_reduction <add>, %127, %cst_44 [1] : vector<8x8xf32> to vector<8xf32>
    %129 = vector.shape_cast %128 : vector<8xf32> to vector<8x1xf32>
    %130 = tpu.reciprocal %129 {approx = true} : vector<8x1xf32> -> vector<8x1xf32>
    %131 = vector.broadcast %130 : vector<8x1xf32> to vector<8x8xf32>
    %132 = arith.mulf %127, %131 : vector<8x8xf32>
    %133 = arith.truncf %132 : vector<8x8xf32> to vector<8x8xbf16>
    %134 = arith.truncf %116 : vector<32x8xf32> to vector<32x8xbf16>
    %cst_45 = arith.constant dense<0.000000e+00> : vector<8x32xf32>
    %135 = tpu.matmul %133, %134, %cst_45 {dimension_numbers = #tpu.dot_dimension_numbers<[1], [1], [0], [0], [0, 0, 1, 0], [], []>} : vector<8x8xbf16>, vector<32x8xbf16>, vector<8x32xf32> -> vector<8x32xf32>
    %c3 = arith.constant 3 : index
    %c0_46 = arith.constant 0 : index
    %c0_47 = arith.constant 0 : index
    %136 = vector.load %arg6[%c3, %c0_46, %c0_47] : memref<4x32x128xbf16, #tpu.memory_space<vmem>>, vector<1x32x128xbf16>
    %137 = vector.shape_cast %136 : vector<1x32x128xbf16> to vector<32x128xbf16>
    %138 = arith.truncf %135 : vector<8x32xf32> to vector<8x32xbf16>
    %cst_48 = arith.constant dense<0.000000e+00> : vector<8x128xf32>
    %139 = tpu.matmul %138, %137, %cst_48 {dimension_numbers = #tpu.dot_dimension_numbers<[1], [0], [0], [1], [0, 0, 1, 1], [], []>} : vector<8x32xbf16>, vector<32x128xbf16>, vector<8x128xf32> -> vector<8x128xf32>
    %140 = arith.addf %113, %139 : vector<8x128xf32>
    %141 = arith.addf %1, %140 : vector<8x128xf32>
    %c0_49 = arith.constant 0 : index
    %c0_50 = arith.constant 0 : index
    %142 = vector.load %arg7[%c0_49, %c0_50] : memref<1x128xf32, #tpu.memory_space<vmem>>, vector<1x128xf32>
    %143 = vector.broadcast %142 : vector<1x128xf32> to vector<8x128xf32>
    %144 = arith.addf %141, %143 : vector<8x128xf32>
    %cst_51 = arith.constant dense<0.000000e+00> : vector<8xf32>
    %145 = vector.multi_reduction <add>, %144, %cst_51 [1] : vector<8x128xf32> to vector<8xf32>
    %146 = vector.shape_cast %145 : vector<8xf32> to vector<8x1xf32>
    %cst_52 = arith.constant 1.280000e+02 : f32
    %147 = vector.broadcast %cst_52 : f32 to vector<8x1xf32>
    %148 = arith.divf %146, %147 : vector<8x1xf32>
    %149 = vector.broadcast %148 : vector<8x1xf32> to vector<8x128xf32>
    %150 = arith.subf %144, %149 : vector<8x128xf32>
    %151 = arith.mulf %150, %150 : vector<8x128xf32>
    %cst_53 = arith.constant dense<0.000000e+00> : vector<8xf32>
    %152 = vector.multi_reduction <add>, %151, %cst_53 [1] : vector<8x128xf32> to vector<8xf32>
    %153 = vector.shape_cast %152 : vector<8xf32> to vector<8x1xf32>
    %cst_54 = arith.constant 1.280000e+02 : f32
    %154 = vector.broadcast %cst_54 : f32 to vector<8x1xf32>
    %155 = arith.divf %153, %154 : vector<8x1xf32>
    %156 = vector.broadcast %148 : vector<8x1xf32> to vector<8x128xf32>
    %157 = arith.subf %144, %156 : vector<8x128xf32>
    %cst_55 = arith.constant 9.99999974E-6 : f32
    %158 = vector.broadcast %cst_55 : f32 to vector<8x1xf32>
    %159 = arith.addf %155, %158 : vector<8x1xf32>
    %160 = math.rsqrt %159 : vector<8x1xf32>
    %161 = vector.broadcast %160 : vector<8x1xf32> to vector<8x128xf32>
    %162 = arith.mulf %157, %161 : vector<8x128xf32>
    %c0_56 = arith.constant 0 : index
    %c0_57 = arith.constant 0 : index
    %163 = vector.load %arg8[%c0_56, %c0_57] : memref<1x128xf32, #tpu.memory_space<vmem>>, vector<1x128xf32>
    %164 = vector.broadcast %163 : vector<1x128xf32> to vector<8x128xf32>
    %165 = arith.mulf %162, %164 : vector<8x128xf32>
    %c0_58 = arith.constant 0 : index
    %c0_59 = arith.constant 0 : index
    %166 = vector.load %arg9[%c0_58, %c0_59] : memref<1x128xf32, #tpu.memory_space<vmem>>, vector<1x128xf32>
    %167 = vector.broadcast %166 : vector<1x128xf32> to vector<8x128xf32>
    %168 = arith.addf %165, %167 : vector<8x128xf32>
    %c0_60 = arith.constant 0 : index
    %c0_61 = arith.constant 0 : index
    %169 = vector.load %arg10[%c0_60, %c0_61] : memref<128x512xbf16, #tpu.memory_space<vmem>>, vector<128x512xbf16>
    %170 = arith.truncf %168 : vector<8x128xf32> to vector<8x128xbf16>
    %cst_62 = arith.constant dense<0.000000e+00> : vector<8x512xf32>
    %171 = tpu.matmul %170, %169, %cst_62 {dimension_numbers = #tpu.dot_dimension_numbers<[1], [0], [0], [1], [0, 0, 1, 1], [], []>} : vector<8x128xbf16>, vector<128x512xbf16>, vector<8x512xf32> -> vector<8x512xf32>
    %c0_63 = arith.constant 0 : index
    %c0_64 = arith.constant 0 : index
    %172 = vector.load %arg11[%c0_63, %c0_64] : memref<1x512xf32, #tpu.memory_space<vmem>>, vector<1x512xf32>
    %173 = vector.broadcast %172 : vector<1x512xf32> to vector<8x512xf32>
    %174 = arith.addf %171, %173 : vector<8x512xf32>
    %175 = arith.mulf %174, %174 : vector<8x512xf32>
    %176 = arith.mulf %174, %175 : vector<8x512xf32>
    %cst_65 = arith.constant 4.471500e-02 : f32
    %177 = vector.broadcast %cst_65 : f32 to vector<8x512xf32>
    %178 = arith.mulf %177, %176 : vector<8x512xf32>
    %179 = arith.addf %174, %178 : vector<8x512xf32>
    %cst_66 = arith.constant 0.797884583 : f32
    %180 = vector.broadcast %cst_66 : f32 to vector<8x512xf32>
    %181 = arith.mulf %180, %179 : vector<8x512xf32>
    %182 = math.tanh %181 : vector<8x512xf32>
    %cst_67 = arith.constant 1.000000e+00 : f32
    %183 = vector.broadcast %cst_67 : f32 to vector<8x512xf32>
    %184 = arith.addf %183, %182 : vector<8x512xf32>
    %cst_68 = arith.constant 5.000000e-01 : f32
    %185 = vector.broadcast %cst_68 : f32 to vector<8x512xf32>
    %186 = arith.mulf %185, %184 : vector<8x512xf32>
    %187 = arith.mulf %174, %186 : vector<8x512xf32>
    %c0_69 = arith.constant 0 : index
    %c0_70 = arith.constant 0 : index
    %188 = vector.load %arg12[%c0_69, %c0_70] : memref<512x128xbf16, #tpu.memory_space<vmem>>, vector<512x128xbf16>
    %189 = arith.truncf %187 : vector<8x512xf32> to vector<8x512xbf16>
    %cst_71 = arith.constant dense<0.000000e+00> : vector<8x128xf32>
    %190 = tpu.matmul %189, %188, %cst_71 {dimension_numbers = #tpu.dot_dimension_numbers<[1], [0], [0], [1], [0, 0, 1, 1], [], []>} : vector<8x512xbf16>, vector<512x128xbf16>, vector<8x128xf32> -> vector<8x128xf32>
    %191 = arith.addf %144, %190 : vector<8x128xf32>
    %c0_72 = arith.constant 0 : index
    %c0_73 = arith.constant 0 : index
    %192 = vector.load %arg13[%c0_72, %c0_73] : memref<1x128xf32, #tpu.memory_space<vmem>>, vector<1x128xf32>
    %193 = vector.broadcast %192 : vector<1x128xf32> to vector<8x128xf32>
    %194 = arith.addf %191, %193 : vector<8x128xf32>
    %c0_74 = arith.constant 0 : index
    %c0_75 = arith.constant 0 : index
    %c0_76 = arith.constant 0 : index
    %195 = vector.load %arg14[%c0_74, %c0_75, %c0_76] : memref<1x8x128xf32, #tpu.memory_space<vmem>>, vector<1x8x128xf32>
    %196 = vector.shape_cast %195 : vector<1x8x128xf32> to vector<8x128xf32>
    %197 = vector.shape_cast %194 : vector<8x128xf32> to vector<1x8x128xf32>
    tpu.vector_store %arg14[%c0_74, %c0_75, %c0_76], %197 {strides = array<i32>} : memref<1x8x128xf32, #tpu.memory_space<vmem>>, vector<1x8x128xf32>,
    return
  }
  func.func @transform_0(%arg0: i32) -> (i32, i32, i32) {
    %c0_i32 = arith.constant 0 : i32
    %c0_i32_0 = arith.constant 0 : i32
    %c0_i32_1 = arith.constant 0 : i32
    return %arg0, %c0_i32, %c0_i32_0 : i32, i32, i32
  }
  func.func @transform_1(%arg0: i32) -> (i32, i32) {
    %c0_i32 = arith.constant 0 : i32
    %c0_i32_0 = arith.constant 0 : i32
    %c0_i32_1 = arith.constant 0 : i32
    return %c0_i32, %c0_i32_0 : i32, i32
  }
  func.func @transform_2(%arg0: i32) -> (i32, i32) {
    %c0_i32 = arith.constant 0 : i32
    %c0_i32_0 = arith.constant 0 : i32
    %c0_i32_1 = arith.constant 0 : i32
    return %c0_i32, %c0_i32_0 : i32, i32
  }
  func.func @transform_3(%arg0: i32) -> (i32, i32) {
    %c0_i32 = arith.constant 0 : i32
    %c0_i32_0 = arith.constant 0 : i32
    %c0_i32_1 = arith.constant 0 : i32
    return %c0_i32, %c0_i32_0 : i32, i32
  }
  func.func @transform_4(%arg0: i32) -> (i32, i32) {
    %c0_i32 = arith.constant 0 : i32
    %c0_i32_0 = arith.constant 0 : i32
    %c0_i32_1 = arith.constant 0 : i32
    return %c0_i32, %c0_i32_0 : i32, i32
  }
  func.func @transform_5(%arg0: i32) -> (i32, i32, i32) {
    %c0_i32 = arith.constant 0 : i32
    %c0_i32_0 = arith.constant 0 : i32
    %c0_i32_1 = arith.constant 0 : i32
    %c0_i32_2 = arith.constant 0 : i32
    return %c0_i32, %c0_i32_0, %c0_i32_1 : i32, i32, i32
  }
  func.func @transform_6(%arg0: i32) -> (i32, i32) {
    %c0_i32 = arith.constant 0 : i32
    %c0_i32_0 = arith.constant 0 : i32
    %c0_i32_1 = arith.constant 0 : i32
    return %c0_i32, %c0_i32_0 : i32, i32
  }
  func.func @transform_7(%arg0: i32) -> (i32, i32) {
    %c0_i32 = arith.constant 0 : i32
    %c0_i32_0 = arith.constant 0 : i32
    %c0_i32_1 = arith.constant 0 : i32
    return %c0_i32, %c0_i32_0 : i32, i32
  }
  func.func @transform_8(%arg0: i32) -> (i32, i32) {
    %c0_i32 = arith.constant 0 : i32
    %c0_i32_0 = arith.constant 0 : i32
    %c0_i32_1 = arith.constant 0 : i32
    return %c0_i32, %c0_i32_0 : i32, i32
  }
  func.func @transform_9(%arg0: i32) -> (i32, i32) {
    %c0_i32 = arith.constant 0 : i32
    %c0_i32_0 = arith.constant 0 : i32
    %c0_i32_1 = arith.constant 0 : i32
    return %c0_i32, %c0_i32_0 : i32, i32
  }
  func.func @transform_10(%arg0: i32) -> (i32, i32) {
    %c0_i32 = arith.constant 0 : i32
    %c0_i32_0 = arith.constant 0 : i32
    %c0_i32_1 = arith.constant 0 : i32
    return %c0_i32, %c0_i32_0 : i32, i32
  }
  func.func @transform_11(%arg0: i32) -> (i32, i32) {
    %c0_i32 = arith.constant 0 : i32
    %c0_i32_0 = arith.constant 0 : i32
    %c0_i32_1 = arith.constant 0 : i32
    return %c0_i32, %c0_i32_0 : i32, i32
  }
  func.func @transform_12(%arg0: i32) -> (i32, i32) {
    %c0_i32 = arith.constant 0 : i32
    %c0_i32_0 = arith.constant 0 : i32
    %c0_i32_1 = arith.constant 0 : i32
    return %c0_i32, %c0_i32_0 : i32, i32
  }
  func.func @transform_13(%arg0: i32) -> (i32, i32, i32) {
    %c0_i32 = arith.constant 0 : i32
    %c0_i32_0 = arith.constant 0 : i32
    %c0_i32_1 = arith.constant 0 : i32
    return %arg0, %c0_i32, %c0_i32_0 : i32, i32, i32
  }
}

module attributes {stable_mosaic.version = 11 : i64} {
  func.func @_block_pred_kernel(%arg0: i32, %arg1: memref<1x8x128xf32, #tpu.memory_space<vmem>>, %arg2: memref<1x128xf32, #tpu.memory_space<vmem>>, %arg3: memref<1x128xf32, #tpu.memory_space<vmem>>, %arg4: memref<384x128xbf16, #tpu.memory_space<vmem>>, %arg5: memref<384x1xf32, #tpu.memory_space<vmem>>, %arg6: memref<4x32x128xbf16, #tpu.memory_space<vmem>>, %arg7: memref<1x128xf32, #tpu.memory_space<vmem>>, %arg8: memref<1x128xf32, #tpu.memory_space<vmem>>, %arg9: memref<1x128xf32, #tpu.memory_space<vmem>>, %arg10: memref<128x512xbf16, #tpu.memory_space<vmem>>, %arg11: memref<1x512xf32, #tpu.memory_space<vmem>>, %arg12: memref<512x128xbf16, #tpu.memory_space<vmem>>, %arg13: memref<1x128xf32, #tpu.memory_space<vmem>>, %arg14: memref<1x128xf32, #tpu.memory_space<vmem>>, %arg15: memref<1x128xf32, #tpu.memory_space<vmem>>, %arg16: memref<128x128xbf16, #tpu.memory_space<vmem>>, %arg17: memref<1x128xf32, #tpu.memory_space<vmem>>, %arg18: memref<1x1x128xf32, #tpu.memory_space<vmem>>) attributes {dimension_semantics = [#tpu.dimension_semantics<parallel>], iteration_bounds = array<i64: 2>, scalar_prefetch = 0 : i64, scratch_operands = 0 : i64, tpu.core_type = #tpu.core_type<tc>, window_params = [{transform_indices = @transform_0, window_bounds = array<i64: 1, 8, 128>}, {pipeline_mode = #tpu.pipeline_mode<synchronous>, transform_indices = @transform_1, window_bounds = array<i64: 1, 128>}, {pipeline_mode = #tpu.pipeline_mode<synchronous>, transform_indices = @transform_2, window_bounds = array<i64: 1, 128>}, {pipeline_mode = #tpu.pipeline_mode<synchronous>, transform_indices = @transform_3, window_bounds = array<i64: 384, 128>}, {pipeline_mode = #tpu.pipeline_mode<synchronous>, transform_indices = @transform_4, window_bounds = array<i64: 384, 1>}, {pipeline_mode = #tpu.pipeline_mode<synchronous>, transform_indices = @transform_5, window_bounds = array<i64: 4, 32, 128>}, {pipeline_mode = #tpu.pipeline_mode<synchronous>, transform_indices = @transform_6, window_bounds = array<i64: 1, 128>}, {pipeline_mode = #tpu.pipeline_mode<synchronous>, transform_indices = @transform_7, window_bounds = array<i64: 1, 128>}, {pipeline_mode = #tpu.pipeline_mode<synchronous>, transform_indices = @transform_8, window_bounds = array<i64: 1, 128>}, {pipeline_mode = #tpu.pipeline_mode<synchronous>, transform_indices = @transform_9, window_bounds = array<i64: 128, 512>}, {pipeline_mode = #tpu.pipeline_mode<synchronous>, transform_indices = @transform_10, window_bounds = array<i64: 1, 512>}, {pipeline_mode = #tpu.pipeline_mode<synchronous>, transform_indices = @transform_11, window_bounds = array<i64: 512, 128>}, {pipeline_mode = #tpu.pipeline_mode<synchronous>, transform_indices = @transform_12, window_bounds = array<i64: 1, 128>}, {pipeline_mode = #tpu.pipeline_mode<synchronous>, transform_indices = @transform_13, window_bounds = array<i64: 1, 128>}, {pipeline_mode = #tpu.pipeline_mode<synchronous>, transform_indices = @transform_14, window_bounds = array<i64: 1, 128>}, {pipeline_mode = #tpu.pipeline_mode<synchronous>, transform_indices = @transform_15, window_bounds = array<i64: 128, 128>}, {pipeline_mode = #tpu.pipeline_mode<synchronous>, transform_indices = @transform_16, window_bounds = array<i64: 1, 128>}, {transform_indices = @transform_17, window_bounds = array<i64: 1, 1, 128>}]} {
    %c0 = arith.constant 0 : index
    %c0_0 = arith.constant 0 : index
    %c0_1 = arith.constant 0 : index
    %0 = vector.load %arg1[%c0, %c0_0, %c0_1] : memref<1x8x128xf32, #tpu.memory_space<vmem>>, vector<1x8x128xf32>
    %1 = vector.shape_cast %0 : vector<1x8x128xf32> to vector<8x128xf32>
    %cst = arith.constant dense<0.000000e+00> : vector<8xf32>
    %2 = vector.multi_reduction <add>, %1, %cst [1] : vector<8x128xf32> to vector<8xf32>
    %3 = vector.shape_cast %2 : vector<8xf32> to vector<8x1xf32>
    %cst_2 = arith.constant 1.280000e+02 : f32
    %4 = vector.broadcast %cst_2 : f32 to vector<8x1xf32>
    %5 = arith.divf %3, %4 : vector<8x1xf32>
    %6 = vector.broadcast %5 : vector<8x1xf32> to vector<8x128xf32>
    %7 = arith.subf %1, %6 : vector<8x128xf32>
    %8 = arith.mulf %7, %7 : vector<8x128xf32>
    %cst_3 = arith.constant dense<0.000000e+00> : vector<8xf32>
    %9 = vector.multi_reduction <add>, %8, %cst_3 [1] : vector<8x128xf32> to vector<8xf32>
    %10 = vector.shape_cast %9 : vector<8xf32> to vector<8x1xf32>
    %cst_4 = arith.constant 1.280000e+02 : f32
    %11 = vector.broadcast %cst_4 : f32 to vector<8x1xf32>
    %12 = arith.divf %10, %11 : vector<8x1xf32>
    %13 = vector.broadcast %5 : vector<8x1xf32> to vector<8x128xf32>
    %14 = arith.subf %1, %13 : vector<8x128xf32>
    %cst_5 = arith.constant 9.99999974E-6 : f32
    %15 = vector.broadcast %cst_5 : f32 to vector<8x1xf32>
    %16 = arith.addf %12, %15 : vector<8x1xf32>
    %17 = math.rsqrt %16 : vector<8x1xf32>
    %18 = vector.broadcast %17 : vector<8x1xf32> to vector<8x128xf32>
    %19 = arith.mulf %14, %18 : vector<8x128xf32>
    %c0_6 = arith.constant 0 : index
    %c0_7 = arith.constant 0 : index
    %20 = vector.load %arg2[%c0_6, %c0_7] : memref<1x128xf32, #tpu.memory_space<vmem>>, vector<1x128xf32>
    %21 = vector.broadcast %20 : vector<1x128xf32> to vector<8x128xf32>
    %22 = arith.mulf %19, %21 : vector<8x128xf32>
    %c0_8 = arith.constant 0 : index
    %c0_9 = arith.constant 0 : index
    %23 = vector.load %arg3[%c0_8, %c0_9] : memref<1x128xf32, #tpu.memory_space<vmem>>, vector<1x128xf32>
    %24 = vector.broadcast %23 : vector<1x128xf32> to vector<8x128xf32>
    %25 = arith.addf %22, %24 : vector<8x128xf32>
    %c0_10 = arith.constant 0 : index
    %c0_11 = arith.constant 0 : index
    %26 = vector.load %arg4[%c0_10, %c0_11] : memref<384x128xbf16, #tpu.memory_space<vmem>>, vector<384x128xbf16>
    %27 = arith.truncf %25 : vector<8x128xf32> to vector<8x128xbf16>
    %cst_12 = arith.constant dense<0.000000e+00> : vector<384x8xf32>
    %28 = tpu.matmul %26, %27, %cst_12 {dimension_numbers = #tpu.dot_dimension_numbers<[1], [1], [0], [0], [0, 0, 1, 0], [], []>} : vector<384x128xbf16>, vector<8x128xbf16>, vector<384x8xf32> -> vector<384x8xf32>
    %c0_13 = arith.constant 0 : index
    %c0_14 = arith.constant 0 : index
    %29 = vector.load %arg5[%c0_13, %c0_14] : memref<384x1xf32, #tpu.memory_space<vmem>>, vector<384x1xf32>
    %30 = vector.broadcast %29 : vector<384x1xf32> to vector<384x8xf32>
    %31 = arith.addf %28, %30 : vector<384x8xf32>
    %cst_15 = arith.constant 0.000000e+00 : f32
    %32 = vector.broadcast %cst_15 : f32 to vector<8x128xf32>
    %33 = vector.extract_strided_slice %31 {offsets = [0, 0], sizes = [32, 8], strides = [1, 1]} : vector<384x8xf32> to vector<32x8xf32>
    %34 = vector.extract_strided_slice %31 {offsets = [128, 0], sizes = [32, 8], strides = [1, 1]} : vector<384x8xf32> to vector<32x8xf32>
    %35 = vector.extract_strided_slice %31 {offsets = [256, 0], sizes = [32, 8], strides = [1, 1]} : vector<384x8xf32> to vector<32x8xf32>
    %36 = tpu.transpose %33, [1, 0] : vector<32x8xf32> -> vector<8x32xf32>
    %37 = arith.truncf %36 : vector<8x32xf32> to vector<8x32xbf16>
    %38 = arith.truncf %34 : vector<32x8xf32> to vector<32x8xbf16>
    %cst_16 = arith.constant dense<0.000000e+00> : vector<8x8xf32>
    %39 = tpu.matmul %37, %38, %cst_16 {dimension_numbers = #tpu.dot_dimension_numbers<[1], [0], [0], [1], [0, 0, 1, 1], [], []>} : vector<8x32xbf16>, vector<32x8xbf16>, vector<8x8xf32> -> vector<8x8xf32>
    %cst_17 = arith.constant 0.176776692 : f32
    %40 = vector.broadcast %cst_17 : f32 to vector<8x8xf32>
    %41 = arith.mulf %39, %40 : vector<8x8xf32>
    %cst_18 = arith.constant dense<0xFF800000> : vector<8xf32>
    %42 = vector.multi_reduction <maximumf>, %41, %cst_18 [1] : vector<8x8xf32> to vector<8xf32>
    %43 = vector.shape_cast %42 : vector<8xf32> to vector<8x1xf32>
    %44 = vector.broadcast %43 : vector<8x1xf32> to vector<8x8xf32>
    %45 = arith.subf %41, %44 : vector<8x8xf32>
    %46 = math.exp %45 : vector<8x8xf32>
    %cst_19 = arith.constant dense<0.000000e+00> : vector<8xf32>
    %47 = vector.multi_reduction <add>, %46, %cst_19 [1] : vector<8x8xf32> to vector<8xf32>
    %48 = vector.shape_cast %47 : vector<8xf32> to vector<8x1xf32>
    %49 = tpu.reciprocal %48 {approx = true} : vector<8x1xf32> -> vector<8x1xf32>
    %50 = vector.broadcast %49 : vector<8x1xf32> to vector<8x8xf32>
    %51 = arith.mulf %46, %50 : vector<8x8xf32>
    %52 = arith.truncf %51 : vector<8x8xf32> to vector<8x8xbf16>
    %53 = arith.truncf %35 : vector<32x8xf32> to vector<32x8xbf16>
    %cst_20 = arith.constant dense<0.000000e+00> : vector<8x32xf32>
    %54 = tpu.matmul %52, %53, %cst_20 {dimension_numbers = #tpu.dot_dimension_numbers<[1], [1], [0], [0], [0, 0, 1, 0], [], []>} : vector<8x8xbf16>, vector<32x8xbf16>, vector<8x32xf32> -> vector<8x32xf32>
    %c0_21 = arith.constant 0 : index
    %c0_22 = arith.constant 0 : index
    %c0_23 = arith.constant 0 : index
    %55 = vector.load %arg6[%c0_21, %c0_22, %c0_23] : memref<4x32x128xbf16, #tpu.memory_space<vmem>>, vector<1x32x128xbf16>
    %56 = vector.shape_cast %55 : vector<1x32x128xbf16> to vector<32x128xbf16>
    %57 = arith.truncf %54 : vector<8x32xf32> to vector<8x32xbf16>
    %cst_24 = arith.constant dense<0.000000e+00> : vector<8x128xf32>
    %58 = tpu.matmul %57, %56, %cst_24 {dimension_numbers = #tpu.dot_dimension_numbers<[1], [0], [0], [1], [0, 0, 1, 1], [], []>} : vector<8x32xbf16>, vector<32x128xbf16>, vector<8x128xf32> -> vector<8x128xf32>
    %59 = arith.addf %32, %58 : vector<8x128xf32>
    %60 = vector.extract_strided_slice %31 {offsets = [32, 0], sizes = [32, 8], strides = [1, 1]} : vector<384x8xf32> to vector<32x8xf32>
    %61 = vector.extract_strided_slice %31 {offsets = [160, 0], sizes = [32, 8], strides = [1, 1]} : vector<384x8xf32> to vector<32x8xf32>
    %62 = vector.extract_strided_slice %31 {offsets = [288, 0], sizes = [32, 8], strides = [1, 1]} : vector<384x8xf32> to vector<32x8xf32>
    %63 = tpu.transpose %60, [1, 0] : vector<32x8xf32> -> vector<8x32xf32>
    %64 = arith.truncf %63 : vector<8x32xf32> to vector<8x32xbf16>
    %65 = arith.truncf %61 : vector<32x8xf32> to vector<32x8xbf16>
    %cst_25 = arith.constant dense<0.000000e+00> : vector<8x8xf32>
    %66 = tpu.matmul %64, %65, %cst_25 {dimension_numbers = #tpu.dot_dimension_numbers<[1], [0], [0], [1], [0, 0, 1, 1], [], []>} : vector<8x32xbf16>, vector<32x8xbf16>, vector<8x8xf32> -> vector<8x8xf32>
    %cst_26 = arith.constant 0.176776692 : f32
    %67 = vector.broadcast %cst_26 : f32 to vector<8x8xf32>
    %68 = arith.mulf %66, %67 : vector<8x8xf32>
    %cst_27 = arith.constant dense<0xFF800000> : vector<8xf32>
    %69 = vector.multi_reduction <maximumf>, %68, %cst_27 [1] : vector<8x8xf32> to vector<8xf32>
    %70 = vector.shape_cast %69 : vector<8xf32> to vector<8x1xf32>
    %71 = vector.broadcast %70 : vector<8x1xf32> to vector<8x8xf32>
    %72 = arith.subf %68, %71 : vector<8x8xf32>
    %73 = math.exp %72 : vector<8x8xf32>
    %cst_28 = arith.constant dense<0.000000e+00> : vector<8xf32>
    %74 = vector.multi_reduction <add>, %73, %cst_28 [1] : vector<8x8xf32> to vector<8xf32>
    %75 = vector.shape_cast %74 : vector<8xf32> to vector<8x1xf32>
    %76 = tpu.reciprocal %75 {approx = true} : vector<8x1xf32> -> vector<8x1xf32>
    %77 = vector.broadcast %76 : vector<8x1xf32> to vector<8x8xf32>
    %78 = arith.mulf %73, %77 : vector<8x8xf32>
    %79 = arith.truncf %78 : vector<8x8xf32> to vector<8x8xbf16>
    %80 = arith.truncf %62 : vector<32x8xf32> to vector<32x8xbf16>
    %cst_29 = arith.constant dense<0.000000e+00> : vector<8x32xf32>
    %81 = tpu.matmul %79, %80, %cst_29 {dimension_numbers = #tpu.dot_dimension_numbers<[1], [1], [0], [0], [0, 0, 1, 0], [], []>} : vector<8x8xbf16>, vector<32x8xbf16>, vector<8x32xf32> -> vector<8x32xf32>
    %c1 = arith.constant 1 : index
    %c0_30 = arith.constant 0 : index
    %c0_31 = arith.constant 0 : index
    %82 = vector.load %arg6[%c1, %c0_30, %c0_31] : memref<4x32x128xbf16, #tpu.memory_space<vmem>>, vector<1x32x128xbf16>
    %83 = vector.shape_cast %82 : vector<1x32x128xbf16> to vector<32x128xbf16>
    %84 = arith.truncf %81 : vector<8x32xf32> to vector<8x32xbf16>
    %cst_32 = arith.constant dense<0.000000e+00> : vector<8x128xf32>
    %85 = tpu.matmul %84, %83, %cst_32 {dimension_numbers = #tpu.dot_dimension_numbers<[1], [0], [0], [1], [0, 0, 1, 1], [], []>} : vector<8x32xbf16>, vector<32x128xbf16>, vector<8x128xf32> -> vector<8x128xf32>
    %86 = arith.addf %59, %85 : vector<8x128xf32>
    %87 = vector.extract_strided_slice %31 {offsets = [64, 0], sizes = [32, 8], strides = [1, 1]} : vector<384x8xf32> to vector<32x8xf32>
    %88 = vector.extract_strided_slice %31 {offsets = [192, 0], sizes = [32, 8], strides = [1, 1]} : vector<384x8xf32> to vector<32x8xf32>
    %89 = vector.extract_strided_slice %31 {offsets = [320, 0], sizes = [32, 8], strides = [1, 1]} : vector<384x8xf32> to vector<32x8xf32>
    %90 = tpu.transpose %87, [1, 0] : vector<32x8xf32> -> vector<8x32xf32>
    %91 = arith.truncf %90 : vector<8x32xf32> to vector<8x32xbf16>
    %92 = arith.truncf %88 : vector<32x8xf32> to vector<32x8xbf16>
    %cst_33 = arith.constant dense<0.000000e+00> : vector<8x8xf32>
    %93 = tpu.matmul %91, %92, %cst_33 {dimension_numbers = #tpu.dot_dimension_numbers<[1], [0], [0], [1], [0, 0, 1, 1], [], []>} : vector<8x32xbf16>, vector<32x8xbf16>, vector<8x8xf32> -> vector<8x8xf32>
    %cst_34 = arith.constant 0.176776692 : f32
    %94 = vector.broadcast %cst_34 : f32 to vector<8x8xf32>
    %95 = arith.mulf %93, %94 : vector<8x8xf32>
    %cst_35 = arith.constant dense<0xFF800000> : vector<8xf32>
    %96 = vector.multi_reduction <maximumf>, %95, %cst_35 [1] : vector<8x8xf32> to vector<8xf32>
    %97 = vector.shape_cast %96 : vector<8xf32> to vector<8x1xf32>
    %98 = vector.broadcast %97 : vector<8x1xf32> to vector<8x8xf32>
    %99 = arith.subf %95, %98 : vector<8x8xf32>
    %100 = math.exp %99 : vector<8x8xf32>
    %cst_36 = arith.constant dense<0.000000e+00> : vector<8xf32>
    %101 = vector.multi_reduction <add>, %100, %cst_36 [1] : vector<8x8xf32> to vector<8xf32>
    %102 = vector.shape_cast %101 : vector<8xf32> to vector<8x1xf32>
    %103 = tpu.reciprocal %102 {approx = true} : vector<8x1xf32> -> vector<8x1xf32>
    %104 = vector.broadcast %103 : vector<8x1xf32> to vector<8x8xf32>
    %105 = arith.mulf %100, %104 : vector<8x8xf32>
    %106 = arith.truncf %105 : vector<8x8xf32> to vector<8x8xbf16>
    %107 = arith.truncf %89 : vector<32x8xf32> to vector<32x8xbf16>
    %cst_37 = arith.constant dense<0.000000e+00> : vector<8x32xf32>
    %108 = tpu.matmul %106, %107, %cst_37 {dimension_numbers = #tpu.dot_dimension_numbers<[1], [1], [0], [0], [0, 0, 1, 0], [], []>} : vector<8x8xbf16>, vector<32x8xbf16>, vector<8x32xf32> -> vector<8x32xf32>
    %c2 = arith.constant 2 : index
    %c0_38 = arith.constant 0 : index
    %c0_39 = arith.constant 0 : index
    %109 = vector.load %arg6[%c2, %c0_38, %c0_39] : memref<4x32x128xbf16, #tpu.memory_space<vmem>>, vector<1x32x128xbf16>
    %110 = vector.shape_cast %109 : vector<1x32x128xbf16> to vector<32x128xbf16>
    %111 = arith.truncf %108 : vector<8x32xf32> to vector<8x32xbf16>
    %cst_40 = arith.constant dense<0.000000e+00> : vector<8x128xf32>
    %112 = tpu.matmul %111, %110, %cst_40 {dimension_numbers = #tpu.dot_dimension_numbers<[1], [0], [0], [1], [0, 0, 1, 1], [], []>} : vector<8x32xbf16>, vector<32x128xbf16>, vector<8x128xf32> -> vector<8x128xf32>
    %113 = arith.addf %86, %112 : vector<8x128xf32>
    %114 = vector.extract_strided_slice %31 {offsets = [96, 0], sizes = [32, 8], strides = [1, 1]} : vector<384x8xf32> to vector<32x8xf32>
    %115 = vector.extract_strided_slice %31 {offsets = [224, 0], sizes = [32, 8], strides = [1, 1]} : vector<384x8xf32> to vector<32x8xf32>
    %116 = vector.extract_strided_slice %31 {offsets = [352, 0], sizes = [32, 8], strides = [1, 1]} : vector<384x8xf32> to vector<32x8xf32>
    %117 = tpu.transpose %114, [1, 0] : vector<32x8xf32> -> vector<8x32xf32>
    %118 = arith.truncf %117 : vector<8x32xf32> to vector<8x32xbf16>
    %119 = arith.truncf %115 : vector<32x8xf32> to vector<32x8xbf16>
    %cst_41 = arith.constant dense<0.000000e+00> : vector<8x8xf32>
    %120 = tpu.matmul %118, %119, %cst_41 {dimension_numbers = #tpu.dot_dimension_numbers<[1], [0], [0], [1], [0, 0, 1, 1], [], []>} : vector<8x32xbf16>, vector<32x8xbf16>, vector<8x8xf32> -> vector<8x8xf32>
    %cst_42 = arith.constant 0.176776692 : f32
    %121 = vector.broadcast %cst_42 : f32 to vector<8x8xf32>
    %122 = arith.mulf %120, %121 : vector<8x8xf32>
    %cst_43 = arith.constant dense<0xFF800000> : vector<8xf32>
    %123 = vector.multi_reduction <maximumf>, %122, %cst_43 [1] : vector<8x8xf32> to vector<8xf32>
    %124 = vector.shape_cast %123 : vector<8xf32> to vector<8x1xf32>
    %125 = vector.broadcast %124 : vector<8x1xf32> to vector<8x8xf32>
    %126 = arith.subf %122, %125 : vector<8x8xf32>
    %127 = math.exp %126 : vector<8x8xf32>
    %cst_44 = arith.constant dense<0.000000e+00> : vector<8xf32>
    %128 = vector.multi_reduction <add>, %127, %cst_44 [1] : vector<8x8xf32> to vector<8xf32>
    %129 = vector.shape_cast %128 : vector<8xf32> to vector<8x1xf32>
    %130 = tpu.reciprocal %129 {approx = true} : vector<8x1xf32> -> vector<8x1xf32>
    %131 = vector.broadcast %130 : vector<8x1xf32> to vector<8x8xf32>
    %132 = arith.mulf %127, %131 : vector<8x8xf32>
    %133 = arith.truncf %132 : vector<8x8xf32> to vector<8x8xbf16>
    %134 = arith.truncf %116 : vector<32x8xf32> to vector<32x8xbf16>
    %cst_45 = arith.constant dense<0.000000e+00> : vector<8x32xf32>
    %135 = tpu.matmul %133, %134, %cst_45 {dimension_numbers = #tpu.dot_dimension_numbers<[1], [1], [0], [0], [0, 0, 1, 0], [], []>} : vector<8x8xbf16>, vector<32x8xbf16>, vector<8x32xf32> -> vector<8x32xf32>
    %c3 = arith.constant 3 : index
    %c0_46 = arith.constant 0 : index
    %c0_47 = arith.constant 0 : index
    %136 = vector.load %arg6[%c3, %c0_46, %c0_47] : memref<4x32x128xbf16, #tpu.memory_space<vmem>>, vector<1x32x128xbf16>
    %137 = vector.shape_cast %136 : vector<1x32x128xbf16> to vector<32x128xbf16>
    %138 = arith.truncf %135 : vector<8x32xf32> to vector<8x32xbf16>
    %cst_48 = arith.constant dense<0.000000e+00> : vector<8x128xf32>
    %139 = tpu.matmul %138, %137, %cst_48 {dimension_numbers = #tpu.dot_dimension_numbers<[1], [0], [0], [1], [0, 0, 1, 1], [], []>} : vector<8x32xbf16>, vector<32x128xbf16>, vector<8x128xf32> -> vector<8x128xf32>
    %140 = arith.addf %113, %139 : vector<8x128xf32>
    %141 = arith.addf %1, %140 : vector<8x128xf32>
    %c0_49 = arith.constant 0 : index
    %c0_50 = arith.constant 0 : index
    %142 = vector.load %arg7[%c0_49, %c0_50] : memref<1x128xf32, #tpu.memory_space<vmem>>, vector<1x128xf32>
    %143 = vector.broadcast %142 : vector<1x128xf32> to vector<8x128xf32>
    %144 = arith.addf %141, %143 : vector<8x128xf32>
    %cst_51 = arith.constant dense<0.000000e+00> : vector<8xf32>
    %145 = vector.multi_reduction <add>, %144, %cst_51 [1] : vector<8x128xf32> to vector<8xf32>
    %146 = vector.shape_cast %145 : vector<8xf32> to vector<8x1xf32>
    %cst_52 = arith.constant 1.280000e+02 : f32
    %147 = vector.broadcast %cst_52 : f32 to vector<8x1xf32>
    %148 = arith.divf %146, %147 : vector<8x1xf32>
    %149 = vector.broadcast %148 : vector<8x1xf32> to vector<8x128xf32>
    %150 = arith.subf %144, %149 : vector<8x128xf32>
    %151 = arith.mulf %150, %150 : vector<8x128xf32>
    %cst_53 = arith.constant dense<0.000000e+00> : vector<8xf32>
    %152 = vector.multi_reduction <add>, %151, %cst_53 [1] : vector<8x128xf32> to vector<8xf32>
    %153 = vector.shape_cast %152 : vector<8xf32> to vector<8x1xf32>
    %cst_54 = arith.constant 1.280000e+02 : f32
    %154 = vector.broadcast %cst_54 : f32 to vector<8x1xf32>
    %155 = arith.divf %153, %154 : vector<8x1xf32>
    %156 = vector.broadcast %148 : vector<8x1xf32> to vector<8x128xf32>
    %157 = arith.subf %144, %156 : vector<8x128xf32>
    %cst_55 = arith.constant 9.99999974E-6 : f32
    %158 = vector.broadcast %cst_55 : f32 to vector<8x1xf32>
    %159 = arith.addf %155, %158 : vector<8x1xf32>
    %160 = math.rsqrt %159 : vector<8x1xf32>
    %161 = vector.broadcast %160 : vector<8x1xf32> to vector<8x128xf32>
    %162 = arith.mulf %157, %161 : vector<8x128xf32>
    %c0_56 = arith.constant 0 : index
    %c0_57 = arith.constant 0 : index
    %163 = vector.load %arg8[%c0_56, %c0_57] : memref<1x128xf32, #tpu.memory_space<vmem>>, vector<1x128xf32>
    %164 = vector.broadcast %163 : vector<1x128xf32> to vector<8x128xf32>
    %165 = arith.mulf %162, %164 : vector<8x128xf32>
    %c0_58 = arith.constant 0 : index
    %c0_59 = arith.constant 0 : index
    %166 = vector.load %arg9[%c0_58, %c0_59] : memref<1x128xf32, #tpu.memory_space<vmem>>, vector<1x128xf32>
    %167 = vector.broadcast %166 : vector<1x128xf32> to vector<8x128xf32>
    %168 = arith.addf %165, %167 : vector<8x128xf32>
    %c0_60 = arith.constant 0 : index
    %c0_61 = arith.constant 0 : index
    %169 = vector.load %arg10[%c0_60, %c0_61] : memref<128x512xbf16, #tpu.memory_space<vmem>>, vector<128x512xbf16>
    %170 = arith.truncf %168 : vector<8x128xf32> to vector<8x128xbf16>
    %cst_62 = arith.constant dense<0.000000e+00> : vector<8x512xf32>
    %171 = tpu.matmul %170, %169, %cst_62 {dimension_numbers = #tpu.dot_dimension_numbers<[1], [0], [0], [1], [0, 0, 1, 1], [], []>} : vector<8x128xbf16>, vector<128x512xbf16>, vector<8x512xf32> -> vector<8x512xf32>
    %c0_63 = arith.constant 0 : index
    %c0_64 = arith.constant 0 : index
    %172 = vector.load %arg11[%c0_63, %c0_64] : memref<1x512xf32, #tpu.memory_space<vmem>>, vector<1x512xf32>
    %173 = vector.broadcast %172 : vector<1x512xf32> to vector<8x512xf32>
    %174 = arith.addf %171, %173 : vector<8x512xf32>
    %175 = arith.mulf %174, %174 : vector<8x512xf32>
    %176 = arith.mulf %174, %175 : vector<8x512xf32>
    %cst_65 = arith.constant 4.471500e-02 : f32
    %177 = vector.broadcast %cst_65 : f32 to vector<8x512xf32>
    %178 = arith.mulf %177, %176 : vector<8x512xf32>
    %179 = arith.addf %174, %178 : vector<8x512xf32>
    %cst_66 = arith.constant 0.797884583 : f32
    %180 = vector.broadcast %cst_66 : f32 to vector<8x512xf32>
    %181 = arith.mulf %180, %179 : vector<8x512xf32>
    %182 = math.tanh %181 : vector<8x512xf32>
    %cst_67 = arith.constant 1.000000e+00 : f32
    %183 = vector.broadcast %cst_67 : f32 to vector<8x512xf32>
    %184 = arith.addf %183, %182 : vector<8x512xf32>
    %cst_68 = arith.constant 5.000000e-01 : f32
    %185 = vector.broadcast %cst_68 : f32 to vector<8x512xf32>
    %186 = arith.mulf %185, %184 : vector<8x512xf32>
    %187 = arith.mulf %174, %186 : vector<8x512xf32>
    %c0_69 = arith.constant 0 : index
    %c0_70 = arith.constant 0 : index
    %188 = vector.load %arg12[%c0_69, %c0_70] : memref<512x128xbf16, #tpu.memory_space<vmem>>, vector<512x128xbf16>
    %189 = arith.truncf %187 : vector<8x512xf32> to vector<8x512xbf16>
    %cst_71 = arith.constant dense<0.000000e+00> : vector<8x128xf32>
    %190 = tpu.matmul %189, %188, %cst_71 {dimension_numbers = #tpu.dot_dimension_numbers<[1], [0], [0], [1], [0, 0, 1, 1], [], []>} : vector<8x512xbf16>, vector<512x128xbf16>, vector<8x128xf32> -> vector<8x128xf32>
    %191 = arith.addf %144, %190 : vector<8x128xf32>
    %c0_72 = arith.constant 0 : index
    %c0_73 = arith.constant 0 : index
    %192 = vector.load %arg13[%c0_72, %c0_73] : memref<1x128xf32, #tpu.memory_space<vmem>>, vector<1x128xf32>
    %193 = vector.broadcast %192 : vector<1x128xf32> to vector<8x128xf32>
    %194 = arith.addf %191, %193 : vector<8x128xf32>
    %195 = vector.extract_strided_slice %194 {offsets = [4, 0], sizes = [1, 128], strides = [1, 1]} : vector<8x128xf32> to vector<1x128xf32>
    %cst_74 = arith.constant dense<0.000000e+00> : vector<1xf32>
    %196 = vector.multi_reduction <add>, %195, %cst_74 [1] : vector<1x128xf32> to vector<1xf32>
    %197 = vector.shape_cast %196 : vector<1xf32> to vector<1x1xf32>
    %cst_75 = arith.constant 1.280000e+02 : f32
    %198 = vector.broadcast %cst_75 : f32 to vector<1x1xf32>
    %199 = arith.divf %197, %198 : vector<1x1xf32>
    %200 = vector.broadcast %199 : vector<1x1xf32> to vector<1x128xf32>
    %201 = arith.subf %195, %200 : vector<1x128xf32>
    %202 = arith.mulf %201, %201 : vector<1x128xf32>
    %cst_76 = arith.constant dense<0.000000e+00> : vector<1xf32>
    %203 = vector.multi_reduction <add>, %202, %cst_76 [1] : vector<1x128xf32> to vector<1xf32>
    %204 = vector.shape_cast %203 : vector<1xf32> to vector<1x1xf32>
    %cst_77 = arith.constant 1.280000e+02 : f32
    %205 = vector.broadcast %cst_77 : f32 to vector<1x1xf32>
    %206 = arith.divf %204, %205 : vector<1x1xf32>
    %207 = vector.broadcast %199 : vector<1x1xf32> to vector<1x128xf32>
    %208 = arith.subf %195, %207 : vector<1x128xf32>
    %cst_78 = arith.constant 9.99999974E-6 : f32
    %209 = vector.broadcast %cst_78 : f32 to vector<1x1xf32>
    %210 = arith.addf %206, %209 : vector<1x1xf32>
    %211 = math.rsqrt %210 : vector<1x1xf32>
    %212 = vector.broadcast %211 : vector<1x1xf32> to vector<1x128xf32>
    %213 = arith.mulf %208, %212 : vector<1x128xf32>
    %c0_79 = arith.constant 0 : index
    %c0_80 = arith.constant 0 : index
    %214 = vector.load %arg14[%c0_79, %c0_80] : memref<1x128xf32, #tpu.memory_space<vmem>>, vector<1x128xf32>
    %215 = arith.mulf %213, %214 : vector<1x128xf32>
    %c0_81 = arith.constant 0 : index
    %c0_82 = arith.constant 0 : index
    %216 = vector.load %arg15[%c0_81, %c0_82] : memref<1x128xf32, #tpu.memory_space<vmem>>, vector<1x128xf32>
    %217 = arith.addf %215, %216 : vector<1x128xf32>
    %c0_83 = arith.constant 0 : index
    %c0_84 = arith.constant 0 : index
    %218 = vector.load %arg16[%c0_83, %c0_84] : memref<128x128xbf16, #tpu.memory_space<vmem>>, vector<128x128xbf16>
    %219 = arith.truncf %217 : vector<1x128xf32> to vector<1x128xbf16>
    %cst_85 = arith.constant dense<0.000000e+00> : vector<1x128xf32>
    %220 = tpu.matmul %219, %218, %cst_85 {dimension_numbers = #tpu.dot_dimension_numbers<[1], [0], [0], [1], [0, 0, 1, 1], [], []>} : vector<1x128xbf16>, vector<128x128xbf16>, vector<1x128xf32> -> vector<1x128xf32>
    %c0_86 = arith.constant 0 : index
    %c0_87 = arith.constant 0 : index
    %221 = vector.load %arg17[%c0_86, %c0_87] : memref<1x128xf32, #tpu.memory_space<vmem>>, vector<1x128xf32>
    %222 = arith.addf %220, %221 : vector<1x128xf32>
    %c0_88 = arith.constant 0 : index
    %c0_89 = arith.constant 0 : index
    %c0_90 = arith.constant 0 : index
    %223 = vector.load %arg18[%c0_88, %c0_89, %c0_90] : memref<1x1x128xf32, #tpu.memory_space<vmem>>, vector<1x1x128xf32>
    %224 = vector.shape_cast %223 : vector<1x1x128xf32> to vector<1x128xf32>
    %225 = vector.shape_cast %222 : vector<1x128xf32> to vector<1x1x128xf32>
    tpu.vector_store %arg18[%c0_88, %c0_89, %c0_90], %225 {strides = array<i32>} : memref<1x1x128xf32, #tpu.memory_space<vmem>>, vector<1x1x128xf32>,
    return
  }
  func.func @transform_0(%arg0: i32) -> (i32, i32, i32) {
    %c0_i32 = arith.constant 0 : i32
    %c0_i32_0 = arith.constant 0 : i32
    %c0_i32_1 = arith.constant 0 : i32
    return %arg0, %c0_i32, %c0_i32_0 : i32, i32, i32
  }
  func.func @transform_1(%arg0: i32) -> (i32, i32) {
    %c0_i32 = arith.constant 0 : i32
    %c0_i32_0 = arith.constant 0 : i32
    %c0_i32_1 = arith.constant 0 : i32
    return %c0_i32, %c0_i32_0 : i32, i32
  }
  func.func @transform_2(%arg0: i32) -> (i32, i32) {
    %c0_i32 = arith.constant 0 : i32
    %c0_i32_0 = arith.constant 0 : i32
    %c0_i32_1 = arith.constant 0 : i32
    return %c0_i32, %c0_i32_0 : i32, i32
  }
  func.func @transform_3(%arg0: i32) -> (i32, i32) {
    %c0_i32 = arith.constant 0 : i32
    %c0_i32_0 = arith.constant 0 : i32
    %c0_i32_1 = arith.constant 0 : i32
    return %c0_i32, %c0_i32_0 : i32, i32
  }
  func.func @transform_4(%arg0: i32) -> (i32, i32) {
    %c0_i32 = arith.constant 0 : i32
    %c0_i32_0 = arith.constant 0 : i32
    %c0_i32_1 = arith.constant 0 : i32
    return %c0_i32, %c0_i32_0 : i32, i32
  }
  func.func @transform_5(%arg0: i32) -> (i32, i32, i32) {
    %c0_i32 = arith.constant 0 : i32
    %c0_i32_0 = arith.constant 0 : i32
    %c0_i32_1 = arith.constant 0 : i32
    %c0_i32_2 = arith.constant 0 : i32
    return %c0_i32, %c0_i32_0, %c0_i32_1 : i32, i32, i32
  }
  func.func @transform_6(%arg0: i32) -> (i32, i32) {
    %c0_i32 = arith.constant 0 : i32
    %c0_i32_0 = arith.constant 0 : i32
    %c0_i32_1 = arith.constant 0 : i32
    return %c0_i32, %c0_i32_0 : i32, i32
  }
  func.func @transform_7(%arg0: i32) -> (i32, i32) {
    %c0_i32 = arith.constant 0 : i32
    %c0_i32_0 = arith.constant 0 : i32
    %c0_i32_1 = arith.constant 0 : i32
    return %c0_i32, %c0_i32_0 : i32, i32
  }
  func.func @transform_8(%arg0: i32) -> (i32, i32) {
    %c0_i32 = arith.constant 0 : i32
    %c0_i32_0 = arith.constant 0 : i32
    %c0_i32_1 = arith.constant 0 : i32
    return %c0_i32, %c0_i32_0 : i32, i32
  }
  func.func @transform_9(%arg0: i32) -> (i32, i32) {
    %c0_i32 = arith.constant 0 : i32
    %c0_i32_0 = arith.constant 0 : i32
    %c0_i32_1 = arith.constant 0 : i32
    return %c0_i32, %c0_i32_0 : i32, i32
  }
  func.func @transform_10(%arg0: i32) -> (i32, i32) {
    %c0_i32 = arith.constant 0 : i32
    %c0_i32_0 = arith.constant 0 : i32
    %c0_i32_1 = arith.constant 0 : i32
    return %c0_i32, %c0_i32_0 : i32, i32
  }
  func.func @transform_11(%arg0: i32) -> (i32, i32) {
    %c0_i32 = arith.constant 0 : i32
    %c0_i32_0 = arith.constant 0 : i32
    %c0_i32_1 = arith.constant 0 : i32
    return %c0_i32, %c0_i32_0 : i32, i32
  }
  func.func @transform_12(%arg0: i32) -> (i32, i32) {
    %c0_i32 = arith.constant 0 : i32
    %c0_i32_0 = arith.constant 0 : i32
    %c0_i32_1 = arith.constant 0 : i32
    return %c0_i32, %c0_i32_0 : i32, i32
  }
  func.func @transform_13(%arg0: i32) -> (i32, i32) {
    %c0_i32 = arith.constant 0 : i32
    %c0_i32_0 = arith.constant 0 : i32
    %c0_i32_1 = arith.constant 0 : i32
    return %c0_i32, %c0_i32_0 : i32, i32
  }
  func.func @transform_14(%arg0: i32) -> (i32, i32) {
    %c0_i32 = arith.constant 0 : i32
    %c0_i32_0 = arith.constant 0 : i32
    %c0_i32_1 = arith.constant 0 : i32
    return %c0_i32, %c0_i32_0 : i32, i32
  }
  func.func @transform_15(%arg0: i32) -> (i32, i32) {
    %c0_i32 = arith.constant 0 : i32
    %c0_i32_0 = arith.constant 0 : i32
    %c0_i32_1 = arith.constant 0 : i32
    return %c0_i32, %c0_i32_0 : i32, i32
  }
  func.func @transform_16(%arg0: i32) -> (i32, i32) {
    %c0_i32 = arith.constant 0 : i32
    %c0_i32_0 = arith.constant 0 : i32
    %c0_i32_1 = arith.constant 0 : i32
    return %c0_i32, %c0_i32_0 : i32, i32
  }
  func.func @transform_17(%arg0: i32) -> (i32, i32, i32) {
    %c0_i32 = arith.constant 0 : i32
    %c0_i32_0 = arith.constant 0 : i32
    %c0_i32_1 = arith.constant 0 : i32
    return %arg0, %c0_i32, %c0_i32_0 : i32, i32, i32
  }
}

</mosaic_0001>

<bundles_post_ra>
// kernel: _lambda_.6
= control target key start
LH: loop header
LB: loop body
LE: loop exit
PB: predicated region body
PF: predicated region fallthrough
CT: control target
= control target key end

     0   :  { %s423_s15 = smov 0   ;;  %s470_s0 = inlined_call_operand.vmem [shape: f32[2,8,128], index: 0, kind: input, shape index: {}]   ;;  %s471_s1 = inlined_call_operand.vmem [shape: bf16[128,128], index: 1, kind: input, shape index: {}]   ;;  %s472_s2 = inlined_call_operand.vmem [shape: f32[1,128], index: 2, kind: input, shape index: {}]   ;;  %s473_s3 = inlined_call_operand.vmem [shape: f32[1,8,128], index: 3, kind: input, shape index: {}]   ;;  %s474_s4 = inlined_call_operand.vmem [shape: f32[2,8,128], index: 4, kind: output, shape index: {}]  }
   0x1 LB: > { %s332_s16 = sadd.s32 4294967295, %s396_s15   ;;  %p336_p0 = scmp.ge.s32.totalorder %s396_s15, 1  ;;  %s396_s15 = sphi %s423_s15, %s14_s15  }
   0x2   : > { %p161_p1 = scmp.lt.s32.totalorder %s396_s15, 3 }
   0x4   : > { %p162_p2 = pnand %p336_p0, %p161_p1 }
   0x5   : > { %p185_p3 = scmp.lt.s32.totalorder (!%p162_p2), %s332_s16, 1 }
   0x6   : > { %165 = sbr.rel (%p162_p2) target bundleno = 177 (0xb1), region = 36 }
   0xb   : > { %v380_v0 = vld [vmem:[%s471_s1 + $0x38] sm:$0xff]  ;;  %v379_v1 = vld [vmem:[%s471_s1 + $0x30] sm:$0xff]  ;;  %v378_v2 = vld [vmem:[%s471_s1 + $0x28] sm:$0xff]  ;;  %s476_s16 = smov (!%p185_p3, %s332_s16), 1 }
   0xc   : > { %263 = vmatpush.bf16.msra.mxu0 %v380_v0  ;;  %v377_v3 = vld [vmem:[%s471_s1 + $0x20] sm:$0xff]  ;;  %v376_v4 = vld [vmem:[%s471_s1 + $0x18] sm:$0xff]  ;;  %v375_v5 = vld [vmem:[%s471_s1 + $0x10] sm:$0xff]  ;;  %s337_s29 = sshll.u32 %s476_s16, 3 }
   0xd   : > { %v374_v6 = vld [vmem:[%s471_s1 + $0x8] sm:$0xff]  ;;  %s188_s8 = scalar_lea.vmem %s470_s0, %s337_s29  ;;  %v373_v7 = vld [vmem:[%s471_s1] sm:$0xff]  ;;  %s192_s18 = scalar_lea.vmem %s474_s4, %s337_s29 }
   0xe   : > { %v193_v8 = vld [vmem:[%s188_s8] sm:$0xff] }
   0xf   : > { %v210_v9 = vpack.c.bf16 %v193_v8, %v193_v8  ;;  %v389_v10 = vld [vmem:[%s472_s2] ss:$0 sm:$0xff] }
  0x10   : > { %264 = vmatpush.bf16.msra.mxu0 %v379_v1  ;;  %v276_v12 = vld [vmem:[%s473_s3] sm:$0xff] }
  0x14   : > { %265 = vmatpush.bf16.msra.mxu0 %v378_v2 }
  0x18   : > { %266 = vmatpush.bf16.msra.mxu0 %v377_v3 }
  0x1c   : > { %267 = vmatpush.bf16.msra.mxu0 %v376_v4 }
  0x20   : > { %268 = vmatpush.bf16.msra.mxu0 %v375_v5 }
  0x24   : > { %269 = vmatpush.bf16.msra.mxu0 %v374_v6 }
  0x28   : > { %270 = vmatpush.bf16.msra.mxu0 %v373_v7 }
  0x2b   : > { %271 = vmatmul.bf16.vlgmr.msra.gmra.mxu0 %v210_v9 }
  0xa8   : > { %v272_v11 = vpop.f32.mrf.mxu0 }
  0xa9   : > { %v273_v13 = vadd.f32 %v389_v10, %v272_v11 }
  0xab   : > { %v277_v14 = vadd.f32 %v276_v12, %v273_v13 }
  0xad   : > { %278 = vst [vmem:[%s192_s18] sm:$0xff] %v277_v14 }
  0xb0   : > { %v274_v15 = vpop.f32.mrf.mxu0 }
  0xb1 PF: > { %s14_s15 = sadd.s32 1, %s396_s15  }
  0xb2   : > { %p11_p4 = scmp.ge.s32.totalorder %s14_s15, 4  }
  0xb4   :  { %13 = sbr.rel (!%p11_p4) target bundleno = 1 (0x1), region = 66 }

// kernel: _lambda_.9
= control target key start
LH: loop header
LB: loop body
LE: loop exit
PB: predicated region body
PF: predicated region fallthrough
CT: control target
= control target key end

     0   :  { %s532_s21 = smov 0   ;;  %s592_s0 = inlined_call_operand.vmem [shape: f32[2,8,128], index: 0, kind: input, shape index: {}]   ;;  %s593_s1 = inlined_call_operand.vmem [shape: f32[1,128], index: 1, kind: input, shape index: {}]   ;;  %s594_s2 = inlined_call_operand.vmem [shape: f32[1,128], index: 2, kind: input, shape index: {}]   ;;  %s595_s3 = inlined_call_operand.vmem [shape: bf16[128,128], index: 3, kind: input, shape index: {}]   ;;  %s596_s4 = inlined_call_operand.vmem [shape: f32[1,128], index: 4, kind: input, shape index: {}]   ;;  %s597_s5 = inlined_call_operand.vmem [shape: f32[1,8,128], index: 5, kind: input, shape index: {}]   ;;  %s598_s6 = inlined_call_operand.vmem [shape: f32[2,8,128], index: 6, kind: output, shape index: {}]  }
   0x1 LB: > { %s423_s22 = sadd.s32 4294967295, %s494_s21   ;;  %p427_p0 = scmp.ge.s32.totalorder %s494_s21, 1  ;;  %s494_s21 = sphi %s532_s21, %s16_s21  }
   0x2   : > { %p211_p1 = scmp.lt.s32.totalorder %s494_s21, 3 }
   0x4   : > { %p212_p2 = pnand %p427_p0, %p211_p1 }
   0x5   : > { %p239_p3 = scmp.lt.s32.totalorder (!%p212_p2), %s423_s22, 1 }
   0x6   : > { %215 = sbr.rel (%p212_p2) target bundleno = 417 (0x1a1), region = 44 }
   0xb   : > { %s600_s22 = smov (!%p239_p3, %s423_s22), 1  ;;  %v496_v1 = vmov 128.0   ;;  %v471_v2 = vld [vmem:[%s595_s3 + $0x38] sm:$0xff]  ;;  %v470_v13 = vld [vmem:[%s595_s3 + $0x30] sm:$0xff]  ;;  %v469_v14 = vld [vmem:[%s595_s3 + $0x28] sm:$0xff] }
   0xc   : > { %s428_s23 = sshll.u32 %s600_s22, 3  ;;  %484 = vrcp.f32 %v496_v1  ;;  %354 = vmatpush.bf16.msra.mxu0 %v471_v2  ;;  %v468_v15 = vld [vmem:[%s595_s3 + $0x20] sm:$0xff]  ;;  %v467_v16 = vld [vmem:[%s595_s3 + $0x18] sm:$0xff]  ;;  %v466_v17 = vld [vmem:[%s595_s3 + $0x10] sm:$0xff] }
   0xd   : > { %s242_s26 = scalar_lea.vmem %s592_s0, %s428_s23  ;;  %v465_v18 = vld [vmem:[%s595_s3 + $0x8] sm:$0xff]  ;;  %v464_v19 = vld [vmem:[%s595_s3] sm:$0xff]  ;;  %s246_s8 = scalar_lea.vmem %s598_s6, %s428_s23 }
   0xe   : > { %v247_v0 = vld [vmem:[%s242_s26] sm:$0xff] }
   0xf   : > { %248 = vadd.xlane.f32.xlu0 %v247_v0  ;;  %v481_v29 = vld [vmem:[%s593_s1] ss:$0 sm:$0xff] }
  0x10   : > { %355 = vmatpush.bf16.msra.mxu0 %v470_v13  ;;  %v482_v32 = vld [vmem:[%s594_s2] ss:$0 sm:$0xff] }
  0x11   : > { %v483_v36 = vld [vmem:[%s596_s4] ss:$0 sm:$0xff] }
  0x12   : > { %v485_v3 = vpop.eup %484  ;;  %v367_v38 = vld [vmem:[%s597_s5] sm:$0xff] }
  0x13   : > { %v251_v4 = vmul.f32 128.0, %v485_v3  ;;  %vm255_vm0 = vweird.f32 %v485_v3 }
  0x14   : > { %356 = vmatpush.bf16.msra.mxu0 %v469_v14 }
  0x15   : > { %v252_v5 = vsub.f32 1.0, %v251_v4 }
  0x17   : > { %v253_v6 = vmul.f32 %v485_v3, %v252_v5 }
  0x18   : > { %357 = vmatpush.bf16.msra.mxu0 %v468_v15 }
  0x19   : > { %v254_v7 = vadd.f32 %v485_v3, %v253_v6 }
  0x1b   : > { %v256_v8 = vsel %vm255_vm0, %v485_v3, %v254_v7 }
  0x1c   : > { %358 = vmatpush.bf16.msra.mxu0 %v467_v16 }
  0x20   : > { %359 = vmatpush.bf16.msra.mxu0 %v466_v17 }
  0x24   : > { %360 = vmatpush.bf16.msra.mxu0 %v465_v18 }
  0x28   : > { %361 = vmatpush.bf16.msra.mxu0 %v464_v19 }
  0x82   : > { %v249_v9 = vpop.xlane.xlu0 %248 }
  0x83   : > { %v257_v10 = vmul.f32 %v256_v8, %v249_v9 }
  0x85   : > { %v258_v11 = vsub.f32 %v247_v0, %v257_v10 }
  0x87   : > { %v259_v12 = vmul.f32 %v258_v11, %v258_v11 }
  0x89   : > { %260 = vadd.xlane.f32.xlu0 %v259_v12 }
  0xfc   : > { %v261_v20 = vpop.xlane.xlu0 %260 }
  0xfd   : > { %v262_v21 = vmul.f32 %v261_v20, %v256_v8 }
  0xff   : > { %v263_v22 = vadd.f32 1e-05, %v262_v21 }
 0x101   : > { %486 = vrsqrt.f32 %v263_v22  ;;  %vm270_vm2 = vweird.f32 %v263_v22 }
 0x107   : > { %v487_v23 = vpop.eup %486 }
 0x108   : > { %v265_v24 = vmul.f32 %v487_v23, %v263_v22  ;;  %vm271_vm1 = vweird.f32 %v487_v23 }
 0x109   : > { %vm272_vm3 = vmor %vm270_vm2, %vm271_vm1 }
 0x10a   : > { %v266_v25 = vmul.f32 %v487_v23, %v265_v24 }
 0x10c   : > { %v267_v26 = vmul.f32 0.5, %v266_v25 }
 0x10e   : > { %v268_v27 = vsub.f32 1.5, %v267_v26 }
 0x110   : > { %v269_v28 = vmul.f32 %v487_v23, %v268_v27 }
 0x112   : > { %v273_v30 = vsel %vm272_vm3, %v487_v23, %v269_v28 }
 0x113   : > { %v274_v31 = vmul.f32 %v273_v30, %v258_v11 }
 0x115   : > { %v279_v33 = vmul.f32 %v481_v29, %v274_v31 }
 0x117   : > { %v284_v34 = vadd.f32 %v482_v32, %v279_v33 }
 0x119   : > { %v301_v35 = vpack.c.bf16 %v284_v34, %v284_v34 }
 0x11b   : > { %362 = vmatmul.bf16.vlgmr.msra.gmra.mxu0 %v301_v35 }
 0x198   : > { %v363_v37 = vpop.f32.mrf.mxu0 }
 0x199   : > { %v364_v39 = vadd.f32 %v483_v36, %v363_v37 }
 0x19b   : > { %v368_v40 = vadd.f32 %v367_v38, %v364_v39 }
 0x19d   : > { %369 = vst [vmem:[%s246_s8] sm:$0xff] %v368_v40 }
 0x1a0   : > { %v365_v41 = vpop.f32.mrf.mxu0 }
 0x1a1 PF: > { %s16_s21 = sadd.s32 1, %s494_s21  }
 0x1a2   : > { %p13_p4 = scmp.ge.s32.totalorder %s16_s21, 4  }
 0x1a4   :  { %15 = sbr.rel (!%p13_p4) target bundleno = 1 (0x1), region = 74 }

// kernel: _lambda_.7
= control target key start
LH: loop header
LB: loop body
LE: loop exit
PB: predicated region body
PF: predicated region fallthrough
CT: control target
= control target key end

     0   :  { %s2922_s25 = smov 0   ;;  %s3653_s0 = inlined_call_operand.vmem [shape: f32[2,8,128], index: 0, kind: input, shape index: {}]   ;;  %s3654_s1 = inlined_call_operand.vmem [shape: f32[1,128], index: 1, kind: input, shape index: {}]   ;;  %s3655_s2 = inlined_call_operand.vmem [shape: f32[1,128], index: 2, kind: input, shape index: {}]   ;;  %s3656_s3 = inlined_call_operand.vmem [shape: bf16[384,128], index: 3, kind: input, shape index: {}]   ;;  %s3657_s4 = inlined_call_operand.vmem [shape: f32[384,1], index: 4, kind: input, shape index: {}]   ;;  %s3658_s5 = inlined_call_operand.vmem [shape: bf16[4,32,128], index: 5, kind: input, shape index: {}]   ;;  %s3659_s6 = inlined_call_operand.vmem [shape: f32[1,128], index: 6, kind: input, shape index: {}]   ;;  %s3660_s7 = inlined_call_operand.vmem [shape: f32[1,128], index: 7, kind: input, shape index: {}]   ;;  %s3661_s8 = inlined_call_operand.vmem [shape: f32[1,128], index: 8, kind: input, shape index: {}]   ;;  %s3662_s9 = inlined_call_operand.vmem [shape: bf16[128,512], index: 9, kind: input, shape index: {}]   ;;  %s3663_s10 = inlined_call_operand.vmem [shape: f32[1,512], index: 10, kind: input, shape index: {}]   ;;  %s3664_s11 = inlined_call_operand.vmem [shape: bf16[512,128], index: 11, kind: input, shape index: {}]   ;;  %s3665_s12 = inlined_call_operand.vmem [shape: f32[1,128], index: 12, kind: input, shape index: {}]   ;;  %s3666_s13 = inlined_call_operand.vmem [shape: f32[2,8,128], index: 13, kind: output, shape index: {}]  }
   0x1 LB: > { %s2275_s26 = sadd.s32 4294967295, %s2848_s25   ;;  %p2279_p0 = scmp.ge.s32.totalorder %s2848_s25, 1  ;;  %s2848_s25 = sphi %s2922_s25, %s23_s25  }
   0x2   : > { %p386_p1 = scmp.lt.s32.totalorder %s2848_s25, 3 }
   0x4   : > { %p387_p2 = pnand %p2279_p0, %p386_p1 }
   0x5   : > { %p428_p3 = scmp.lt.s32.totalorder (!%p387_p2), %s2275_s26, 1 }
   0x6   : > { %390 = sbr.rel (%p387_p2) target bundleno = 2331 (0x91b), region = 72 }
   0xb   : > { %s3668_s26 = smov (!%p428_p3, %s2275_s26), 1  ;;  %v2850_v1 = vmov 128.0   ;;  %v2851_v12 = vmov 0   ;;  %v528_v13 = vld [vmem:[%s3657_s4 + $0x20] sm:$0xff]  ;;  %v529_v14 = vld [vmem:[%s3657_s4 + $0x28] sm:$0xff]  ;;  %v547_v15 = vld [vmem:[%s3657_s4 + $0xb8] sm:$0xff] }
   0xc   : > { %s2280_s27 = sshll.u32 %s3668_s26, 3  ;;  %2811 = vrcp.f32 %v2850_v1  ;;  %2802 = vset.pattern.permute.xlu1 %v2851_v12  ;;  %2804 = vset.pattern.permute.xlu0 %v2851_v12  ;;  %v546_v16 = vld [vmem:[%s3657_s4 + $0xb0] sm:$0xff]  ;;  %v545_v17 = vld [vmem:[%s3657_s4 + $0xa8] sm:$0xff]  ;;  %v524_v18 = vld [vmem:[%s3657_s4] sm:$0xff]  ;;  %vm1120_vm4 = vcmask 261120   ;;  %vm1138_vm5 = vcmask 64512  }
   0xd   : > { %s2938_s30 = scalar_lea.vmem %s3653_s0, %s2280_s27  ;;  %594 = vperm.xlu1 %2802, %v528_v13   ;;  %2803 = vset.pattern.permute.xlu2 %v2851_v12  ;;  %v527_v19 = vld [vmem:[%s3657_s4 + $0x18] sm:$0xff]  ;;  %v525_v20 = vld [vmem:[%s3657_s4 + $0x8] sm:$0xff]  ;;  %v562_v21 = vld [vmem:[%s3657_s4 + $0x130] sm:$0xff] }
   0xe   : > { %v437_v0 = vld [vmem:[%s2938_s30] sm:$0xff]  ;;  %v526_v25 = vld [vmem:[%s3657_s4 + $0x10] sm:$0xff]  ;;  %v561_v30 = vld [vmem:[%s3657_s4 + $0x128] sm:$0xff] }
   0xf   : > { %438 = vadd.xlane.f32.xlu0 %v437_v0  ;;  %v532_v26 = vld [vmem:[%s3657_s4 + $0x40] sm:$0xff]  ;;  %v542_v31 = vld [vmem:[%s3657_s4 + $0x90] sm:$0xff]  ;;  %v533_v37 = vld [vmem:[%s3657_s4 + $0x48] sm:$0xff] }
  0x10   : > { %v2805_v35 = vld [vmem:[%s3654_s1] ss:$0 sm:$0xff]  ;;  %v534_v44 = vld [vmem:[%s3657_s4 + $0x50] sm:$0xff]  ;;  %v541_v45 = vld [vmem:[%s3657_s4 + $0x88] sm:$0xff] }
  0x11   : > { %v540_v38 = vld [vmem:[%s3657_s4 + $0x80] sm:$0xff]  ;;  %v2705_v47 = vld [vmem:[%s3656_s3 + $0x68] sm:$0xff]  ;;  %v535_v49 = vld [vmem:[%s3657_s4 + $0x58] sm:$0xff] }
  0x12   : > { %v2812_v2 = vpop.eup %2811  ;;  %v2806_v40 = vld [vmem:[%s3655_s2] ss:$0 sm:$0xff]  ;;  %v563_v50 = vld [vmem:[%s3657_s4 + $0x138] sm:$0xff]  ;;  %v2693_v53 = vld [vmem:[%s3656_s3 + $0x8] sm:$0xff] }
  0x13   : > { %v441_v3 = vmul.f32 128.0, %v2812_v2  ;;  %vm445_vm0 = vweird.f32 %v2812_v2  ;;  %v2692_v46 = vld [vmem:[%s3656_s3] sm:$0xff]  ;;  %v2709_v54 = vld [vmem:[%s3656_s3 + $0x88] sm:$0xff]  ;;  %v550_v55 = vld [vmem:[%s3657_s4 + $0xd0] sm:$0xff] }
  0x14   : > { %v2708_v48 = vld [vmem:[%s3656_s3 + $0x80] sm:$0xff]  ;;  %v551_v56 = vld [vmem:[%s3657_s4 + $0xd8] sm:$0xff]  ;;  %v2694_v57 = vld [vmem:[%s3656_s3 + $0x10] sm:$0xff] }
  0x15   : > { %v442_v4 = vsub.f32 1.0, %v441_v3  ;;  %599 = vperm.xlu1 %2802, %v529_v14   ;;  %v536_v51 = vld [vmem:[%s3657_s4 + $0x60] sm:$0xff]  ;;  %v2710_v58 = vld [vmem:[%s3656_s3 + $0x90] sm:$0xff]  ;;  %v2695_v60 = vld [vmem:[%s3656_s3 + $0x18] sm:$0xff] }
  0x16   : > { %v560_v52 = vld [vmem:[%s3657_s4 + $0x120] sm:$0xff]  ;;  %v530_v59 = vld [vmem:[%s3657_s4 + $0x30] sm:$0xff]  ;;  %v2711_v61 = vld [vmem:[%s3656_s3 + $0x98] sm:$0xff] }
  0x17   : > { %v443_v5 = vmul.f32 %v2812_v2, %v442_v4  ;;  %604 = vperm.xlu2 %2803, %v530_v59   ;;  %v531_v62 = vld [vmem:[%s3657_s4 + $0x38] sm:$0xff]  ;;  %v544_v63 = vld [vmem:[%s3657_s4 + $0xa0] sm:$0xff]  ;;  %v2697_v1 = vld [vmem:[%s3656_s3 + $0x28] sm:$0xff] }
  0x18   : > { %v538_v3 = vld [vmem:[%s3657_s4 + $0x70] sm:$0xff] }
  0x19   : > { %v444_v6 = vadd.f32 %v2812_v2, %v443_v5  ;;  %v2698_v4 = vld [vmem:[%s3656_s3 + $0x30] sm:$0xff]  ;;  %v2699_v5 = vld [vmem:[%s3656_s3 + $0x38] sm:$0xff] }
  0x1b   : > { %v2941_v7 = vsel %vm445_vm0, %v2812_v2, %v444_v6  ;;  %v537_v2 = vld [vmem:[%s3657_s4 + $0x68] sm:$0xff] }
  0x1d   : > { %689 = vperm.xlu1 %2802, %v547_v15   ;;  %v2706_v15 = vld [vmem:[%s3656_s3 + $0x70] sm:$0xff] }
  0x1f   : > { %609 = vperm.xlu2 %2803, %v531_v62  }
  0x25   : > { %679 = vperm.xlu1 %2802, %v545_v17  }
  0x27   : > { %674 = vperm.xlu2 %2803, %v544_v63  }
  0x2d   : > { %589 = vperm.xlu1 %2802, %v527_v19  }
  0x35   : > { %764 = vperm.xlu1 %2802, %v562_v21  }
  0x3d   : > { %614 = vperm.xlu1 %2802, %v532_v26  }
  0x45   : > { %759 = vperm.xlu1 %2802, %v561_v30  }
  0x4d   : > { %619 = vperm.xlu1 %2802, %v533_v37  }
  0x55   : > { %624 = vperm.xlu1 %2802, %v534_v44  }
  0x5d   : > { %629 = vperm.xlu1 %2802, %v535_v49  }
  0x65   : > { %634 = vperm.xlu1 %2802, %v536_v51  }
  0x6d   : > { %704 = vperm.xlu1 %2802, %v550_v55  }
  0x82   : > { %v439_v8 = vpop.xlane.xlu0 %438 }
  0x83   : > { %v447_v9 = vmul.f32 %v2941_v7, %v439_v8 }
  0x85   : > { %v448_v10 = vsub.f32 %v437_v0, %v447_v9  ;;  %v2696_v0 = vld [vmem:[%s3656_s3 + $0x20] sm:$0xff] }
  0x86   : > { %v2700_v9 = vld [vmem:[%s3656_s3 + $0x40] sm:$0xff] }
  0x87   : > { %v449_v11 = vmul.f32 %v448_v10, %v448_v10 }
  0x89   : > { %450 = vadd.xlane.f32.xlu0 %v449_v11 }
  0x9d   : > { %684 = vperm.xlu0 %2804, %v546_v16   ;;  %v2701_v16 = vld [vmem:[%s3656_s3 + $0x48] sm:$0xff] }
  0xa5   : > { %574 = vperm.xlu0 %2804, %v524_v18  }
  0xad   : > { %579 = vperm.xlu0 %2804, %v525_v20   ;;  %v549_v20 = vld [vmem:[%s3657_s4 + $0xc8] sm:$0xff] }
  0xb5   : > { %584 = vperm.xlu0 %2804, %v526_v25   ;;  %v2702_v25 = vld [vmem:[%s3656_s3 + $0x50] sm:$0xff] }
  0xbd   : > { %664 = vperm.xlu0 %2804, %v542_v31  }
  0xc5   : > { %654 = vperm.xlu0 %2804, %v540_v38  }
  0xcd   : > { %659 = vperm.xlu0 %2804, %v541_v45  }
  0xd5   : > { %769 = vperm.xlu0 %2804, %v563_v50   ;;  %v2714_v50 = vld [vmem:[%s3656_s3 + $0xb0] sm:$0xff] }
  0xdd   : > { %754 = vperm.xlu0 %2804, %v560_v52  }
  0xe5   : > { %709 = vperm.xlu0 %2804, %v551_v56  }
  0xed   : > { %639 = vperm.xlu0 %2804, %v537_v2  }
  0xf5   : > { %644 = vperm.xlu0 %2804, %v538_v3   ;;  %v548_v3 = vld [vmem:[%s3657_s4 + $0xc0] sm:$0xff] }
  0xfc   : > { %v451_v22 = vpop.xlane.xlu0 %450 }
  0xfd   : > { %v452_v23 = vmul.f32 %v451_v22, %v2941_v7  ;;  %699 = vperm.xlu0 %2804, %v549_v20   ;;  %v2707_v22 = vld [vmem:[%s3656_s3 + $0x78] sm:$0xff] }
  0xff   : > { %v453_v24 = vadd.f32 1e-05, %v452_v23  ;;  %v554_v23 = vld [vmem:[%s3657_s4 + $0xf0] sm:$0xff] }
 0x101   : > { %2813 = vrsqrt.f32 %v453_v24  ;;  %vm460_vm2 = vweird.f32 %v453_v24 }
 0x105   : > { %724 = vperm.xlu0 %2804, %v554_v23  }
 0x107   : > { %v2814_v27 = vpop.eup %2813 }
 0x108   : > { %v455_v28 = vmul.f32 %v2814_v27, %v453_v24  ;;  %vm461_vm1 = vweird.f32 %v2814_v27  ;;  %v595_v24 = vpop.permute.xlu1 %594 }
 0x109   : > { %vm462_vm3 = vmor %vm460_vm2, %vm461_vm1 }
 0x10a   : > { %v456_v29 = vmul.f32 %v2814_v27, %v455_v28  ;;  %v552_v28 = vld [vmem:[%s3657_s4 + $0xe0] sm:$0xff] }
 0x10c   : > { %v457_v32 = vmul.f32 0.5, %v456_v29 }
 0x10d   : > { %714 = vperm.xlu0 %2804, %v552_v28  }
 0x10e   : > { %v458_v33 = vsub.f32 1.5, %v457_v32  ;;  %v605_v32 = vpop.permute.xlu2 %604 }
 0x10f   : > { %v3074_v6 = vpop.permute.xlu0 %684 }
 0x110   : > { %v459_v34 = vmul.f32 %v2814_v27, %v458_v33  ;;  %v600_v29 = vpop.permute.xlu1 %599  ;;  %v2703_v33 = vld [vmem:[%s3656_s3 + $0x58] sm:$0xff] }
 0x112   : > { %v463_v36 = vsel %vm462_vm3, %v2814_v27, %v459_v34 }
 0x113   : > { %v464_v39 = vmul.f32 %v463_v36, %v448_v10 }
 0x115   : > { %v469_v41 = vmul.f32 %v2805_v35, %v464_v39  ;;  %v2704_v39 = vld [vmem:[%s3656_s3 + $0x60] sm:$0xff] }
 0x116   : > { %v610_v36 = vpop.permute.xlu2 %609 }
 0x117   : > { %v474_v42 = vadd.f32 %v2806_v40, %v469_v41  ;;  %v575_v8 = vpop.permute.xlu0 %574 }
 0x118   : > { %v690_v59 = vpop.permute.xlu1 %689 }
 0x119   : > { %v523_v43 = vpack.c.bf16 %v474_v42, %v474_v42 }
 0x11b   : > { %963 = vmatpush.bf16.xpose.msra.mxu0 %v523_v43  ;;  %2788 = vmatpush.bf16.xpose.msra.mxu1 %v523_v43 }
 0x11c   : > { %2789 = vmatpush.bf16.xpose.msra.mxu2 %v523_v43  ;;  %2790 = vmatpush.bf16.xpose.msra.mxu3 %v523_v43 }
 0x11f   : > { %v580_v12 = vpop.permute.xlu0 %579 }
 0x122   : > { %964 = vmatmul.bf16.vlgmr.msra.gmra.mxu0 %v2692_v46  ;;  %1029 = vmatmul.bf16.vlgmr.msra.gmra.mxu1 %v2705_v47  ;;  %v2713_v46 = vld [vmem:[%s3656_s3 + $0xa8] sm:$0xff] }
 0x123   : > { %1044 = vmatmul.bf16.vlgmr.msra.gmra.mxu2 %v2708_v48  ;;  %1069 = vmatmul.bf16.vlgmr.msra.gmra.mxu3 %v2713_v46 }
 0x127   : > { %v585_v18 = vpop.permute.xlu0 %584 }
 0x12f   : > { %v3131_v48 = vpop.permute.xlu0 %664 }
 0x132   : > { %969 = vmatmul.bf16.gmra.mxu0 %v2693_v53  ;;  %1034 = vmatmul.bf16.gmra.mxu1 %v2706_v15 }
 0x133   : > { %1049 = vmatmul.bf16.gmra.mxu2 %v2709_v54  ;;  %1074 = vmatmul.bf16.gmra.mxu3 %v2714_v50 }
 0x137   : > { %v655_v51 = vpop.permute.xlu0 %654 }
 0x13f   : > { %v660_v53 = vpop.permute.xlu0 %659 }
 0x142   : > { %974 = vmatmul.bf16.gmra.mxu0 %v2694_v57  ;;  %1039 = vmatmul.bf16.gmra.mxu1 %v2707_v22  ;;  %v2715_v57 = vld [vmem:[%s3656_s3 + $0xb8] sm:$0xff] }
 0x143   : > { %1054 = vmatmul.bf16.gmra.mxu2 %v2710_v58  ;;  %1079 = vmatmul.bf16.gmra.mxu3 %v2715_v57 }
 0x152   : > { %979 = vmatmul.bf16.gmra.mxu0 %v2695_v60 }
 0x153   : > { %1059 = vmatmul.bf16.gmra.mxu2 %v2711_v61  ;;  %v680_v61 = vpop.permute.xlu1 %679 }
 0x162   : > { %984 = vmatmul.bf16.gmra.mxu0 %v2696_v0  ;;  %v3147_v0 = vpop.permute.xlu1 %589 }
 0x172   : > { %989 = vmatmul.bf16.gmra.mxu0 %v2697_v1  ;;  %v543_v1 = vld [vmem:[%s3657_s4 + $0x98] sm:$0xff] }
 0x182   : > { %994 = vmatmul.bf16.gmra.mxu0 %v2698_v4  ;;  %v765_v4 = vpop.permute.xlu1 %764 }
 0x192   : > { %999 = vmatmul.bf16.gmra.mxu0 %v2699_v5 }
 0x19f   : > { %v965_v10 = vpop.f32.mrf.mxu0 }
 0x1a0   : > { %v3079_v11 = vadd.f32 %v965_v10, %v575_v8  ;;  %v539_v8 = vld [vmem:[%s3657_s4 + $0x78] sm:$0xff]  ;;  %v675_v10 = vpop.permute.xlu2 %674 }
 0x1a2   : > { %1004 = vmatmul.bf16.gmra.mxu0 %v2700_v9  ;;  %v3158_v9 = vpop.permute.xlu1 %614 }
 0x1a7   : > { %v967_v13 = vpop.f32.mrf.mxu0 }
 0x1a8   : > { %v3081_v14 = vadd.f32 %v967_v13, %v580_v12  ;;  %v3160_v12 = vpop.f32.mrf.mxu2 }
 0x1af   : > { %v970_v17 = vpop.f32.mrf.mxu0 }
 0x1b0   : > { %v3089_v19 = vadd.f32 %v970_v17, %v585_v18  ;;  %v555_v17 = vld [vmem:[%s3657_s4 + $0xf8] sm:$0xff] }
 0x1b2   : > { %1009 = vmatmul.bf16.gmra.mxu0 %v2701_v16 }
 0x1b7   : > { %v3094_v21 = vpop.f32.mrf.mxu0 }
 0x1bf   : > { %v975_v26 = vpop.f32.mrf.mxu0 }
 0x1c0   : > { %v976_v27 = vadd.f32 %v975_v26, %v595_v24  ;;  %v760_v24 = vpop.permute.xlu1 %759  ;;  %v3166_v26 = vpop.f32.mrf.mxu2 }
 0x1c2   : > { %1014 = vmatmul.bf16.gmra.mxu0 %v2702_v25  ;;  %1180 = vxpose.xlu2.b32.start [1/4] (short) (narrow) %v976_v27, 8 }
 0x1c7   : > { %v977_v30 = vpop.f32.mrf.mxu0 }
 0x1c8   : > { %v978_v31 = vadd.f32 %v977_v30, %v600_v29  ;;  %v3172_v28 = vpop.permute.xlu1 %619  ;;  %v3174_v29 = vpop.f32.mrf.mxu2 }
 0x1c9   : > { %v770_v30 = vpop.permute.xlu0 %769 }
 0x1ca   : > { %1181 = vxpose.xlu2.b32.cont [2/4] (short) (narrow) %v978_v31, 8 }
 0x1cf   : > { %v980_v34 = vpop.f32.mrf.mxu0 }
 0x1d0   : > { %v981_v35 = vadd.f32 %v980_v34, %v605_v32  ;;  %v3176_v31 = vpop.permute.xlu1 %624  ;;  %v3178_v32 = vpop.f32.mrf.mxu2 }
 0x1d2   : > { %1019 = vmatmul.bf16.gmra.mxu0 %v2703_v33  ;;  %1182 = vxpose.xlu2.b32.cont [3/4] (short) (narrow) %v981_v35, 8  ;;  %v755_v33 = vpop.permute.xlu0 %754 }
 0x1d7   : > { %v982_v37 = vpop.f32.mrf.mxu0 }
 0x1d8   : > { %v983_v38 = vadd.f32 %v982_v37, %v610_v36  ;;  %v3180_v34 = vpop.permute.xlu1 %629  ;;  %v1055_v35 = vpop.f32.mrf.mxu2 }
 0x1da   : > { %1183 = vxpose.xlu2.b32.end [4/4] (short) (narrow) %v983_v38, 8  ;;  %v3182_v36 = vpop.permute.xlu0 %709 }
 0x1df   : > { %v3114_v40 = vpop.f32.mrf.mxu0 }
 0x1e0   : > { %v635_v37 = vpop.permute.xlu1 %634  ;;  %v1057_v38 = vpop.f32.mrf.mxu2 }
 0x1e2   : > { %1024 = vmatmul.bf16.gmra.mxu0 %v2704_v39  ;;  %v640_v46 = vpop.permute.xlu0 %639 }
 0x1e7   : > { %v3116_v41 = vpop.f32.mrf.mxu0 }
 0x1ef   : > { %v3118_v42 = vpop.f32.mrf.mxu0 }
 0x1f7   : > { %v3120_v43 = vpop.f32.mrf.mxu0 }
 0x1ff   : > { %v3122_v44 = vpop.f32.mrf.mxu0 }
 0x200   : > { %v996_v39 = vadd.f32 %v3122_v44, %v635_v37 }
 0x207   : > { %v3124_v45 = vpop.f32.mrf.mxu0 }
 0x208   : > { %v998_v50 = vadd.f32 %v3124_v45, %v640_v46  ;;  %v1056_v45 = vadd.f32 %v1055_v35, %v755_v33 }
 0x20f   : > { %v3129_v47 = vpop.f32.mrf.mxu0 }
 0x217   : > { %v3133_v49 = vpop.f32.mrf.mxu0 }
 0x21f   : > { %v1005_v52 = vpop.f32.mrf.mxu0 }
 0x220   : > { %v3138_v55 = vadd.f32 %v1005_v52, %v655_v51  ;;  %v1060_v51 = vpop.f32.mrf.mxu2  ;;  %v645_v52 = vpop.permute.xlu0 %644 }
 0x227   : > { %v1007_v54 = vpop.f32.mrf.mxu0 }
 0x228   : > { %v3140_v56 = vadd.f32 %v1007_v54, %v660_v53  ;;  %v1001_v53 = vadd.f32 %v3129_v47, %v645_v52  ;;  %v1062_v54 = vpop.f32.mrf.mxu2  ;;  %v700_v33 = vpop.permute.xlu0 %699 }
 0x22a   : > { %v1118_v58 = vpack.c.bf16 %v3140_v56, %v3138_v55 }
 0x22f   : > { %v1010_v60 = vpop.f32.mrf.mxu0 }
 0x230   : > { %v725_v46 = vpop.permute.xlu0 %724 }
 0x237   : > { %v1012_v62 = vpop.f32.mrf.mxu0 }
 0x23f   : > { %v1015_v63 = vpop.f32.mrf.mxu0 }
 0x240   : > { %v1016_v22 = vadd.f32 %v1015_v63, %v675_v10  ;;  %v3192_v10 = vpop.f32.mrf.mxu3 }
 0x243   : > { %669 = vperm.xlu2 %2803, %v543_v1   ;;  %v1061_v1 = vadd.f32 %v1060_v51, %v765_v4 }
 0x247   : > { %v1017_v2 = vpop.f32.mrf.mxu0 }
 0x248   : > { %v1018_v18 = vadd.f32 %v1017_v2, %v680_v61  ;;  %v1011_v61 = vadd.f32 %v1010_v60, %v3131_v48  ;;  %v3196_v4 = vpop.f32.mrf.mxu3 }
 0x24a   : > { %v1213_v25 = vpack.c.bf16 %v1018_v18, %v1016_v22  ;;  %v973_v18 = vadd.f32 %v3094_v21, %v3147_v0  ;;  %v993_v21 = vadd.f32 %v3120_v43, %v3180_v34  ;;  %v1030_v0 = vpop.f32.mrf.mxu1  ;;  %v715_v34 = vpop.permute.xlu0 %714 }
 0x24b   : > { %694 = vperm.xlu2 %2803, %v548_v3  }
 0x24f   : > { %v1020_v5 = vpop.f32.mrf.mxu0 }
 0x250   : > { %v1021_v15 = vadd.f32 %v1020_v5, %v3074_v6  ;;  %v553_v6 = vld [vmem:[%s3657_s4 + $0xe8] sm:$0xff]  ;;  %v1058_v5 = vadd.f32 %v1057_v38, %v760_v24 }
 0x253   : > { %649 = vperm.xlu2 %2803, %v539_v8   ;;  %v1244_v8 = vpack.c.bf16 %v1058_v5, %v1056_v45  ;;  %v566_v5 = vld [vmem:[%s3657_s4 + $0x150] sm:$0xff]  ;;  %v2719_v45 = vld [vmem:[%s3658_s5 + $0x18] sm:$0xff] }
 0x257   : > { %v1022_v13 = vpop.f32.mrf.mxu0 }
 0x258   : > { %v1023_v16 = vadd.f32 %v1022_v13, %v690_v59  ;;  %v1063_v59 = vadd.f32 %v1062_v54, %v770_v30  ;;  %v3198_v13 = vpop.f32.mrf.mxu3 }
 0x25a   : > { %v1214_v20 = vpack.c.bf16 %v1023_v16, %v1021_v15  ;;  %v1245_v3 = vpack.c.bf16 %v1063_v59, %v1061_v1 }
 0x25b   : > { %729 = vperm.xlu2 %2803, %v555_v17   ;;  %v1196_v23 = vpop.trf.xlu2 }
 0x25c   : > { %1224 = vmatpush.bf16.msrb.mxu3 %v1214_v20  ;;  %v1212_v27 = vpack.c.bf16 %v1196_v23, %v1196_v23  ;;  %v1253_v47 = vsel %vm1138_vm5, %v1245_v3, 0  ;;  %v705_v20 = vpop.permute.xlu1 %704 }
 0x25d   : > { %v1031_v37 = vadd.f32 %v1030_v0, %v705_v20 }
 0x25f   : > { %v1025_v30 = vpop.f32.mrf.mxu0 }
 0x260   : > { %1225 = vmatpush.bf16.msrb.mxu3 %v1213_v25  ;;  %v3200_v15 = vpop.f32.mrf.mxu3 }
 0x263   : > { %719 = vperm.xlu2 %2803, %v553_v6   ;;  %2380 = vmatmul.msk.bf16.vlgmr.msrb.gmra.mxu3 %vm1120_vm4, %v1212_v27  ;;  %v1032_v6 = vpop.f32.mrf.mxu1 }
 0x264   : > { %1295 = vmatpush.bf16.msra.mxu3 %v2719_v45 }
 0x267   : > { %v1027_v38 = vpop.f32.mrf.mxu0 }
 0x268   : > { %v3202_v55 = vpop.f32.mrf.mxu3 }
 0x26b   : > { %v1035_v35 = vpop.f32.mrf.mxu1 }
 0x26c   : > { %v1036_v3 = vadd.f32 %v1035_v35, %v715_v34 }
 0x270   : > { %v3204_v56 = vpop.f32.mrf.mxu3 }
 0x289   : > { %1453 = vxpose.xlu2.b32.start [1/4] (short) (narrow) %v996_v39, 8 }
 0x291   : > { %1454 = vxpose.xlu2.b32.cont [2/4] (short) (narrow) %v998_v50, 8 }
 0x299   : > { %1455 = vxpose.xlu2.b32.cont [3/4] (short) (narrow) %v1001_v53, 8 }
 0x29d   : > { %v670_v57 = vpop.permute.xlu2 %669 }
 0x29e   : > { %v1013_v63 = vadd.f32 %v1012_v62, %v670_v57  ;;  %v1250_v62 = vsel %vm1138_vm5, %v1244_v8, 0 }
 0x2a0   : > { %v1119_v2 = vpack.c.bf16 %v1013_v63, %v1011_v61 }
 0x2a2   : > { %1130 = vmatpush.bf16.msrb.mxu1 %v1119_v2 }
 0x2a5   : > { %v695_v44 = vpop.permute.xlu2 %694 }
 0x2a6   : > { %1131 = vmatpush.bf16.msrb.mxu1 %v1118_v58  ;;  %v1026_v39 = vadd.f32 %v1025_v30, %v695_v44 }
 0x2aa   : > { %1261 = vmatpush.bf16.xpose.msra.mxu1 %v1253_v47 }
 0x2ad   : > { %v650_v48 = vpop.permute.xlu2 %649 }
 0x2ae   : > { %v1003_v60 = vadd.f32 %v3133_v49, %v650_v48 }
 0x2b0   : > { %1456 = vxpose.xlu2.b32.end [4/4] (short) (narrow) %v1003_v60, 8  ;;  %v2718_v60 = vld [vmem:[%s3658_s5 + $0x10] sm:$0xff] }
 0x2b1   : > { %1296 = vmatpush.bf16.msra.mxu3 %v2718_v60 }
 0x2b2   : > { %1262 = vmatpush.bf16.xpose.msra.mxu1 %v1250_v62 }
 0x2b5   : > { %v730_v51 = vpop.permute.xlu2 %729 }
 0x2bd   : > { %v720_v57 = vpop.permute.xlu2 %719 }
 0x2e6   : > { %v1227_v58 = vpop.f32.mrf.mxu3 }
 0x2e7   : > { %v1231_v16 = vmul.f32 0.17677669, %v1227_v58 }
 0x2e9   : > { %v1232_v17 = vsel %vm1138_vm5, %v1231_v16, -inf }
 0x2ea   : > { %1233 = vmax.xlane.f32.xlu1 %v1232_v17 }
 0x2ee   : > { %v1229_v49 = vpop.f32.mrf.mxu3 }
 0x324   : > { %1085 = vxpose.xlu1.b32.start [1/4] (short) (narrow) %v3079_v11, 8  ;;  %v986_v11 = vadd.f32 %v3114_v40, %v3158_v9  ;;  %v1033_v40 = vadd.f32 %v1032_v6, %v3182_v36 }
 0x32c   : > { %1086 = vxpose.xlu1.b32.cont [2/4] (short) (narrow) %v3081_v14, 8  ;;  %v988_v14 = vadd.f32 %v3116_v41, %v3172_v28  ;;  %v1364_v28 = vpack.c.bf16 %v1033_v40, %v1031_v37  ;;  %v564_v37 = vld [vmem:[%s3657_s4 + $0x140] sm:$0xff] }
 0x331   : > { %v1469_v48 = vpop.trf.xlu2 }
 0x332   : > { %v1485_v62 = vpack.c.bf16 %v1469_v48, %v1469_v48 }
 0x334   : > { %1087 = vxpose.xlu1.b32.cont [3/4] (short) (narrow) %v3089_v19, 8  ;;  %v991_v19 = vadd.f32 %v3118_v42, %v3176_v31  ;;  %v1028_v42 = vadd.f32 %v1027_v38, %v700_v33  ;;  %v1037_v31 = vpop.f32.mrf.mxu1  ;;  %v571_v38 = vld [vmem:[%s3657_s4 + $0x178] sm:$0xff] }
 0x335   : > { %v1038_v2 = vadd.f32 %v1037_v31, %v720_v57  ;;  %v556_v31 = vld [vmem:[%s3657_s4 + $0x100] sm:$0xff] }
 0x336   : > { %v1363_v43 = vpack.c.bf16 %v1028_v42, %v1026_v39  ;;  %v568_v39 = vld [vmem:[%s3657_s4 + $0x160] sm:$0xff] }
 0x337   : > { %v1486_v44 = vpack.c.bf16 %v1038_v2, %v1036_v3 }
 0x33c   : > { %1088 = vxpose.xlu1.b32.end [4/4] (short) (narrow) %v973_v18, 8  ;;  %v1040_v50 = vpop.f32.mrf.mxu1 }
 0x33d   : > { %v1041_v61 = vadd.f32 %v1040_v50, %v725_v46  ;;  %v559_v46 = vld [vmem:[%s3657_s4 + $0x118] sm:$0xff]  ;;  %v557_v50 = vld [vmem:[%s3657_s4 + $0x108] sm:$0xff] }
 0x344   : > { %v1042_v53 = vpop.f32.mrf.mxu1 }
 0x345   : > { %v1043_v54 = vadd.f32 %v1042_v53, %v730_v51  ;;  %v570_v51 = vld [vmem:[%s3657_s4 + $0x170] sm:$0xff] }
 0x347   : > { %v1487_v1 = vpack.c.bf16 %v1043_v54, %v1041_v61 }
 0x35d   : > { %v1234_v22 = vpop.xlane.xlu1 %1233 }
 0x35e   : > { %v1235_v23 = vsub.f32 %v1231_v16, %v1234_v22 }
 0x360   : > { %v1236_v24 = vmul.f32 1.442695, %v1235_v23  ;;  %v2712_v23 = vld [vmem:[%s3656_s3 + $0xa0] sm:$0xff] }
 0x361   : > { %1064 = vmatmul.bf16.gmra.mxu2 %v2712_v23 }
 0x362   : > { %2815 = vpow2.f32 %v1236_v24 }
 0x368   : > { %v2816_v25 = vpop.eup %2815 }
 0x369   : > { %v1238_v27 = vsel %vm1138_vm5, %v2816_v25, 0.0 }
 0x36a   : > { %1239 = vadd.xlane.f32.xlu0 %v1238_v27 }
 0x393   : > { %1330 = vxpose.xlu0.b32.start [1/4] (short) (narrow) %v986_v11, 8 }
 0x39b   : > { %1331 = vxpose.xlu0.b32.cont [2/4] (short) (narrow) %v988_v14, 8 }
 0x3a3   : > { %1332 = vxpose.xlu0.b32.cont [3/4] (short) (narrow) %v991_v19, 8 }
 0x3ab   : > { %1333 = vxpose.xlu0.b32.end [4/4] (short) (narrow) %v993_v21, 8 }
 0x3c8   : > { %v1101_v9 = vpop.trf.xlu1 }
 0x3c9   : > { %v1117_v41 = vpack.c.bf16 %v1101_v9, %v1101_v9  ;;  %v565_v9 = vld [vmem:[%s3657_s4 + $0x148] sm:$0xff] }
 0x3cb   : > { %2378 = vmatmul.msk.bf16.vlgmr.msrb.gmra.mxu1 %vm1120_vm4, %v1117_v41  ;;  %v567_v41 = vld [vmem:[%s3657_s4 + $0x158] sm:$0xff] }
 0x3cc   : > { %1374 = vmatpush.bf16.msrb.mxu1 %v1364_v28  ;;  %v558_v28 = vld [vmem:[%s3657_s4 + $0x110] sm:$0xff] }
 0x3d0   : > { %1375 = vmatpush.bf16.msrb.mxu1 %v1363_v43  ;;  %v569_v43 = vld [vmem:[%s3657_s4 + $0x168] sm:$0xff] }
 0x3dd   : > { %v1240_v52 = vpop.xlane.xlu0 %1239 }
 0x3de   : > { %2817 = vrcp.f32 %v1240_v52 }
 0x3e4   : > { %v2818_v36 = vpop.eup %2817 }
 0x3e5   : > { %v1242_v59 = vmul.f32 %v2818_v36, %v2816_v25 }
 0x3e7   : > { %v1243_v63 = vpack.c.bf16 %v1242_v59, %v1242_v59 }
 0x3e9   : > { %2381 = vmatmul.msk.bf16.vlgmr.msra.gmra.mxu1 %vm1138_vm5, %v1243_v63  ;;  %v1065_v63 = vpop.f32.mrf.mxu2 }
 0x3ea   : > { %1497 = vmatpush.bf16.msra.mxu1 %v1487_v1 }
 0x3ee   : > { %1498 = vmatpush.bf16.msra.mxu1 %v1486_v44 }
 0x419   : > { %784 = vperm.xlu0 %2804, %v566_v5  }
 0x437   : > { %v1346_v47 = vpop.trf.xlu0 }
 0x438   : > { %v1362_v8 = vpack.c.bf16 %v1346_v47, %v1346_v47  ;;  %v1067_v47 = vpop.f32.mrf.mxu2 }
 0x43a   : > { %2404 = vmatmul.msk.bf16.vlgmr.msrb.gmra.mxu1 %vm1120_vm4, %v1362_v8 }
 0x448   : > { %v1133_v58 = vpop.f32.mrf.mxu1 }
 0x449   : > { %v1137_v16 = vmul.f32 0.17677669, %v1133_v58 }
 0x44a   : > { %2419 = vmatmul.msk.bf16.vlgmr.msra.gmra.mxu1 %vm1120_vm4, %v1485_v62 }
 0x44b   : > { %v1139_v17 = vsel %vm1138_vm5, %v1137_v16, -inf }
 0x44c   : > { %1140 = vmax.xlane.f32.xlu1 %v1139_v17 }
 0x450   : > { %v1135_v49 = vpop.f32.mrf.mxu1 }
 0x466   : > { %v1264_v18 = vpop.f32.mrf.mxu1 }
 0x467   : > { %v1273_v20 = vpack.c.bf16 %v1264_v18, %v1264_v18 }
 0x469   : > { %2394 = vmatmul.msk.bf16.vlgmr.msra.gmra.mxu3 %vm1120_vm4, %v1273_v20 }
 0x46e   : > { %v1266_v22 = vpop.f32.mrf.mxu1 }
 0x48b   : > { %v785_v52 = vpop.permute.xlu0 %784 }
 0x48c   : > { %v1071_v5 = vadd.f32 %v3192_v10, %v785_v52  ;;  %v2721_v52 = vld [vmem:[%s3658_s5 + $0x28] sm:$0xff] }
 0x4b7   : > { %v1377_v24 = vpop.f32.mrf.mxu1 }
 0x4b8   : > { %v1381_v25 = vmul.f32 0.17677669, %v1377_v24 }
 0x4ba   : > { %v1382_v27 = vsel %vm1138_vm5, %v1381_v25, -inf }
 0x4bb   : > { %1383 = vmax.xlane.f32.xlu0 %v1382_v27 }
 0x4bf   : > { %v1141_v11 = vpop.xlane.xlu1 %1140  ;;  %v1379_v14 = vpop.f32.mrf.mxu1 }
 0x4c0   : > { %v1142_v19 = vsub.f32 %v1137_v16, %v1141_v11 }
 0x4c2   : > { %v1143_v21 = vmul.f32 1.442695, %v1142_v19 }
 0x4c4   : > { %2819 = vpow2.f32 %v1143_v21 }
 0x4c7   : > { %v1500_v0 = vpop.f32.mrf.mxu1 }
 0x4c8   : > { %v1504_v6 = vmul.f32 0.17677669, %v1500_v0 }
 0x4ca   : > { %v3241_v30 = vpop.eup %2819  ;;  %v1505_v33 = vsel %vm1138_vm5, %v1504_v6, -inf }
 0x4cb   : > { %1506 = vmax.xlane.f32.xlu2 %v1505_v33  ;;  %v1145_v35 = vsel %vm1138_vm5, %v3241_v30, 0.0 }
 0x4cc   : > { %1146 = vadd.xlane.f32.xlu1 %v1145_v35 }
 0x4cf   : > { %774 = vperm.xlu0 %2804, %v564_v37   ;;  %v1502_v40 = vpop.f32.mrf.mxu1 }
 0x4d7   : > { %779 = vperm.xlu0 %2804, %v565_v9  }
 0x4df   : > { %809 = vperm.xlu0 %2804, %v571_v38  }
 0x4e3   : > { %789 = vperm.xlu2 %2803, %v567_v41  }
 0x4e5   : > { %744 = vperm.xlu1 %2802, %v558_v28  }
 0x4e7   : > { %794 = vperm.xlu0 %2804, %v568_v39  }
 0x4ec   : > { %v3267_v42 = vpop.f32.mrf.mxu3 }
 0x4ed   : > { %749 = vperm.xlu1 %2802, %v559_v46  }
 0x4ef   : > { %799 = vperm.xlu0 %2804, %v569_v43  }
 0x4f4   : > { %v1300_v34 = vpop.f32.mrf.mxu3 }
 0x4f5   : > { %734 = vperm.xlu1 %2802, %v556_v31  }
 0x4fd   : > { %739 = vperm.xlu1 %2802, %v557_v50  }
 0x505   : > { %804 = vperm.xlu1 %2802, %v570_v51   ;;  %v2716_v51 = vld [vmem:[%s3658_s5] sm:$0xff] }
 0x52e   : > { %v1384_v53 = vpop.xlane.xlu0 %1383 }
 0x52f   : > { %v1385_v36 = vsub.f32 %v1381_v25, %v1384_v53 }
 0x531   : > { %v1386_v54 = vmul.f32 1.442695, %v1385_v36 }
 0x533   : > { %2821 = vpow2.f32 %v1386_v54 }
 0x539   : > { %v3281_v57 = vpop.eup %2821 }
 0x53a   : > { %v1388_v59 = vsel %vm1138_vm5, %v3281_v57, 0.0 }
 0x53b   : > { %1389 = vadd.xlane.f32.xlu2 %v1388_v59  ;;  %v2723_v59 = vld [vmem:[%s3658_s5 + $0x38] sm:$0xff] }
 0x53e   : > { %v1507_v61 = vpop.xlane.xlu2 %1506 }
 0x53f   : > { %v1508_v1 = vsub.f32 %v1504_v6, %v1507_v61  ;;  %v1147_v49 = vpop.xlane.xlu1 %1146  ;;  %v2722_v61 = vld [vmem:[%s3658_s5 + $0x30] sm:$0xff] }
 0x541   : > { %v1509_v2 = vmul.f32 1.442695, %v1508_v1  ;;  %v775_v3 = vpop.permute.xlu0 %774 }
 0x542   : > { %v1066_v17 = vadd.f32 %v1065_v63, %v775_v3 }
 0x543   : > { %2823 = vpow2.f32 %v1509_v2 }
 0x544   : > { %2825 = vrcp.f32 %v1147_v49  ;;  %v2841_v49 = vld [vmem:[%s2938_s30] sm:$0xff]  ;;  %s435_s30 = scalar_lea.vmem %s3666_s13, %s2280_s27 }
 0x546   : > { %v790_v44 = vpop.permute.xlu2 %789 }
 0x547   : > { %v1073_v45 = vadd.f32 %v3196_v4, %v790_v44 }
 0x549   : > { %v2824_v8 = vpop.eup %2823  ;;  %v1395_v48 = vpack.c.bf16 %v1073_v45, %v1071_v5  ;;  %v780_v60 = vpop.permute.xlu0 %779 }
 0x54a   : > { %v1511_v62 = vsel %vm1138_vm5, %v2824_v8, 0.0  ;;  %v1068_v58 = vadd.f32 %v1067_v47, %v780_v60  ;;  %v2826_v33 = vpop.eup %2825 }
 0x54b   : > { %1512 = vadd.xlane.f32.xlu1 %v1511_v62  ;;  %v1403_v16 = vsel %vm1138_vm5, %v1395_v48, 0 }
 0x54c   : > { %1411 = vmatpush.bf16.xpose.msrb.mxu3 %v1403_v16  ;;  %v1394_v18 = vpack.c.bf16 %v1068_v58, %v1066_v17  ;;  %v2807_v17 = vld [vmem:[%s3659_s6] ss:$0 sm:$0xff] }
 0x54e   : > { %v1400_v20 = vsel %vm1138_vm5, %v1394_v18, 0 }
 0x551   : > { %v810_v27 = vpop.permute.xlu0 %809 }
 0x552   : > { %v1083_v37 = vadd.f32 %v3204_v56, %v810_v27 }
 0x554   : > { %1412 = vmatpush.bf16.xpose.msrb.mxu3 %v1400_v20 }
 0x557   : > { %v745_v10 = vpop.permute.xlu1 %744 }
 0x558   : > { %v1051_v4 = vadd.f32 %v3174_v29, %v745_v10  ;;  %v1149_v29 = vmul.f32 %v2826_v33, %v3241_v30 }
 0x559   : > { %v795_v14 = vpop.permute.xlu0 %794 }
 0x55a   : > { %v1150_v41 = vpack.c.bf16 %v1149_v29, %v1149_v29  ;;  %v2500_v29 = vld [vmem:[%s3662_s9 + $0x80] sm:$0xf] }
 0x55f   : > { %v750_v22 = vpop.permute.xlu1 %749 }
 0x560   : > { %v1053_v23 = vadd.f32 %v3178_v32, %v750_v22  ;;  %v2548_v22 = vld [vmem:[%s3662_s9 + $0xe0] sm:$0xf] }
 0x561   : > { %v800_v9 = vpop.permute.xlu0 %799 }
 0x562   : > { %v1152_v24 = vpack.c.bf16 %v1053_v23, %v1051_v4  ;;  %v1078_v28 = vadd.f32 %v3200_v15, %v800_v9  ;;  %v2532_v4 = vld [vmem:[%s3662_s9 + $0xc0] sm:$0xf] }
 0x564   : > { %v1160_v25 = vsel %vm1138_vm5, %v1152_v24, 0  ;;  %v2750_v24 = vld [vmem:[%s3662_s9 + $0xcc] sm:$0xf0] }
 0x565   : > { %1168 = vmatpush.bf16.xpose.msrb.mxu2 %v1160_v25  ;;  %v2752_v25 = vld [vmem:[%s3662_s9 + $0xe4] sm:$0xf]  ;;  %v2533_v27 = vor.u32 %v2750_v24, %v2532_v4  ;;  %v2749_v24 = vld [vmem:[%s3662_s9 + $0xcc] sm:$0xf] }
 0x567   : > { %v735_v11 = vpop.permute.xlu1 %734 }
 0x568   : > { %v1046_v21 = vadd.f32 %v3160_v12, %v735_v11  ;;  %v2550_v11 = vld [vmem:[%s3662_s9 + $0xf0] sm:$0xf0] }
 0x56f   : > { %v740_v19 = vpop.permute.xlu1 %739 }
 0x570   : > { %v1048_v0 = vadd.f32 %v3166_v26, %v740_v19  ;;  %v1076_v26 = vadd.f32 %v3198_v13, %v795_v14  ;;  %v2556_v14 = vld [vmem:[%s3662_s9 + $0xe8] sm:$0xf]  ;;  %v2755_v19 = vld [vmem:[%s3662_s9 + $0xf4] sm:$0xf0] }
 0x571   : > { %v2557_v33 = vor.u32 %v2755_v19, %v2556_v14  ;;  %v2728_v14 = vld [vmem:[%s3662_s9 + $0x24] sm:$0xf]  ;;  %v2454_v19 = vld [vmem:[%s3662_s9 + $0x30] sm:$0xf0] }
 0x572   : > { %v1151_v6 = vpack.c.bf16 %v1048_v0, %v1046_v21  ;;  %v1517_v39 = vpack.c.bf16 %v1078_v28, %v1076_v26  ;;  %v2516_v21 = vld [vmem:[%s3662_s9 + $0xa0] sm:$0xf]  ;;  %v2746_v0 = vld [vmem:[%s3662_s9 + $0xac] sm:$0xf0] }
 0x573   : > { %v2484_v28 = vld [vmem:[%s3662_s9 + $0x60] sm:$0xf] }
 0x574   : > { %v1157_v35 = vsel %vm1138_vm5, %v1151_v6, 0  ;;  %v1523_v30 = vsel %vm1138_vm5, %v1517_v39, 0  ;;  %v2553_v6 = vor.u32 %v2752_v25, %v2550_v11  ;;  %v2748_v39 = vld [vmem:[%s3662_s9 + $0xc4] sm:$0xf]  ;;  %v2542_v25 = vld [vmem:[%s3662_s9 + $0xd8] sm:$0xf0] }
 0x575   : > { %1169 = vmatpush.bf16.xpose.msrb.mxu2 %v1157_v35  ;;  %v2517_v35 = vor.u32 %v2746_v0, %v2516_v21  ;;  %v2545_v11 = vor.u32 %v2749_v24, %v2542_v25  ;;  %v2460_v21 = vld [vmem:[%s3662_s9 + $0x28] sm:$0xf]  ;;  %v2457_v0 = vor.u32 %v2728_v14, %v2454_v19  ;;  %v2756_v24 = vld [vmem:[%s3664_s11] sm:$0xff]  ;;  %v2787_v25 = vld [vmem:[%s3664_s11 + $0xf8] sm:$0xff] }
 0x576   : > { %v2786_v14 = vld [vmem:[%s3664_s11 + $0xf0] sm:$0xff]  ;;  %v2767_v19 = vld [vmem:[%s3664_s11 + $0x58] sm:$0xff] }
 0x577   : > { %v805_v32 = vpop.permute.xlu1 %804 }
 0x578   : > { %v1081_v40 = vadd.f32 %v3202_v55, %v805_v32  ;;  %v2717_v55 = vld [vmem:[%s3658_s5 + $0x8] sm:$0xff]  ;;  %v2742_v32 = vld [vmem:[%s3662_s9 + $0x8c] sm:$0xf0] }
 0x57a   : > { %v1518_v38 = vpack.c.bf16 %v1083_v37, %v1081_v40  ;;  %v2501_v37 = vor.u32 %v2742_v32, %v2500_v29 }
 0x57c   : > { %2379 = vmatmul.msk.bf16.vlgmr.msrb.gmra.mxu2 %vm1138_vm5, %v1150_v41  ;;  %v1526_v12 = vsel %vm1138_vm5, %v1518_v38, 0 }
 0x57d   : > { %1534 = vmatpush.bf16.xpose.msra.mxu3 %v1526_v12  ;;  %1323 = vmatpush.bf16.msra.mxu2 %v2717_v55  ;;  %v2738_v12 = vld [vmem:[%s3662_s9 + $0x6c] sm:$0xf0]  ;;  %v2540_v55 = vld [vmem:[%s3662_s9 + $0xc8] sm:$0xf] }
 0x57e   : > { %v2485_v26 = vor.u32 %v2738_v12, %v2484_v28  ;;  %v2727_v28 = vld [vmem:[%s3662_s9 + $0x14] sm:$0xf0]  ;;  %v2741_v12 = vld [vmem:[%s3662_s9 + $0x8c] sm:$0xf] }
 0x581   : > { %1324 = vmatpush.bf16.msra.mxu2 %v2716_v51  ;;  %v2524_v51 = vld [vmem:[%s3662_s9 + $0xa8] sm:$0xf] }
 0x585   : > { %1535 = vmatpush.bf16.xpose.msra.mxu3 %v1523_v30  ;;  %1445 = vmatpush.bf16.msrb.mxu2 %v2721_v52  ;;  %v2534_v30 = vld [vmem:[%s3662_s9 + $0xd0] sm:$0xf0] }
 0x5ae   : > { %v1390_v56 = vpop.xlane.xlu2 %1389 }
 0x5af   : > { %2827 = vrcp.f32 %v1390_v56  ;;  %v2537_v56 = vor.u32 %v2748_v39, %v2534_v30 }
 0x5b5   : > { %v2828_v46 = vpop.eup %2827 }
 0x5b6   : > { %v1392_v15 = vmul.f32 %v2828_v46, %v3281_v57  ;;  %v2720_v57 = vld [vmem:[%s3658_s5 + $0x20] sm:$0xff]  ;;  %v2751_v46 = vld [vmem:[%s3662_s9 + $0xd4] sm:$0xf0] }
 0x5b7   : > { %1446 = vmatpush.bf16.msrb.mxu2 %v2720_v57  ;;  %v2730_v57 = vld [vmem:[%s3662_s9 + $0x2c] sm:$0xf0] }
 0x5b8   : > { %v1393_v43 = vpack.c.bf16 %v1392_v15, %v1392_v15  ;;  %v2541_v15 = vor.u32 %v2751_v46, %v2540_v55  ;;  %v2737_v55 = vld [vmem:[%s3662_s9 + $0x6c] sm:$0xf] }
 0x5ba   : > { %2405 = vmatmul.msk.bf16.vlgmr.msrb.gmra.mxu3 %vm1138_vm5, %v1393_v43  ;;  %v2468_v43 = vld [vmem:[%s3662_s9 + $0x40] sm:$0xf] }
 0x5bb   : > { %1828 = vmatpush.bf16.msrb.mxu3 %v2553_v6  ;;  %v2731_v6 = vld [vmem:[%s3662_s9 + $0x34] sm:$0xf0] }
 0x5bc   : > { %v2461_v29 = vor.u32 %v2731_v6, %v2460_v21  ;;  %v2775_v21 = vld [vmem:[%s3664_s11 + $0x98] sm:$0xff]  ;;  %v2766_v6 = vld [vmem:[%s3664_s11 + $0x50] sm:$0xff] }
 0x5be   : > { %v1513_v31 = vpop.xlane.xlu1 %1512 }
 0x5bf   : > { %2829 = vrcp.f32 %v1513_v31  ;;  %1829 = vmatpush.bf16.msrb.mxu3 %v2537_v56  ;;  %v2734_v31 = vld [vmem:[%s3662_s9 + $0x4c] sm:$0xf0]  ;;  %v2494_v56 = vld [vmem:[%s3662_s9 + $0x78] sm:$0xf0] }
 0x5c0   : > { %v2497_v46 = vor.u32 %v2737_v55, %v2494_v56  ;;  %v2781_v56 = vld [vmem:[%s3664_s11 + $0xc8] sm:$0xff] }
 0x5c5   : > { %v2830_v13 = vpop.eup %2829 }
 0x5c6   : > { %v1515_v34 = vmul.f32 %v2830_v13, %v2824_v8  ;;  %v2469_v13 = vor.u32 %v2734_v31, %v2468_v43  ;;  %v2733_v43 = vld [vmem:[%s3662_s9 + $0x4c] sm:$0xf]  ;;  %v2478_v31 = vld [vmem:[%s3662_s9 + $0x58] sm:$0xf0] }
 0x5c8   : > { %v1516_v50 = vpack.c.bf16 %v1515_v34, %v1515_v34  ;;  %v2744_v34 = vld [vmem:[%s3662_s9 + $0xa4] sm:$0xf] }
 0x5ca   : > { %2420 = vmatmul.msk.bf16.vlgmr.msra.gmra.mxu3 %vm1138_vm5, %v1516_v50  ;;  %v2518_v50 = vld [vmem:[%s3662_s9 + $0xb0] sm:$0xf0] }
 0x5cb   : > { %v2521_v52 = vor.u32 %v2744_v34, %v2518_v50  ;;  %v2481_v34 = vor.u32 %v2733_v43, %v2478_v31  ;;  %v2780_v31 = vld [vmem:[%s3664_s11 + $0xc0] sm:$0xff] }
 0x5cd   : > { %1830 = vmatpush.bf16.msrb.mxu3 %v2521_v52  ;;  %v2462_v52 = vld [vmem:[%s3662_s9 + $0x38] sm:$0xf0] }
 0x5ff   : > { %v1171_v53 = vpop.f32.mrf.mxu2 }
 0x600   : > { %v1179_v36 = vpack.c.bf16 %v1171_v53, %v1171_v53  ;;  %v2747_v53 = vld [vmem:[%s3662_s9 + $0xb4] sm:$0xf0] }
 0x602   : > { %2403 = vmatmul.msk.bf16.vlgmr.msra.gmra.mxu2 %vm1120_vm4, %v1179_v36  ;;  %v2525_v36 = vor.u32 %v2747_v53, %v2524_v51  ;;  %v2729_v51 = vld [vmem:[%s3662_s9 + $0x2c] sm:$0xf] }
 0x603   : > { %1568 = vmatpush.bf16.msra.mxu2 %v2723_v59  ;;  %v2465_v53 = vor.u32 %v2729_v51, %v2462_v52 }
 0x607   : > { %v1173_v54 = vpop.f32.mrf.mxu2  ;;  %1569 = vmatpush.bf16.msra.mxu2 %v2722_v61  ;;  %v2740_v61 = vld [vmem:[%s3662_s9 + $0x84] sm:$0xf] }
 0x608   : > { %v2452_v54 = vld [vmem:[%s3662_s9 + $0x20] sm:$0xf] }
 0x609   : > { %v2453_v59 = vor.u32 %v2730_v57, %v2452_v54 }
 0x63d   : > { %v1414_v63 = vpop.f32.mrf.mxu3 }
 0x63e   : > { %v1423_v1 = vpack.c.bf16 %v1414_v63, %v1414_v63  ;;  %v2502_v63 = vld [vmem:[%s3662_s9 + $0x90] sm:$0xf0] }
 0x640   : > { %2418 = vmatmul.msk.bf16.vlgmr.msrb.gmra.mxu2 %vm1120_vm4, %v1423_v1  ;;  %v2508_v1 = vld [vmem:[%s3662_s9 + $0x88] sm:$0xf] }
 0x641   : > { %1841 = vmatpush.bf16.msrb.mxu2 %v2557_v33  ;;  %v2745_v33 = vld [vmem:[%s3662_s9 + $0xac] sm:$0xf] }
 0x645   : > { %v1416_v2 = vpop.f32.mrf.mxu3  ;;  %1842 = vmatpush.bf16.msrb.mxu2 %v2541_v15 }
 0x646   : > { %v2505_v2 = vor.u32 %v2740_v61, %v2502_v63  ;;  %v2763_v63 = vld [vmem:[%s3664_s11 + $0x38] sm:$0xff] }
 0x648   : > { %1831 = vmatpush.bf16.msrb.mxu3 %v2505_v2  ;;  %v2762_v2 = vld [vmem:[%s3664_s11 + $0x30] sm:$0xff] }
 0x649   : > { %1843 = vmatpush.bf16.msrb.mxu2 %v2525_v36  ;;  %v2725_v36 = vld [vmem:[%s3662_s9 + $0xc] sm:$0xf] }
 0x64d   : > { %v1537_v3 = vpop.f32.mrf.mxu3 }
 0x64e   : > { %v1546_v44 = vpack.c.bf16 %v1537_v3, %v1537_v3  ;;  %v2743_v3 = vld [vmem:[%s3662_s9 + $0x94] sm:$0xf0] }
 0x650   : > { %2433 = vmatmul.msk.bf16.vlgmr.msra.gmra.mxu2 %vm1120_vm4, %v1546_v44  ;;  %v2509_v44 = vor.u32 %v2743_v3, %v2508_v1 }
 0x652   : > { %1844 = vmatpush.bf16.msrb.mxu2 %v2509_v44 }
 0x655   : > { %v1539_v5 = vpop.f32.mrf.mxu3 }
 0x656   : > { %v2436_v5 = vld [vmem:[%s3662_s9] sm:$0xf] }
 0x685   : > { %v1326_v45 = vpop.f32.mrf.mxu2 }
 0x686   : > { %v1327_v60 = vadd.f32 %v1326_v45, %v3267_v42  ;;  %v2754_v42 = vld [vmem:[%s3662_s9 + $0xec] sm:$0xf0] }
 0x687   : > { %v2549_v23 = vor.u32 %v2754_v42, %v2548_v22  ;;  %v2726_v45 = vld [vmem:[%s3662_s9 + $0xc] sm:$0xf0]  ;;  %v2470_v22 = vld [vmem:[%s3662_s9 + $0x50] sm:$0xf0]  ;;  %v2476_v42 = vld [vmem:[%s3662_s9 + $0x48] sm:$0xf] }
 0x689   : > { %1815 = vmatpush.bf16.msrb.mxu1 %v2549_v23  ;;  %v2735_v23 = vld [vmem:[%s3662_s9 + $0x54] sm:$0xf0] }
 0x68d   : > { %v1328_v47 = vpop.f32.mrf.mxu2  ;;  %1816 = vmatpush.bf16.msrb.mxu1 %v2533_v27  ;;  %v2477_v27 = vor.u32 %v2735_v23, %v2476_v42  ;;  %v2757_v42 = vld [vmem:[%s3664_s11 + $0x8] sm:$0xff] }
 0x68e   : > { %v2437_v47 = vor.u32 %v2726_v45, %v2436_v5  ;;  %v2808_v5 = vld [vmem:[%s3660_s7] ss:$0 sm:$0xff]  ;;  %v2761_v45 = vld [vmem:[%s3664_s11 + $0x28] sm:$0xff] }
 0x68f   : > { %v2777_v23 = vld [vmem:[%s3664_s11 + $0xa8] sm:$0xff] }
 0x691   : > { %1817 = vmatpush.bf16.msrb.mxu1 %v2517_v35  ;;  %v2526_v35 = vld [vmem:[%s3662_s9 + $0xb8] sm:$0xf0] }
 0x692   : > { %v2529_v32 = vor.u32 %v2745_v33, %v2526_v35  ;;  %v2774_v33 = vld [vmem:[%s3664_s11 + $0x90] sm:$0xff]  ;;  %v2784_v35 = vld [vmem:[%s3664_s11 + $0xe0] sm:$0xff] }
 0x695   : > { %1818 = vmatpush.bf16.msrb.mxu1 %v2501_v37  ;;  %v2724_v37 = vld [vmem:[%s3662_s9 + $0x4] sm:$0xf] }
 0x699   : > { %1819 = vmatpush.bf16.msrb.mxu1 %v2485_v26  ;;  %v2510_v26 = vld [vmem:[%s3662_s9 + $0x98] sm:$0xf0] }
 0x69a   : > { %v2513_v30 = vor.u32 %v2741_v12, %v2510_v26  ;;  %v2782_v12 = vld [vmem:[%s3664_s11 + $0xd0] sm:$0xff] }
 0x69d   : > { %1820 = vmatpush.bf16.msrb.mxu1 %v2469_v13 }
 0x6a1   : > { %1821 = vmatpush.bf16.msrb.mxu1 %v2453_v59 }
 0x6a5   : > { %1822 = vmatpush.bf16.msrb.mxu1 %v2437_v47 }
 0x6c3   : > { %v1448_v8 = vpop.f32.mrf.mxu2 }
 0x6c4   : > { %v1452_v62 = vadd.f32 %v1448_v8, %v1327_v60  ;;  %v2736_v8 = vld [vmem:[%s3662_s9 + $0x64] sm:$0xf]  ;;  %v2492_v60 = vld [vmem:[%s3662_s9 + $0x68] sm:$0xf] }
 0x6cb   : > { %v1450_v48 = vpop.f32.mrf.mxu2 }
 0x6cc   : > { %v2486_v48 = vld [vmem:[%s3662_s9 + $0x70] sm:$0xf0] }
 0x6d3   : > { %v1571_v58 = vpop.f32.mrf.mxu2 }
 0x6d4   : > { %v1575_v16 = vadd.f32 %v1571_v58, %v1452_v62  ;;  %v2489_v62 = vor.u32 %v2736_v8, %v2486_v48  ;;  %v2739_v58 = vld [vmem:[%s3662_s9 + $0x74] sm:$0xf0]  ;;  %v2809_v48 = vld [vmem:[%s3661_s8] ss:$0 sm:$0xff] }
 0x6d6   : > { %v1576_v18 = vadd.f32 %v2841_v49, %v1575_v16  ;;  %v2753_v16 = vld [vmem:[%s3662_s9 + $0xec] sm:$0xf]  ;;  %v2493_v49 = vor.u32 %v2739_v58, %v2492_v60  ;;  %1832 = vmatpush.bf16.msrb.mxu3 %v2489_v62  ;;  %v2760_v62 = vld [vmem:[%s3664_s11 + $0x20] sm:$0xff] }
 0x6d8   : > { %v3333_v20 = vadd.f32 %v2807_v17, %v1576_v18  ;;  %v2558_v17 = vld [vmem:[%s3662_s9 + $0xf8] sm:$0xf0]  ;;  %1845 = vmatpush.bf16.msrb.mxu2 %v2493_v49 }
 0x6d9   : > { %v2561_v18 = vor.u32 %v2753_v16, %v2558_v17  ;;  %v2771_v17 = vld [vmem:[%s3664_s11 + $0x78] sm:$0xff] }
 0x6da   : > { %1582 = vadd.xlane.f32.xlu0 %v3333_v20  ;;  %v2779_v49 = vld [vmem:[%s3664_s11 + $0xb8] sm:$0xff] }
 0x6db   : > { %v1573_v10 = vpop.f32.mrf.mxu2  ;;  %1854 = vmatpush.bf16.msra.mxu1 %v2561_v18  ;;  %v2758_v18 = vld [vmem:[%s3664_s11 + $0x10] sm:$0xff] }
 0x6dc   : > { %v2732_v10 = vld [vmem:[%s3662_s9 + $0x44] sm:$0xf]  ;;  %1846 = vmatpush.bf16.msrb.mxu2 %v2477_v27 }
 0x6dd   : > { %v2473_v4 = vor.u32 %v2732_v10, %v2470_v22  ;;  %v2770_v10 = vld [vmem:[%s3664_s11 + $0x70] sm:$0xff]  ;;  %v2768_v27 = vld [vmem:[%s3664_s11 + $0x60] sm:$0xff] }
 0x6de   : > { %v2778_v22 = vld [vmem:[%s3664_s11 + $0xb0] sm:$0xff] }
 0x6df   : > { %1833 = vmatpush.bf16.msrb.mxu3 %v2473_v4  ;;  %1855 = vmatpush.bf16.msra.mxu1 %v2545_v11  ;;  %v2769_v4 = vld [vmem:[%s3664_s11 + $0x68] sm:$0xff]  ;;  %v2776_v11 = vld [vmem:[%s3664_s11 + $0xa0] sm:$0xff] }
 0x6e0   : > { %1847 = vmatpush.bf16.msrb.mxu2 %v2461_v29  ;;  %v1645_v29 = vld [vmem:[%s3663_s10] sm:$0xf] }
 0x6e1   : > { %v1648_v55 = vperm.slane %v1645_v29, 1 }
 0x6e3   : > { %1834 = vmatpush.bf16.msrb.mxu3 %v2457_v0  ;;  %1856 = vmatpush.bf16.msra.mxu1 %v2529_v32  ;;  %v2785_v0 = vld [vmem:[%s3664_s11 + $0xe8] sm:$0xff] }
 0x6e4   : > { %v2765_v32 = vld [vmem:[%s3664_s11 + $0x48] sm:$0xff] }
 0x6e7   : > { %1857 = vmatpush.bf16.msra.mxu1 %v2513_v30 }
 0x6eb   : > { %1858 = vmatpush.bf16.msra.mxu1 %v2497_v46  ;;  %v1649_v46 = vperm.slane %v1645_v29, 2 }
 0x6ef   : > { %1859 = vmatpush.bf16.msra.mxu1 %v2481_v34 }
 0x6f3   : > { %1860 = vmatpush.bf16.msra.mxu1 %v2465_v53 }
 0x74d   : > { %v1583_v40 = vpop.xlane.xlu0 %1582 }
 0x74e   : > { %v1584_v9 = vmul.f32 %v1583_v40, %v2941_v7  ;;  %v2438_v40 = vld [vmem:[%s3662_s9 + $0x10] sm:$0xf0] }
 0x750   : > { %v3374_v38 = vsub.f32 %v3333_v20, %v1584_v9  ;;  %v2444_v9 = vld [vmem:[%s3662_s9 + $0x8] sm:$0xf] }
 0x751   : > { %v2445_v39 = vor.u32 %v2727_v28, %v2444_v9  ;;  %v1647_v9 = vperm.slane %v1645_v29, 0  ;;  %v2772_v28 = vld [vmem:[%s3664_s11 + $0x80] sm:$0xff] }
 0x752   : > { %v1586_v41 = vmul.f32 %v3374_v38, %v3374_v38 }
 0x753   : > { %1848 = vmatpush.bf16.msrb.mxu2 %v2445_v39 }
 0x754   : > { %1587 = vadd.xlane.f32.xlu2 %v1586_v41  ;;  %v2441_v41 = vor.u32 %v2724_v37, %v2438_v40  ;;  %v2773_v37 = vld [vmem:[%s3664_s11 + $0x88] sm:$0xff]  ;;  %v2783_v40 = vld [vmem:[%s3664_s11 + $0xd8] sm:$0xff] }
 0x756   : > { %1835 = vmatpush.bf16.msrb.mxu3 %v2441_v41  ;;  %v2764_v41 = vld [vmem:[%s3664_s11 + $0x40] sm:$0xff] }
 0x757   : > { %2176 = vmatpush.bf16.msra.mxu2 %v2771_v17 }
 0x75a   : > { %2163 = vmatpush.bf16.msra.mxu3 %v2763_v63  ;;  %v1650_v63 = vperm.slane %v1645_v29, 3 }
 0x75b   : > { %2177 = vmatpush.bf16.msra.mxu2 %v2770_v10 }
 0x75e   : > { %2164 = vmatpush.bf16.msra.mxu3 %v2762_v2 }
 0x75f   : > { %2178 = vmatpush.bf16.msra.mxu2 %v2769_v4 }
 0x762   : > { %2165 = vmatpush.bf16.msra.mxu3 %v2761_v45 }
 0x763   : > { %2179 = vmatpush.bf16.msra.mxu2 %v2768_v27 }
 0x766   : > { %2166 = vmatpush.bf16.msra.mxu3 %v2760_v62 }
 0x767   : > { %2180 = vmatpush.bf16.msra.mxu2 %v2767_v19 }
 0x76b   : > { %2181 = vmatpush.bf16.msra.mxu2 %v2766_v6 }
 0x76f   : > { %2182 = vmatpush.bf16.msra.mxu2 %v2765_v32 }
 0x773   : > { %2183 = vmatpush.bf16.msra.mxu2 %v2764_v41 }
 0x7c7   : > { %v1588_v15 = vpop.xlane.xlu2 %1587 }
 0x7c8   : > { %v1589_v13 = vmul.f32 %v1588_v15, %v2941_v7  ;;  %v2446_v7 = vld [vmem:[%s3662_s9 + $0x18] sm:$0xf0] }
 0x7c9   : > { %v2449_v54 = vor.u32 %v2725_v36, %v2446_v7 }
 0x7ca   : > { %v1590_v50 = vadd.f32 1e-05, %v1589_v13 }
 0x7cb   : > { %1861 = vmatpush.bf16.msra.mxu1 %v2449_v54 }
 0x7cc   : > { %2831 = vrsqrt.f32 %v1590_v50  ;;  %vm1597_vm7 = vweird.f32 %v1590_v50 }
 0x7d2   : > { %v2832_v57 = vpop.eup %2831 }
 0x7d3   : > { %v1592_v59 = vmul.f32 %v2832_v57, %v1590_v50  ;;  %vm1598_vm6 = vweird.f32 %v2832_v57 }
 0x7d4   : > { %vm1599_vm8 = vmor %vm1597_vm7, %vm1598_vm6 }
 0x7d5   : > { %v1593_v61 = vmul.f32 %v2832_v57, %v1592_v59 }
 0x7d7   : > { %v1594_v1 = vmul.f32 0.5, %v1593_v61 }
 0x7d9   : > { %v1595_v3 = vsub.f32 1.5, %v1594_v1 }
 0x7db   : > { %v1596_v44 = vmul.f32 %v2832_v57, %v1595_v3 }
 0x7dd   : > { %v1600_v47 = vsel %vm1599_vm8, %v2832_v57, %v1596_v44 }
 0x7de   : > { %v1601_v8 = vmul.f32 %v1600_v47, %v3374_v38  ;;  %v2759_v38 = vld [vmem:[%s3664_s11 + $0x18] sm:$0xff] }
 0x7df   : > { %2167 = vmatpush.bf16.msra.mxu3 %v2759_v38 }
 0x7e0   : > { %v1606_v60 = vmul.f32 %v2808_v5, %v1601_v8 }
 0x7e2   : > { %v1611_v58 = vadd.f32 %v2809_v48, %v1606_v60 }
 0x7e3   : > { %2168 = vmatpush.bf16.msra.mxu3 %v2758_v18 }
 0x7e4   : > { %v1644_v16 = vpack.c.bf16 %v1611_v58, %v1611_v58 }
 0x7e6   : > { %1823 = vmatmul.bf16.vlgmr.msrb.gmra.mxu1 %v1644_v16  ;;  %1836 = vmatmul.bf16.vlgmr.msrb.gmra.mxu3 %v1644_v16 }
 0x7e7   : > { %1849 = vmatmul.bf16.vlgmr.msrb.gmra.mxu2 %v1644_v16  ;;  %2189 = vmatpush.bf16.msrb.mxu1 %v2779_v49 }
 0x7e8   : > { %2169 = vmatpush.bf16.msra.mxu3 %v2757_v42 }
 0x7eb   : > { %2190 = vmatpush.bf16.msrb.mxu1 %v2778_v22 }
 0x7ec   : > { %2170 = vmatpush.bf16.msra.mxu3 %v2756_v24 }
 0x7ef   : > { %2191 = vmatpush.bf16.msrb.mxu1 %v2777_v23 }
 0x7f0   : > { %2202 = vmatpush.bf16.msrb.mxu3 %v2787_v25 }
 0x7f3   : > { %2192 = vmatpush.bf16.msrb.mxu1 %v2776_v11 }
 0x7f4   : > { %2203 = vmatpush.bf16.msrb.mxu3 %v2786_v14 }
 0x7f6   : > { %1862 = vmatmul.bf16.vlgmr.msra.gmra.mxu1 %v1644_v16 }
 0x7f7   : > { %2193 = vmatpush.bf16.msrb.mxu1 %v2775_v21 }
 0x7f8   : > { %2204 = vmatpush.bf16.msrb.mxu3 %v2785_v0 }
 0x7fb   : > { %2194 = vmatpush.bf16.msrb.mxu1 %v2774_v33 }
 0x7fc   : > { %2205 = vmatpush.bf16.msrb.mxu3 %v2784_v35 }
 0x7ff   : > { %2195 = vmatpush.bf16.msrb.mxu1 %v2773_v37 }
 0x800   : > { %2206 = vmatpush.bf16.msrb.mxu3 %v2783_v40 }
 0x803   : > { %2196 = vmatpush.bf16.msrb.mxu1 %v2772_v28 }
 0x804   : > { %2207 = vmatpush.bf16.msrb.mxu3 %v2782_v12 }
 0x808   : > { %2208 = vmatpush.bf16.msrb.mxu3 %v2781_v56  ;;  %v2810_v56 = vld [vmem:[%s3665_s12] ss:$0 sm:$0xff] }
 0x80c   : > { %2209 = vmatpush.bf16.msrb.mxu3 %v2780_v31 }
 0x863   : > { %v1824_v26 = vpop.f32.mrf.mxu1 }
 0x864   : > { %v1825_v39 = vadd.f32 %v1824_v26, %v1647_v9 }
 0x866   : > { %v1867_v30 = vmul.f32 %v1825_v39, %v1825_v39 }
 0x868   : > { %v1871_v15 = vmul.f32 %v1867_v30, %v1825_v39 }
 0x869   : > { %v1837_v43 = vpop.f32.mrf.mxu3 }
 0x86a   : > { %v1875_v13 = vmul.f32 0.044715, %v1871_v15  ;;  %v1838_v34 = vadd.f32 %v1837_v43, %v1648_v55  ;;  %v1850_v50 = vpop.f32.mrf.mxu2 }
 0x86b   : > { %v1851_v51 = vadd.f32 %v1850_v50, %v1649_v46  ;;  %v1826_v52 = vpop.f32.mrf.mxu1 }
 0x86c   : > { %v1879_v53 = vadd.f32 %v1875_v13, %v1825_v39  ;;  %v1868_v36 = vmul.f32 %v1838_v34, %v1838_v34 }
 0x86d   : > { %v1869_v7 = vmul.f32 %v1851_v51, %v1851_v51 }
 0x86e   : > { %v1883_v54 = vmul.f32 0.7978846, %v1879_v53  ;;  %v1872_v57 = vmul.f32 %v1868_v36, %v1838_v34 }
 0x86f   : > { %v1873_v59 = vmul.f32 %v1869_v7, %v1851_v51 }
 0x870   : > { %2833 = vtanh.f32 %v1883_v54  ;;  %v1876_v61 = vmul.f32 0.044715, %v1872_v57 }
 0x871   : > { %v1877_v1 = vmul.f32 0.044715, %v1873_v59  ;;  %v1839_v2 = vpop.f32.mrf.mxu3 }
 0x872   : > { %v1880_v3 = vadd.f32 %v1876_v61, %v1838_v34  ;;  %v1852_v44 = vpop.f32.mrf.mxu2 }
 0x873   : > { %v1881_v5 = vadd.f32 %v1877_v1, %v1851_v51  ;;  %v1863_v45 = vpop.f32.mrf.mxu1 }
 0x874   : > { %v1884_v47 = vmul.f32 0.7978846, %v1880_v3  ;;  %v1864_v8 = vadd.f32 %v1863_v45, %v1650_v63 }
 0x875   : > { %v1885_v48 = vmul.f32 0.7978846, %v1881_v5 }
 0x876   : > { %v2834_v60 = vpop.eup %2833  ;;  %2835 = vtanh.f32 %v1884_v47  ;;  %v1870_v62 = vmul.f32 %v1864_v8, %v1864_v8 }
 0x877   : > { %2837 = vtanh.f32 %v1885_v48  ;;  %v1891_v58 = vadd.f32 1.0, %v2834_v60 }
 0x878   : > { %v1874_v16 = vmul.f32 %v1870_v62, %v1864_v8 }
 0x879   : > { %v1895_v38 = vmul.f32 0.5, %v1891_v58 }
 0x87a   : > { %v1878_v17 = vmul.f32 0.044715, %v1874_v16 }
 0x87b   : > { %v1865_v49 = vpop.f32.mrf.mxu1  ;;  %v1899_v18 = vmul.f32 %v1895_v38, %v1825_v39 }
 0x87c   : > { %v2836_v10 = vpop.eup %2835  ;;  %v1882_v22 = vadd.f32 %v1878_v17, %v1864_v8 }
 0x87d   : > { %v2838_v42 = vpop.eup %2837  ;;  %v1967_v4 = vpack.c.bf16 %v1899_v18, %v1899_v18  ;;  %v1892_v23 = vadd.f32 1.0, %v2836_v10 }
 0x87e   : > { %v1886_v24 = vmul.f32 0.7978846, %v1882_v22  ;;  %v1893_v25 = vadd.f32 1.0, %v2838_v42 }
 0x87f   : > { %2171 = vmatmul.bf16.vlgmr.msra.gmra.mxu3 %v1967_v4  ;;  %v1896_v27 = vmul.f32 0.5, %v1892_v23 }
 0x880   : > { %2839 = vtanh.f32 %v1886_v24  ;;  %v1897_v11 = vmul.f32 0.5, %v1893_v25 }
 0x881   : > { %v1900_v14 = vmul.f32 %v1896_v27, %v1838_v34 }
 0x882   : > { %v1901_v19 = vmul.f32 %v1897_v11, %v1851_v51 }
 0x883   : > { %v1968_v21 = vpack.c.bf16 %v1900_v14, %v1900_v14 }
 0x884   : > { %v1969_v0 = vpack.c.bf16 %v1901_v19, %v1901_v19 }
 0x885   : > { %2184 = vmatmul.bf16.vlgmr.msra.gmra.mxu2 %v1968_v21 }
 0x886   : > { %v2840_v6 = vpop.eup %2839  ;;  %2197 = vmatmul.bf16.vlgmr.msrb.gmra.mxu1 %v1969_v0 }
 0x887   : > { %v1894_v33 = vadd.f32 1.0, %v2840_v6 }
 0x889   : > { %v1898_v35 = vmul.f32 0.5, %v1894_v33 }
 0x88b   : > { %v1902_v29 = vmul.f32 %v1898_v35, %v1864_v8 }
 0x88d   : > { %v1970_v32 = vpack.c.bf16 %v1902_v29, %v1902_v29 }
 0x88f   : > { %2210 = vmatmul.bf16.vlgmr.msrb.gmra.mxu3 %v1970_v32 }
 0x902   : > { %v2172_v37 = vpop.f32.mrf.mxu3 }
 0x903   : > { %v2198_v40 = vpop.f32.mrf.mxu1 }
 0x908   : > { %v2185_v9 = vpop.f32.mrf.mxu2 }
 0x909   : > { %v2186_v12 = vadd.f32 %v2185_v9, %v2172_v37 }
 0x90a   : > { %v2174_v41 = vpop.f32.mrf.mxu3 }
 0x90b   : > { %v2200_v28 = vpop.f32.mrf.mxu1  ;;  %v2199_v39 = vadd.f32 %v2198_v40, %v2186_v12 }
 0x910   : > { %v2187_v26 = vpop.f32.mrf.mxu2 }
 0x912   : > { %v2211_v30 = vpop.f32.mrf.mxu3 }
 0x913   : > { %v2212_v55 = vadd.f32 %v2211_v30, %v2199_v39 }
 0x915   : > { %v2215_v46 = vadd.f32 %v2212_v55, %v3333_v20 }
 0x917   : > { %v2220_v15 = vadd.f32 %v2810_v56, %v2215_v46 }
 0x919   : > { %2221 = vst [vmem:[%s435_s30] sm:$0xff] %v2220_v15 }
 0x91a   : > { %v2213_v43 = vpop.f32.mrf.mxu3 }
 0x91b PF: > { %s23_s25 = sadd.s32 1, %s2848_s25  }
 0x91c   : > { %p20_p4 = scmp.ge.s32.totalorder %s23_s25, 4  }
 0x91e   :  { %22 = sbr.rel (!%p20_p4) target bundleno = 1 (0x1), region = 105 }

// kernel: _lambda_.11
= control target key start
LH: loop header
LB: loop body
LE: loop exit
PB: predicated region body
PF: predicated region fallthrough
CT: control target
= control target key end

     0   :  { %s4134_s0 = inlined_call_operand.vmem [shape: f32[2,8,128], index: 0, kind: input, shape index: {}]   ;;  %s4135_s1 = inlined_call_operand.vmem [shape: f32[1,128], index: 1, kind: input, shape index: {}]   ;;  %s4136_s2 = inlined_call_operand.vmem [shape: f32[1,128], index: 2, kind: input, shape index: {}]   ;;  %s4137_s3 = inlined_call_operand.vmem [shape: bf16[384,128], index: 3, kind: input, shape index: {}]   ;;  %s4138_s4 = inlined_call_operand.vmem [shape: f32[384,1], index: 4, kind: input, shape index: {}]   ;;  %s4139_s5 = inlined_call_operand.vmem [shape: bf16[4,32,128], index: 5, kind: input, shape index: {}]   ;;  %s4140_s6 = inlined_call_operand.vmem [shape: f32[1,128], index: 6, kind: input, shape index: {}]   ;;  %s4141_s7 = inlined_call_operand.vmem [shape: f32[1,128], index: 7, kind: input, shape index: {}]   ;;  %s4142_s8 = inlined_call_operand.vmem [shape: f32[1,128], index: 8, kind: input, shape index: {}]   ;;  %s4143_s9 = inlined_call_operand.vmem [shape: bf16[128,512], index: 9, kind: input, shape index: {}]   ;;  %s4144_s10 = inlined_call_operand.vmem [shape: f32[1,512], index: 10, kind: input, shape index: {}]   ;;  %s4145_s11 = inlined_call_operand.vmem [shape: bf16[512,128], index: 11, kind: input, shape index: {}]   ;;  %s4146_s12 = inlined_call_operand.vmem [shape: f32[1,128], index: 12, kind: input, shape index: {}]   ;;  %s4147_s13 = inlined_call_operand.vmem [shape: f32[1,128], index: 13, kind: input, shape index: {}]   ;;  %s4148_s14 = inlined_call_operand.vmem [shape: f32[1,128], index: 14, kind: input, shape index: {}]   ;;  %s4149_s15 = inlined_call_operand.vmem [shape: bf16[128,128], index: 15, kind: input, shape index: {}]   ;;  %s4150_s16 = inlined_call_operand.vmem [shape: f32[1,128], index: 16, kind: input, shape index: {}]   ;;  %s4151_s17 = inlined_call_operand.hbm [shape: f32[2,1,128], index: 17, kind: output, shape index: {}]  }
   0x1   :  { %4157 = sst [smem:[#allocation10_spill]] %s4134_s0 }
   0x2   :  { %4158 = sst [smem:[#allocation11_spill]] %s4135_s1 }
   0x3   :  { %4159 = sst [smem:[#allocation12_spill]] %s4136_s2 }
   0x4   :  { %22 = vsyncpa [#allocation3], 0 }
   0x5   :  { %24 = vsyncpa [#allocation3 + $0x1], 0  ;;  %s3308_s24 = smov 0   ;;  %s3310_s25 = smov 0  }
   0x6   :  { %s3312_s26 = smov 0   ;;  %s3314_s27 = smov 0  }
   0x7 LB: > { %4160 = sst [smem:[#allocation5_spill]] %s3202_s24  ;;  %s3329_s28 = sadd.s32 4294967295, %s3214_s27   ;;  %s3214_s27 = sphi %s3314_s27, %s4172_s27   ;;  %s3210_s26 = sphi %s3312_s26, %s4174_s26   ;;  %s3206_s25 = sphi %s3310_s25, %s4176_s25   ;;  %s3202_s24 = sphi %s3308_s24, %s4175_s24  }
   0x8   : > { %4161 = sst [smem:[#allocation6_spill]] %s3210_s26  ;;  %s2512_s29 = sadd.s32 4294967294, %s3214_s27  }
   0x9   : > { %s3333_s0 = sadd.s32 1, %s3214_s27   ;;  %s399_s30 = sadd.s32 1, %s3210_s26 }
   0xa   : > { %4162 = sst [smem:[#allocation7_spill]] %s3333_s0  ;;  %s396_s18 = ssub.s32 %s3214_s27, %s3333_s0 }
   0xb   : > { %p409_p0 = scmp.ne.s32.totalorder %s3210_s26, %s3206_s25  ;;  %p397_p1 = scmp.eq.s32.totalorder %s396_s18, 0 }
   0xc   : > { %p410_p2 = scmp.eq.s32.totalorder %s3329_s28, 1  ;;  %p415_p3 = scmp.ne.s32.totalorder %s3206_s25, %s3202_s24 }
   0xd   : > { %p416_p4 = scmp.eq.s32.totalorder %s2512_s29, 1  ;;  %p2515_p7 = scmp.ge.s32.totalorder %s3214_s27, 1 }
   0xe   : > { %s3344_s19 = scalar_select %p397_p1, %s3210_s26, %s399_s30  }
   0xf   : > { %p3346_p5 = por %p410_p2, %p409_p0  ;;  %p3350_p6 = por %p416_p4, %p415_p3 }
  0x10   : > { %4163 = sst [smem:[#allocation8_spill]] %s3344_s19  ;;  %p489_p8 = scmp.lt.s32.totalorder %s3214_s27, 3 }
  0x11   : > { %s4165_s20 = scalar_select %p3350_p6, 1, 0 }
  0x12   : > { %p490_p9 = pnand %p2515_p7, %p489_p8 }
  0x13   : > { %4166 = sst [smem:[#allocation9_spill]] %s4165_s20  ;;  %p539_p10 = scmp.lt.s32.totalorder (!%p490_p9), %s3329_s28, 1 }
  0x14   : > { %493 = sbr.rel (%p490_p9) target bundleno = 2756 (0xac4), region = 88  ;;  %s4167_s30 = sld [smem:[#allocation10_spill]] (!%p490_p9) }
  0x15   : > { %s4168_s26 = sld [smem:[#allocation11_spill]] (!%p490_p9)  ;;  %s537_s24 = sand.u32 (!%p490_p9), 1, %s3206_s25  }
  0x16   : > { %s4169_s2 = sld [smem:[#allocation12_spill]] (!%p490_p9)  ;;  %s3172_s20 = scalar_lea.hbm (!%p490_p9), %s4151_s17, 2 }
  0x19   : > { %s540_s21 = scalar_select %p539_p10, %s3329_s28, 1  ;;  %v3216_v1 = vmov 128.0   ;;  %v3217_v12 = vmov 0   ;;  %v635_v13 = vld [vmem:[%s4138_s4 + $0x20] sm:$0xff]  ;;  %v636_v14 = vld [vmem:[%s4138_s4 + $0x28] sm:$0xff]  ;;  %v654_v15 = vld [vmem:[%s4138_s4 + $0xb8] sm:$0xff] }
  0x1a   : > { %3119 = vrcp.f32 %v3216_v1  ;;  %3110 = vset.pattern.permute.xlu0 %v3217_v12  ;;  %3108 = vset.pattern.permute.xlu1 %v3217_v12  ;;  %v652_v16 = vld [vmem:[%s4138_s4 + $0xa8] sm:$0xff]  ;;  %v653_v17 = vld [vmem:[%s4138_s4 + $0xb0] sm:$0xff]  ;;  %v634_v18 = vld [vmem:[%s4138_s4 + $0x18] sm:$0xff]  ;;  %vm1227_vm4 = vcmask 261120   ;;  %vm1245_vm5 = vcmask 64512   ;;  %vm2328_vm9 = vcmask 1044484  }
  0x1b   : > { %s2516_s22 = sshll.u32 %s540_s21, 3  ;;  %701 = vperm.xlu1 %3108, %v635_v13   ;;  %3109 = vset.pattern.permute.xlu2 %v3217_v12  ;;  %v631_v19 = vld [vmem:[%s4138_s4] sm:$0xff]  ;;  %v669_v20 = vld [vmem:[%s4138_s4 + $0x130] sm:$0xff]  ;;  %v632_v24 = vld [vmem:[%s4138_s4 + $0x8] sm:$0xff]  ;;  %s2453_s21 = scalar_lea.hbm %s4151_s17, %s3329_s28 }
  0x1c   : > { %s3361_s18 = scalar_lea.vmem %s4167_s30, %s2516_s22  ;;  %v639_v25 = vld [vmem:[%s4138_s4 + $0x40] sm:$0xff]  ;;  %v633_v29 = vld [vmem:[%s4138_s4 + $0x10] sm:$0xff]  ;;  %v668_v30 = vld [vmem:[%s4138_s4 + $0x128] sm:$0xff]  ;;  %s2457_s19 = sshll.u32 %s2453_s21, 4  ;;  %s2458_s19 = int_to_ptr.hbm [resolvable:$true] %s2457_s19 }
  0x1d   : > { %v544_v0 = vld [vmem:[%s3361_s18] sm:$0xff]  ;;  %v649_v36 = vld [vmem:[%s4138_s4 + $0x90] sm:$0xff]  ;;  %v640_v37 = vld [vmem:[%s4138_s4 + $0x48] sm:$0xff]  ;;  %s2445_s30 = scalar_lea.sflag [#allocation3], %s537_s24 }
  0x1e   : > { %545 = vadd.xlane.f32.xlu0 %v544_v0  ;;  %v3111_v34 = vld [vmem:[%s4168_s26] ss:$0 sm:$0xff]  ;;  %v641_v44 = vld [vmem:[%s4138_s4 + $0x50] sm:$0xff]  ;;  %v648_v47 = vld [vmem:[%s4138_s4 + $0x88] sm:$0xff]  ;;  %s3166_s26 = sshra.s32 %s2458_s19, 4  ;;  %s3167_s26 = int_to_ptr.hbm [resolvable:$true] %s3166_s26 }
  0x1f   : > { %v3112_v39 = vld [vmem:[%s4169_s2] ss:$0 sm:$0xff]  ;;  %v2977_v46 = vld [vmem:[%s4137_s3 + $0x90] sm:$0xff]  ;;  %v642_v48 = vld [vmem:[%s4138_s4 + $0x58] sm:$0xff]  ;;  %s3168_s2 = scalar_lea.hbm %s3167_s26, 1  ;;  %p3173_p0 = scmp.lt.s32.totalorder %s3167_s26, %s4151_s17 }
  0x20   : > { %v3120_v2 = vpop.eup %3119  ;;  %v647_v43 = vld [vmem:[%s4138_s4 + $0x80] sm:$0xff]  ;;  %v670_v49 = vld [vmem:[%s4138_s4 + $0x138] sm:$0xff]  ;;  %v2960_v51 = vld [vmem:[%s4137_s3 + $0x8] sm:$0xff]  ;;  %p3169_p11 = scmp.ne.s32.totalorder %s3167_s26, %s3168_s2  ;;  %p3174_p1 = scmp.lt.s32.totalorder %s3172_s20, %s3168_s2 }
  0x21   : > { %v548_v3 = vmul.f32 128.0, %v3120_v2  ;;  %vm552_vm0 = vweird.f32 %v3120_v2  ;;  %v2959_v45 = vld [vmem:[%s4137_s3] sm:$0xff]  ;;  %v2978_v52 = vld [vmem:[%s4137_s3 + $0x98] sm:$0xff]  ;;  %v657_v54 = vld [vmem:[%s4138_s4 + $0xd0] sm:$0xff] }
  0x22   : > { %v643_v50 = vld [vmem:[%s4138_s4 + $0x60] sm:$0xff]  ;;  %v2961_v55 = vld [vmem:[%s4137_s3 + $0x10] sm:$0xff]  ;;  %v2962_v57 = vld [vmem:[%s4137_s3 + $0x18] sm:$0xff]  ;;  %p3170_p12 = pnand %p3169_p11, %p3346_p5  ;;  %p3175_p2 = por %p3174_p1, %p3173_p0 }
  0x23   : > { %v549_v4 = vsub.f32 1.0, %v548_v3  ;;  %706 = vperm.xlu1 %3108, %v636_v14   ;;  %v667_v53 = vld [vmem:[%s4138_s4 + $0x120] sm:$0xff]  ;;  %v637_v56 = vld [vmem:[%s4138_s4 + $0x30] sm:$0xff]  ;;  %v638_v58 = vld [vmem:[%s4138_s4 + $0x38] sm:$0xff] }
  0x24   : > { %711 = vperm.xlu2 %3109, %v637_v56   ;;  %v651_v59 = vld [vmem:[%s4138_s4 + $0xa0] sm:$0xff]  ;;  %v658_v61 = vld [vmem:[%s4138_s4 + $0xd8] sm:$0xff]  ;;  %v2964_v62 = vld [vmem:[%s4137_s3 + $0x28] sm:$0xff]  ;;  %p3171_p13 = pneg %p3170_p12 }
  0x25   : > { %v550_v5 = vmul.f32 %v3120_v2, %v549_v4  ;;  %v2963_v60 = vld [vmem:[%s4137_s3 + $0x20] sm:$0xff]  ;;  %v644_v63 = vld [vmem:[%s4138_s4 + $0x68] sm:$0xff]  ;;  %v2965_v1 = vld [vmem:[%s4137_s3 + $0x30] sm:$0xff] }
  0x26   : > { %v2973_v12 = vld [vmem:[%s4137_s3 + $0x70] sm:$0xff]  ;;  %v2968_v13 = vld [vmem:[%s4137_s3 + $0x48] sm:$0xff]  ;;  %v2982_v56 = vld [vmem:[%s4137_s3 + $0xb8] sm:$0xff]  ;;  %p3176_p3 = pnand %p3175_p2, %p3171_p13 }
  0x27   : > { %v551_v6 = vadd.f32 %v3120_v2, %v550_v5  ;;  %v2967_v5 = vld [vmem:[%s4137_s3 + $0x40] sm:$0xff] }
  0x29   : > { %v3364_v7 = vsel %vm552_vm0, %v3120_v2, %v551_v6  ;;  %v2966_v2 = vld [vmem:[%s4137_s3 + $0x38] sm:$0xff] }
  0x2b   : > { %796 = vperm.xlu1 %3108, %v654_v15  }
  0x2c   : > { %716 = vperm.xlu2 %3109, %v638_v58  }
  0x33   : > { %786 = vperm.xlu1 %3108, %v652_v16  }
  0x34   : > { %781 = vperm.xlu2 %3109, %v651_v59  }
  0x3b   : > { %696 = vperm.xlu1 %3108, %v634_v18  }
  0x43   : > { %871 = vperm.xlu1 %3108, %v669_v20   ;;  %v661_v20 = vld [vmem:[%s4138_s4 + $0xf0] sm:$0xff] }
  0x4b   : > { %721 = vperm.xlu1 %3108, %v639_v25   ;;  %v659_v25 = vld [vmem:[%s4138_s4 + $0xe0] sm:$0xff] }
  0x53   : > { %866 = vperm.xlu1 %3108, %v668_v30   ;;  %v2970_v30 = vld [vmem:[%s4137_s3 + $0x58] sm:$0xff] }
  0x5b   : > { %726 = vperm.xlu1 %3108, %v640_v37  }
  0x63   : > { %731 = vperm.xlu1 %3108, %v641_v44  }
  0x6b   : > { %736 = vperm.xlu1 %3108, %v642_v48  }
  0x73   : > { %741 = vperm.xlu1 %3108, %v643_v50  }
  0x7b   : > { %811 = vperm.xlu1 %3108, %v657_v54  }
  0x91   : > { %v546_v8 = vpop.xlane.xlu0 %545 }
  0x92   : > { %v554_v9 = vmul.f32 %v3364_v7, %v546_v8 }
  0x94   : > { %v555_v10 = vsub.f32 %v544_v0, %v554_v9  ;;  %v645_v0 = vld [vmem:[%s4138_s4 + $0x70] sm:$0xff] }
  0x96   : > { %v556_v11 = vmul.f32 %v555_v10, %v555_v10 }
  0x98   : > { %557 = vadd.xlane.f32.xlu0 %v556_v11 }
  0xac   : > { %791 = vperm.xlu0 %3110, %v653_v17   ;;  %v656_v17 = vld [vmem:[%s4138_s4 + $0xc8] sm:$0xff] }
  0xb4   : > { %681 = vperm.xlu0 %3110, %v631_v19   ;;  %v2974_v19 = vld [vmem:[%s4137_s3 + $0x78] sm:$0xff] }
  0xbc   : > { %686 = vperm.xlu0 %3110, %v632_v24  }
  0xc4   : > { %691 = vperm.xlu0 %3110, %v633_v29   ;;  %v712_v29 = vpop.permute.xlu2 %711 }
  0xcc   : > { %771 = vperm.xlu0 %3110, %v649_v36   ;;  %v2971_v36 = vld [vmem:[%s4137_s3 + $0x60] sm:$0xff] }
  0xd4   : > { %761 = vperm.xlu0 %3110, %v647_v43  }
  0xdc   : > { %766 = vperm.xlu0 %3110, %v648_v47  }
  0xe4   : > { %876 = vperm.xlu0 %3110, %v670_v49   ;;  %v2981_v49 = vld [vmem:[%s4137_s3 + $0xb0] sm:$0xff] }
  0xec   : > { %861 = vperm.xlu0 %3110, %v667_v53  }
  0xf4   : > { %816 = vperm.xlu0 %3110, %v658_v61  }
  0xfc   : > { %746 = vperm.xlu0 %3110, %v644_v63  }
 0x104   : > { %751 = vperm.xlu0 %3110, %v645_v0   ;;  %v650_v0 = vld [vmem:[%s4138_s4 + $0x98] sm:$0xff] }
 0x10b   : > { %v558_v21 = vpop.xlane.xlu0 %557 }
 0x10c   : > { %v559_v22 = vmul.f32 %v558_v21, %v3364_v7  ;;  %806 = vperm.xlu0 %3110, %v656_v17   ;;  %v702_v21 = vpop.permute.xlu1 %701 }
 0x10e   : > { %v560_v23 = vadd.f32 1e-05, %v559_v22  ;;  %v2969_v22 = vld [vmem:[%s4137_s3 + $0x50] sm:$0xff] }
 0x110   : > { %3121 = vrsqrt.f32 %v560_v23  ;;  %vm567_vm2 = vweird.f32 %v560_v23 }
 0x114   : > { %831 = vperm.xlu0 %3110, %v661_v20  }
 0x116   : > { %v3122_v26 = vpop.eup %3121 }
 0x117   : > { %v562_v27 = vmul.f32 %v3122_v26, %v560_v23  ;;  %vm568_vm1 = vweird.f32 %v3122_v26 }
 0x118   : > { %vm569_vm3 = vmor %vm567_vm2, %vm568_vm1 }
 0x119   : > { %v563_v28 = vmul.f32 %v3122_v26, %v562_v27 }
 0x11b   : > { %v564_v31 = vmul.f32 0.5, %v563_v28 }
 0x11c   : > { %821 = vperm.xlu0 %3110, %v659_v25   ;;  %v660_v25 = vld [vmem:[%s4138_s4 + $0xe8] sm:$0xff] }
 0x11d   : > { %v565_v32 = vsub.f32 1.5, %v564_v31 }
 0x11e   : > { %v3488_v3 = vpop.permute.xlu0 %791 }
 0x11f   : > { %v566_v33 = vmul.f32 %v3122_v26, %v565_v32 }
 0x121   : > { %v570_v35 = vsel %vm569_vm3, %v3122_v26, %v566_v33  ;;  %v707_v26 = vpop.permute.xlu1 %706  ;;  %v717_v33 = vpop.permute.xlu2 %716 }
 0x122   : > { %v571_v38 = vmul.f32 %v570_v35, %v555_v10 }
 0x124   : > { %v576_v40 = vmul.f32 %v3111_v34, %v571_v38 }
 0x126   : > { %v581_v41 = vadd.f32 %v3112_v39, %v576_v40  ;;  %v682_v4 = vpop.permute.xlu0 %681  ;;  %v2972_v39 = vld [vmem:[%s4137_s3 + $0x68] sm:$0xff] }
 0x128   : > { %v630_v42 = vpack.c.bf16 %v581_v41, %v581_v41 }
 0x129   : > { %v797_v58 = vpop.permute.xlu1 %796 }
 0x12a   : > { %1070 = vmatpush.bf16.xpose.msra.mxu0 %v630_v42  ;;  %3063 = vmatpush.bf16.xpose.msra.mxu1 %v630_v42 }
 0x12b   : > { %3064 = vmatpush.bf16.xpose.msra.mxu2 %v630_v42  ;;  %3065 = vmatpush.bf16.xpose.msra.mxu3 %v630_v42  ;;  %v2979_v42 = vld [vmem:[%s4137_s3 + $0xa0] sm:$0xff] }
 0x12e   : > { %v687_v9 = vpop.permute.xlu0 %686 }
 0x131   : > { %1071 = vmatmul.bf16.vlgmr.msra.gmra.mxu0 %v2959_v45  ;;  %1141 = vmatmul.bf16.vlgmr.msra.gmra.mxu1 %v2973_v12  ;;  %v2980_v45 = vld [vmem:[%s4137_s3 + $0xa8] sm:$0xff] }
 0x132   : > { %1161 = vmatmul.bf16.vlgmr.msra.gmra.mxu2 %v2977_v46  ;;  %1171 = vmatmul.bf16.vlgmr.msra.gmra.mxu3 %v2979_v42 }
 0x136   : > { %v692_v15 = vpop.permute.xlu0 %691 }
 0x13e   : > { %v3549_v47 = vpop.permute.xlu0 %771 }
 0x141   : > { %1076 = vmatmul.bf16.gmra.mxu0 %v2960_v51  ;;  %1146 = vmatmul.bf16.gmra.mxu1 %v2974_v19 }
 0x142   : > { %1166 = vmatmul.bf16.gmra.mxu2 %v2978_v52  ;;  %1176 = vmatmul.bf16.gmra.mxu3 %v2980_v45 }
 0x146   : > { %v762_v50 = vpop.permute.xlu0 %761 }
 0x14e   : > { %v767_v52 = vpop.permute.xlu0 %766 }
 0x151   : > { %1081 = vmatmul.bf16.gmra.mxu0 %v2961_v55 }
 0x152   : > { %1181 = vmatmul.bf16.gmra.mxu3 %v2981_v49 }
 0x161   : > { %1086 = vmatmul.bf16.gmra.mxu0 %v2962_v57 }
 0x162   : > { %1186 = vmatmul.bf16.gmra.mxu3 %v2982_v56 }
 0x171   : > { %1091 = vmatmul.bf16.gmra.mxu0 %v2963_v60  ;;  %v787_v60 = vpop.permute.xlu1 %786 }
 0x179   : > { %v3565_v63 = vpop.permute.xlu1 %696 }
 0x181   : > { %1096 = vmatmul.bf16.gmra.mxu0 %v2964_v62 }
 0x191   : > { %1101 = vmatmul.bf16.gmra.mxu0 %v2965_v1 }
 0x1a1   : > { %1106 = vmatmul.bf16.gmra.mxu0 %v2966_v2  ;;  %v655_v2 = vld [vmem:[%s4138_s4 + $0xc0] sm:$0xff] }
 0x1ae   : > { %v1072_v6 = vpop.f32.mrf.mxu0 }
 0x1af   : > { %v3493_v8 = vadd.f32 %v1072_v6, %v682_v4  ;;  %v872_v4 = vpop.permute.xlu1 %871  ;;  %v646_v6 = vld [vmem:[%s4138_s4 + $0x78] sm:$0xff] }
 0x1b1   : > { %1111 = vmatmul.bf16.gmra.mxu0 %v2967_v5 }
 0x1b5   : > { %v3596_v49 = vpop.f32.mrf.mxu3 }
 0x1b6   : > { %v1074_v10 = vpop.f32.mrf.mxu0 }
 0x1b7   : > { %v3495_v11 = vadd.f32 %v1074_v10, %v687_v9  ;;  %v3576_v9 = vpop.permute.xlu1 %721  ;;  %v782_v10 = vpop.permute.xlu2 %781 }
 0x1be   : > { %v1077_v14 = vpop.f32.mrf.mxu0 }
 0x1bf   : > { %v3503_v16 = vadd.f32 %v1077_v14, %v692_v15  ;;  %v662_v15 = vld [vmem:[%s4138_s4 + $0xf8] sm:$0xff] }
 0x1c1   : > { %1116 = vmatmul.bf16.gmra.mxu0 %v2968_v13 }
 0x1c6   : > { %v3508_v18 = vpop.f32.mrf.mxu0 }
 0x1ce   : > { %v1082_v23 = vpop.f32.mrf.mxu0 }
 0x1cf   : > { %v1083_v24 = vadd.f32 %v1082_v23, %v702_v21 }
 0x1d1   : > { %1121 = vmatmul.bf16.gmra.mxu0 %v2969_v22  ;;  %1287 = vxpose.xlu2.b32.start [1/4] (short) (narrow) %v1083_v24, 8  ;;  %v867_v22 = vpop.permute.xlu1 %866 }
 0x1d6   : > { %v1084_v27 = vpop.f32.mrf.mxu0 }
 0x1d7   : > { %v1085_v28 = vadd.f32 %v1084_v27, %v707_v26  ;;  %v877_v26 = vpop.permute.xlu0 %876 }
 0x1d9   : > { %1288 = vxpose.xlu2.b32.cont [2/4] (short) (narrow) %v1085_v28, 8 }
 0x1de   : > { %v1087_v31 = vpop.f32.mrf.mxu0 }
 0x1df   : > { %v1088_v32 = vadd.f32 %v1087_v31, %v712_v29  ;;  %v862_v28 = vpop.permute.xlu0 %861 }
 0x1e1   : > { %1126 = vmatmul.bf16.gmra.mxu0 %v2970_v30  ;;  %1289 = vxpose.xlu2.b32.cont [3/4] (short) (narrow) %v1088_v32, 8  ;;  %v1162_v30 = vpop.f32.mrf.mxu2 }
 0x1e6   : > { %v1089_v34 = vpop.f32.mrf.mxu0 }
 0x1e7   : > { %v1090_v35 = vadd.f32 %v1089_v34, %v717_v33  ;;  %v3592_v31 = vpop.permute.xlu0 %816 }
 0x1e9   : > { %1290 = vxpose.xlu2.b32.end [4/4] (short) (narrow) %v1090_v35, 8  ;;  %v1164_v33 = vpop.f32.mrf.mxu2 }
 0x1ee   : > { %v3528_v37 = vpop.f32.mrf.mxu0 }
 0x1ef   : > { %v747_v35 = vpop.permute.xlu0 %746 }
 0x1f1   : > { %1131 = vmatmul.bf16.gmra.mxu0 %v2971_v36 }
 0x1f6   : > { %v3530_v38 = vpop.f32.mrf.mxu0 }
 0x1f7   : > { %v752_v42 = vpop.permute.xlu0 %751 }
 0x1fe   : > { %v3535_v40 = vpop.f32.mrf.mxu0 }
 0x201   : > { %1136 = vmatmul.bf16.gmra.mxu0 %v2972_v39  ;;  %v1167_v39 = vpop.f32.mrf.mxu2 }
 0x206   : > { %v3537_v41 = vpop.f32.mrf.mxu0 }
 0x20e   : > { %v1102_v43 = vpop.f32.mrf.mxu0 }
 0x216   : > { %v3542_v44 = vpop.f32.mrf.mxu0 }
 0x217   : > { %v1105_v36 = vadd.f32 %v3542_v44, %v747_v35 }
 0x21e   : > { %v3547_v46 = vpop.f32.mrf.mxu0 }
 0x21f   : > { %v1108_v45 = vadd.f32 %v3547_v46, %v752_v42 }
 0x226   : > { %v3551_v48 = vpop.f32.mrf.mxu0 }
 0x22e   : > { %v1112_v51 = vpop.f32.mrf.mxu0 }
 0x22f   : > { %v3556_v54 = vadd.f32 %v1112_v51, %v762_v50  ;;  %v1169_v50 = vpop.f32.mrf.mxu2 }
 0x236   : > { %v1114_v53 = vpop.f32.mrf.mxu0 }
 0x237   : > { %v3558_v55 = vadd.f32 %v1114_v53, %v767_v52  ;;  %v1168_v52 = vadd.f32 %v1167_v39, %v872_v4  ;;  %v1170_v53 = vadd.f32 %v1169_v50, %v877_v26 }
 0x239   : > { %v1225_v57 = vpack.c.bf16 %v3558_v55, %v3556_v54 }
 0x23e   : > { %v1117_v59 = vpop.f32.mrf.mxu0 }
 0x23f   : > { %v1118_v56 = vadd.f32 %v1117_v59, %v3549_v47 }
 0x246   : > { %v1119_v61 = vpop.f32.mrf.mxu0 }
 0x24e   : > { %v1122_v62 = vpop.f32.mrf.mxu0 }
 0x24f   : > { %v1123_v20 = vadd.f32 %v1122_v62, %v782_v10  ;;  %v3599_v62 = vpop.f32.mrf.mxu3 }
 0x252   : > { %776 = vperm.xlu2 %3109, %v650_v0   ;;  %v1165_v0 = vadd.f32 %v1164_v33, %v867_v22 }
 0x256   : > { %v1124_v1 = vpop.f32.mrf.mxu0 }
 0x257   : > { %v1125_v17 = vadd.f32 %v1124_v1, %v787_v60  ;;  %v1352_v60 = vpack.c.bf16 %v1170_v53, %v1168_v52  ;;  %v1163_v1 = vadd.f32 %v1162_v30, %v862_v28  ;;  %v3605_v4 = vpop.f32.mrf.mxu3  ;;  %v1142_v28 = vpop.f32.mrf.mxu1 }
 0x259   : > { %v1320_v23 = vpack.c.bf16 %v1125_v17, %v1123_v20  ;;  %v1360_v46 = vsel %vm1245_vm5, %v1352_v60, 0 }
 0x25a   : > { %801 = vperm.xlu2 %3109, %v655_v2   ;;  %v1351_v2 = vpack.c.bf16 %v1165_v0, %v1163_v1  ;;  %v673_v0 = vld [vmem:[%s4138_s4 + $0x150] sm:$0xff] }
 0x25e   : > { %v1127_v5 = vpop.f32.mrf.mxu0 }
 0x25f   : > { %v1128_v13 = vadd.f32 %v1127_v5, %v3488_v3  ;;  %v3586_v3 = vpop.permute.xlu1 %726  ;;  %v3609_v5 = vpop.f32.mrf.mxu3 }
 0x262   : > { %756 = vperm.xlu2 %3109, %v646_v6  }
 0x266   : > { %v1129_v12 = vpop.f32.mrf.mxu0 }
 0x267   : > { %v1130_v14 = vadd.f32 %v1129_v12, %v797_v58  ;;  %v3588_v27 = vpop.permute.xlu1 %731  ;;  %v3611_v6 = vpop.f32.mrf.mxu3 }
 0x269   : > { %v1321_v19 = vpack.c.bf16 %v1130_v14, %v1128_v13  ;;  %v1080_v14 = vadd.f32 %v3508_v18, %v3565_v63  ;;  %v1095_v18 = vadd.f32 %v3530_v38, %v3586_v3  ;;  %v1098_v63 = vadd.f32 %v3535_v40, %v3588_v27 }
 0x26a   : > { %836 = vperm.xlu2 %3109, %v662_v15   ;;  %v1303_v21 = vpop.trf.xlu2 }
 0x26b   : > { %1331 = vmatpush.bf16.msrb.mxu3 %v1321_v19  ;;  %v1319_v24 = vpack.c.bf16 %v1303_v21, %v1303_v21 }
 0x26f   : > { %1332 = vmatpush.bf16.msrb.mxu3 %v1320_v23  ;;  %v3590_v29 = vpop.permute.xlu1 %736  ;;  %v3613_v10 = vpop.f32.mrf.mxu3 }
 0x270   : > { %v1132_v23 = vpop.f32.mrf.mxu0 }
 0x272   : > { %826 = vperm.xlu2 %3109, %v660_v25   ;;  %2615 = vmatmul.msk.bf16.vlgmr.msrb.gmra.mxu3 %vm1227_vm4, %v1319_v24  ;;  %v1100_v24 = vadd.f32 %v3537_v41, %v3590_v29  ;;  %v807_v25 = vpop.permute.xlu0 %806  ;;  %v1144_v41 = vpop.f32.mrf.mxu1 }
 0x277   : > { %v742_v32 = vpop.permute.xlu1 %741  ;;  %v3615_v54 = vpop.f32.mrf.mxu3 }
 0x278   : > { %v1103_v34 = vadd.f32 %v1102_v43, %v742_v32 }
 0x27a   : > { %v832_v35 = vpop.permute.xlu0 %831 }
 0x27f   : > { %v3617_v55 = vpop.f32.mrf.mxu3  ;;  %v812_v15 = vpop.permute.xlu1 %811 }
 0x282   : > { %v822_v29 = vpop.permute.xlu0 %821 }
 0x283   : > { %v1143_v60 = vadd.f32 %v1142_v28, %v822_v29  ;;  %v663_v29 = vld [vmem:[%s4138_s4 + $0x100] sm:$0xff] }
 0x298   : > { %1560 = vxpose.xlu2.b32.start [1/4] (short) (narrow) %v1103_v34, 8 }
 0x2a0   : > { %1561 = vxpose.xlu2.b32.cont [2/4] (short) (narrow) %v1105_v36, 8  ;;  %v1147_v36 = vpop.f32.mrf.mxu1 }
 0x2a1   : > { %v1148_v53 = vadd.f32 %v1147_v36, %v832_v35  ;;  %v675_v35 = vld [vmem:[%s4138_s4 + $0x160] sm:$0xff] }
 0x2a8   : > { %1562 = vxpose.xlu2.b32.cont [3/4] (short) (narrow) %v1108_v45, 8  ;;  %v1149_v45 = vpop.f32.mrf.mxu1 }
 0x2ac   : > { %v777_v51 = vpop.permute.xlu2 %776 }
 0x2ad   : > { %v1120_v58 = vadd.f32 %v1119_v61, %v777_v51  ;;  %v1357_v61 = vsel %vm1245_vm5, %v1351_v2, 0  ;;  %v2986_v2 = vld [vmem:[%s4139_s5 + $0x18] sm:$0xff] }
 0x2ae   : > { %1402 = vmatpush.bf16.msra.mxu3 %v2986_v2 }
 0x2af   : > { %v1226_v43 = vpack.c.bf16 %v1120_v58, %v1118_v56 }
 0x2b1   : > { %1237 = vmatpush.bf16.msrb.mxu1 %v1226_v43 }
 0x2b4   : > { %v802_v44 = vpop.permute.xlu2 %801 }
 0x2b5   : > { %1238 = vmatpush.bf16.msrb.mxu1 %v1225_v57  ;;  %v1133_v34 = vadd.f32 %v1132_v23, %v802_v44 }
 0x2b9   : > { %1368 = vmatpush.bf16.xpose.msra.mxu1 %v1360_v46 }
 0x2bc   : > { %v757_v47 = vpop.permute.xlu2 %756 }
 0x2bd   : > { %v1110_v59 = vadd.f32 %v3551_v48, %v757_v47 }
 0x2bf   : > { %1563 = vxpose.xlu2.b32.end [4/4] (short) (narrow) %v1110_v59, 8 }
 0x2c1   : > { %1369 = vmatpush.bf16.xpose.msra.mxu1 %v1357_v61 }
 0x2c4   : > { %v837_v39 = vpop.permute.xlu2 %836 }
 0x2c5   : > { %v1150_v50 = vadd.f32 %v1149_v45, %v837_v39  ;;  %v664_v39 = vld [vmem:[%s4138_s4 + $0x108] sm:$0xff] }
 0x2c7   : > { %v1594_v58 = vpack.c.bf16 %v1150_v50, %v1148_v53 }
 0x2cc   : > { %v827_v51 = vpop.permute.xlu2 %826 }
 0x2cd   : > { %v1145_v43 = vadd.f32 %v1144_v41, %v827_v51  ;;  %v676_v41 = vld [vmem:[%s4138_s4 + $0x168] sm:$0xff] }
 0x2cf   : > { %v1593_v44 = vpack.c.bf16 %v1145_v43, %v1143_v60 }
 0x2f5   : > { %v1334_v57 = vpop.f32.mrf.mxu3 }
 0x2f6   : > { %v1338_v12 = vmul.f32 0.17677669, %v1334_v57 }
 0x2f8   : > { %v1339_v13 = vsel %vm1245_vm5, %v1338_v12, -inf }
 0x2f9   : > { %1340 = vmax.xlane.f32.xlu1 %v1339_v13  ;;  %v2985_v13 = vld [vmem:[%s4139_s5 + $0x10] sm:$0xff] }
 0x2fa   : > { %1403 = vmatpush.bf16.msra.mxu3 %v2985_v13 }
 0x2fd   : > { %v1336_v48 = vpop.f32.mrf.mxu3 }
 0x333   : > { %1192 = vxpose.xlu1.b32.start [1/4] (short) (narrow) %v3493_v8, 8  ;;  %v2975_v8 = vld [vmem:[%s4137_s3 + $0x80] sm:$0xff] }
 0x334   : > { %1151 = vmatmul.bf16.gmra.mxu1 %v2975_v8 }
 0x33b   : > { %1193 = vxpose.xlu1.b32.cont [2/4] (short) (narrow) %v3495_v11, 8  ;;  %v1093_v11 = vadd.f32 %v3528_v37, %v3576_v9  ;;  %v1134_v37 = vpop.f32.mrf.mxu0 }
 0x33c   : > { %v1135_v40 = vadd.f32 %v1134_v37, %v807_v25 }
 0x33e   : > { %v1470_v27 = vpack.c.bf16 %v1135_v40, %v1133_v34  ;;  %v665_v34 = vld [vmem:[%s4138_s4 + $0x110] sm:$0xff]  ;;  %v666_v40 = vld [vmem:[%s4138_s4 + $0x118] sm:$0xff] }
 0x343   : > { %1194 = vxpose.xlu1.b32.cont [3/4] (short) (narrow) %v3503_v16, 8  ;;  %v2976_v16 = vld [vmem:[%s4137_s3 + $0x88] sm:$0xff]  ;;  %v1137_v9 = vpop.f32.mrf.mxu0 }
 0x344   : > { %1156 = vmatmul.bf16.gmra.mxu1 %v2976_v16  ;;  %v1138_v32 = vadd.f32 %v1137_v9, %v812_v15 }
 0x34b   : > { %1195 = vxpose.xlu1.b32.end [4/4] (short) (narrow) %v1080_v14, 8  ;;  %v1139_v26 = vpop.f32.mrf.mxu0 }
 0x34c   : > { %v1140_v30 = vadd.f32 %v1139_v26, %v3592_v31 }
 0x34e   : > { %v1471_v3 = vpack.c.bf16 %v1140_v30, %v1138_v32  ;;  %v671_v30 = vld [vmem:[%s4138_s4 + $0x140] sm:$0xff] }
 0x36c   : > { %v1341_v17 = vpop.xlane.xlu1 %1340 }
 0x36d   : > { %v1342_v19 = vsub.f32 %v1338_v12, %v1341_v17  ;;  %v1576_v12 = vpop.trf.xlu2 }
 0x36e   : > { %v1592_v48 = vpack.c.bf16 %v1576_v12, %v1576_v12 }
 0x36f   : > { %v1343_v20 = vmul.f32 1.442695, %v1342_v19 }
 0x371   : > { %3123 = vpow2.f32 %v1343_v20 }
 0x377   : > { %v3124_v21 = vpop.eup %3123 }
 0x378   : > { %v1345_v22 = vsel %vm1245_vm5, %v3124_v21, 0.0 }
 0x379   : > { %1346 = vadd.xlane.f32.xlu0 %v1345_v22 }
 0x3a2   : > { %1437 = vxpose.xlu0.b32.start [1/4] (short) (narrow) %v1093_v11, 8 }
 0x3aa   : > { %1438 = vxpose.xlu0.b32.cont [2/4] (short) (narrow) %v1095_v18, 8 }
 0x3b1   : > { %v3646_v1 = vpop.f32.mrf.mxu1 }
 0x3b2   : > { %1439 = vxpose.xlu0.b32.cont [3/4] (short) (narrow) %v1098_v63, 8 }
 0x3b9   : > { %v3648_v46 = vpop.f32.mrf.mxu1 }
 0x3ba   : > { %1440 = vxpose.xlu0.b32.end [4/4] (short) (narrow) %v1100_v24, 8 }
 0x3c1   : > { %v3653_v47 = vpop.f32.mrf.mxu1 }
 0x3c9   : > { %v3656_v57 = vpop.f32.mrf.mxu1 }
 0x3d7   : > { %v1208_v33 = vpop.trf.xlu1 }
 0x3d8   : > { %v1224_v38 = vpack.c.bf16 %v1208_v33, %v1208_v33  ;;  %v672_v33 = vld [vmem:[%s4138_s4 + $0x148] sm:$0xff] }
 0x3da   : > { %2613 = vmatmul.msk.bf16.vlgmr.msrb.gmra.mxu1 %vm1227_vm4, %v1224_v38  ;;  %v678_v38 = vld [vmem:[%s4138_s4 + $0x178] sm:$0xff] }
 0x3db   : > { %1481 = vmatpush.bf16.msrb.mxu1 %v1471_v3  ;;  %v674_v3 = vld [vmem:[%s4138_s4 + $0x158] sm:$0xff] }
 0x3df   : > { %1482 = vmatpush.bf16.msrb.mxu1 %v1470_v27 }
 0x3ec   : > { %v1347_v42 = vpop.xlane.xlu0 %1346 }
 0x3ed   : > { %3125 = vrcp.f32 %v1347_v42  ;;  %v677_v42 = vld [vmem:[%s4138_s4 + $0x170] sm:$0xff] }
 0x3f3   : > { %v3126_v31 = vpop.eup %3125 }
 0x3f4   : > { %v1349_v52 = vmul.f32 %v3126_v31, %v3124_v21 }
 0x3f6   : > { %v1350_v56 = vpack.c.bf16 %v1349_v52, %v1349_v52 }
 0x3f8   : > { %2616 = vmatmul.msk.bf16.vlgmr.msra.gmra.mxu1 %vm1245_vm5, %v1350_v56 }
 0x3f9   : > { %1604 = vmatpush.bf16.msra.mxu1 %v1594_v58 }
 0x3fd   : > { %1605 = vmatpush.bf16.msra.mxu1 %v1593_v44 }
 0x428   : > { %891 = vperm.xlu0 %3110, %v673_v0  }
 0x446   : > { %v1453_v59 = vpop.trf.xlu0 }
 0x447   : > { %v1469_v61 = vpack.c.bf16 %v1453_v59, %v1453_v59 }
 0x449   : > { %2639 = vmatmul.msk.bf16.vlgmr.msrb.gmra.mxu1 %vm1227_vm4, %v1469_v61 }
 0x457   : > { %v1240_v14 = vpop.f32.mrf.mxu1 }
 0x458   : > { %v1244_v15 = vmul.f32 0.17677669, %v1240_v14 }
 0x459   : > { %2654 = vmatmul.msk.bf16.vlgmr.msra.gmra.mxu1 %vm1227_vm4, %v1592_v48 }
 0x45a   : > { %v1246_v17 = vsel %vm1245_vm5, %v1244_v15, -inf }
 0x45b   : > { %1247 = vmax.xlane.f32.xlu1 %v1246_v17 }
 0x45f   : > { %v1242_v19 = vpop.f32.mrf.mxu1 }
 0x475   : > { %v1371_v20 = vpop.f32.mrf.mxu1 }
 0x476   : > { %v1380_v21 = vpack.c.bf16 %v1371_v20, %v1371_v20 }
 0x478   : > { %2629 = vmatmul.msk.bf16.vlgmr.msra.gmra.mxu3 %vm1227_vm4, %v1380_v21 }
 0x47d   : > { %v1373_v22 = vpop.f32.mrf.mxu1 }
 0x49a   : > { %v892_v45 = vpop.permute.xlu0 %891 }
 0x49b   : > { %v1178_v0 = vadd.f32 %v3605_v4, %v892_v45 }
 0x4c6   : > { %v1484_v8 = vpop.f32.mrf.mxu1 }
 0x4c7   : > { %v1488_v11 = vmul.f32 0.17677669, %v1484_v8 }
 0x4c9   : > { %v1489_v16 = vsel %vm1245_vm5, %v1488_v11, -inf }
 0x4ca   : > { %1490 = vmax.xlane.f32.xlu0 %v1489_v16 }
 0x4ce   : > { %v1248_v18 = vpop.xlane.xlu1 %1247  ;;  %v1486_v63 = vpop.f32.mrf.mxu1 }
 0x4cf   : > { %v1249_v23 = vsub.f32 %v1244_v15, %v1248_v18 }
 0x4d1   : > { %v1250_v24 = vmul.f32 1.442695, %v1249_v23 }
 0x4d3   : > { %3127 = vpow2.f32 %v1250_v24 }
 0x4d6   : > { %v1607_v37 = vpop.f32.mrf.mxu1 }
 0x4d7   : > { %v1611_v9 = vmul.f32 0.17677669, %v1607_v37 }
 0x4d9   : > { %v3665_v25 = vpop.eup %3127  ;;  %v1612_v26 = vsel %vm1245_vm5, %v1611_v9, -inf }
 0x4da   : > { %1613 = vmax.xlane.f32.xlu2 %v1612_v26  ;;  %v1252_v28 = vsel %vm1245_vm5, %v3665_v25, 0.0 }
 0x4db   : > { %1253 = vadd.xlane.f32.xlu1 %v1252_v28 }
 0x4de   : > { %881 = vperm.xlu0 %3110, %v671_v30   ;;  %v1609_v32 = vpop.f32.mrf.mxu1 }
 0x4e6   : > { %886 = vperm.xlu0 %3110, %v672_v33  }
 0x4ee   : > { %916 = vperm.xlu0 %3110, %v678_v38  }
 0x4f2   : > { %896 = vperm.xlu2 %3109, %v674_v3  }
 0x4f4   : > { %851 = vperm.xlu1 %3108, %v665_v34  }
 0x4f6   : > { %901 = vperm.xlu0 %3110, %v675_v35  }
 0x4fb   : > { %v3691_v27 = vpop.f32.mrf.mxu3 }
 0x4fc   : > { %856 = vperm.xlu1 %3108, %v666_v40  }
 0x4fe   : > { %906 = vperm.xlu0 %3110, %v676_v41  }
 0x503   : > { %v1407_v36 = vpop.f32.mrf.mxu3 }
 0x504   : > { %841 = vperm.xlu1 %3108, %v663_v29   ;;  %v2983_v36 = vld [vmem:[%s4139_s5] sm:$0xff] }
 0x50c   : > { %846 = vperm.xlu1 %3108, %v664_v39   ;;  %v2988_v39 = vld [vmem:[%s4139_s5 + $0x28] sm:$0xff] }
 0x514   : > { %911 = vperm.xlu1 %3108, %v677_v42  }
 0x53d   : > { %v1491_v31 = vpop.xlane.xlu0 %1490 }
 0x53e   : > { %v1492_v50 = vsub.f32 %v1488_v11, %v1491_v31 }
 0x540   : > { %v1493_v51 = vmul.f32 1.442695, %v1492_v50  ;;  %v2987_v50 = vld [vmem:[%s4139_s5 + $0x20] sm:$0xff] }
 0x542   : > { %3129 = vpow2.f32 %v1493_v51  ;;  %v2990_v51 = vld [vmem:[%s4139_s5 + $0x38] sm:$0xff] }
 0x548   : > { %v3130_v52 = vpop.eup %3129 }
 0x549   : > { %v1495_v53 = vsel %vm1245_vm5, %v3130_v52, 0.0 }
 0x54a   : > { %1496 = vadd.xlane.f32.xlu2 %v1495_v53 }
 0x54d   : > { %v1614_v56 = vpop.xlane.xlu2 %1613 }
 0x54e   : > { %v1615_v58 = vsub.f32 %v1611_v9, %v1614_v56  ;;  %v1254_v17 = vpop.xlane.xlu1 %1253 }
 0x550   : > { %v1616_v43 = vmul.f32 1.442695, %v1615_v58  ;;  %v882_v60 = vpop.permute.xlu0 %881 }
 0x551   : > { %v1173_v15 = vadd.f32 %v3596_v49, %v882_v60 }
 0x552   : > { %3131 = vpow2.f32 %v1616_v43 }
 0x553   : > { %3133 = vrcp.f32 %v1254_v17  ;;  %v3151_v17 = vld [vmem:[%s3361_s18] sm:$0xff]  ;;  %s538_s18 = scalar_lea.vmem [#allocation2], %s537_s24 }
 0x554   : > { %s2455_s29 = sshll.u32 %s538_s18, 4  ;;  %s2456_s29 = int_to_ptr.vmem [resolvable:$true] %s2455_s29 }
 0x555   : > { %v897_v44 = vpop.permute.xlu2 %896 }
 0x556   : > { %v1180_v2 = vadd.f32 %v3609_v5, %v897_v44 }
 0x558   : > { %v3132_v59 = vpop.eup %3131  ;;  %v1502_v61 = vpack.c.bf16 %v1180_v2, %v1178_v0  ;;  %v887_v12 = vpop.permute.xlu0 %886 }
 0x559   : > { %v1618_v13 = vsel %vm1245_vm5, %v3132_v59, 0.0  ;;  %v1175_v48 = vadd.f32 %v3599_v62, %v887_v12  ;;  %v3134_v37 = vpop.eup %3133 }
 0x55a   : > { %1619 = vadd.xlane.f32.xlu1 %v1618_v13  ;;  %v1510_v14 = vsel %vm1245_vm5, %v1502_v61, 0 }
 0x55b   : > { %1518 = vmatpush.bf16.xpose.msrb.mxu3 %v1510_v14  ;;  %v1501_v19 = vpack.c.bf16 %v1175_v48, %v1173_v15  ;;  %v3113_v15 = vld [vmem:[%s4140_s6] ss:$0 sm:$0xff] }
 0x55d   : > { %v1507_v20 = vsel %vm1245_vm5, %v1501_v19, 0 }
 0x560   : > { %v917_v11 = vpop.permute.xlu0 %916 }
 0x561   : > { %v1190_v26 = vadd.f32 %v3617_v55, %v917_v11 }
 0x563   : > { %1519 = vmatpush.bf16.xpose.msrb.mxu3 %v1507_v20 }
 0x566   : > { %v852_v4 = vpop.permute.xlu1 %851 }
 0x567   : > { %v1158_v21 = vadd.f32 %v3653_v47, %v852_v4  ;;  %v1256_v47 = vmul.f32 %v3134_v37, %v3665_v25 }
 0x568   : > { %v902_v18 = vpop.permute.xlu0 %901 }
 0x569   : > { %v1257_v33 = vpack.c.bf16 %v1256_v47, %v1256_v47  ;;  %v2735_v47 = vld [vmem:[%s4143_s9 + $0x80] sm:$0xf] }
 0x56e   : > { %v857_v5 = vpop.permute.xlu1 %856 }
 0x56f   : > { %v1160_v22 = vadd.f32 %v3656_v57, %v857_v5  ;;  %v2783_v5 = vld [vmem:[%s4143_s9 + $0xe0] sm:$0xf] }
 0x570   : > { %v907_v30 = vpop.permute.xlu0 %906 }
 0x571   : > { %v1259_v8 = vpack.c.bf16 %v1160_v22, %v1158_v21  ;;  %v1185_v38 = vadd.f32 %v3613_v10, %v907_v30  ;;  %v2767_v21 = vld [vmem:[%s4143_s9 + $0xc0] sm:$0xf] }
 0x573   : > { %v1267_v62 = vsel %vm1245_vm5, %v1259_v8, 0  ;;  %v3017_v8 = vld [vmem:[%s4143_s9 + $0xcc] sm:$0xf0] }
 0x574   : > { %1275 = vmatpush.bf16.xpose.msrb.mxu2 %v1267_v62  ;;  %v3019_v62 = vld [vmem:[%s4143_s9 + $0xe4] sm:$0xf]  ;;  %v2768_v11 = vor.u32 %v3017_v8, %v2767_v21  ;;  %v3016_v8 = vld [vmem:[%s4143_s9 + $0xcc] sm:$0xf] }
 0x576   : > { %v842_v16 = vpop.permute.xlu1 %841 }
 0x577   : > { %v1153_v63 = vadd.f32 %v3646_v1, %v842_v16  ;;  %v2785_v16 = vld [vmem:[%s4143_s9 + $0xf0] sm:$0xf0] }
 0x57e   : > { %v847_v49 = vpop.permute.xlu1 %846 }
 0x57f   : > { %v1155_v23 = vadd.f32 %v3648_v46, %v847_v49  ;;  %v1183_v46 = vadd.f32 %v3611_v6, %v902_v18  ;;  %v2791_v18 = vld [vmem:[%s4143_s9 + $0xe8] sm:$0xf]  ;;  %v3022_v49 = vld [vmem:[%s4143_s9 + $0xf4] sm:$0xf0] }
 0x580   : > { %v2792_v37 = vor.u32 %v3022_v49, %v2791_v18  ;;  %v2995_v18 = vld [vmem:[%s4143_s9 + $0x24] sm:$0xf]  ;;  %v2689_v49 = vld [vmem:[%s4143_s9 + $0x30] sm:$0xf0] }
 0x581   : > { %v1258_v24 = vpack.c.bf16 %v1155_v23, %v1153_v63  ;;  %v1624_v3 = vpack.c.bf16 %v1185_v38, %v1183_v46  ;;  %v2751_v63 = vld [vmem:[%s4143_s9 + $0xa0] sm:$0xf]  ;;  %v3013_v23 = vld [vmem:[%s4143_s9 + $0xac] sm:$0xf0] }
 0x582   : > { %v2719_v38 = vld [vmem:[%s4143_s9 + $0x60] sm:$0xf] }
 0x583   : > { %v1264_v9 = vsel %vm1245_vm5, %v1258_v24, 0  ;;  %v1630_v25 = vsel %vm1245_vm5, %v1624_v3, 0  ;;  %v2788_v24 = vor.u32 %v3019_v62, %v2785_v16  ;;  %v3015_v3 = vld [vmem:[%s4143_s9 + $0xc4] sm:$0xf]  ;;  %v2777_v62 = vld [vmem:[%s4143_s9 + $0xd8] sm:$0xf0] }
 0x584   : > { %1276 = vmatpush.bf16.xpose.msrb.mxu2 %v1264_v9  ;;  %v2752_v9 = vor.u32 %v3013_v23, %v2751_v63  ;;  %v2780_v16 = vor.u32 %v3016_v8, %v2777_v62  ;;  %v2695_v63 = vld [vmem:[%s4143_s9 + $0x28] sm:$0xf]  ;;  %v2692_v23 = vor.u32 %v2995_v18, %v2689_v49  ;;  %v3023_v62 = vld [vmem:[%s4145_s11] sm:$0xff]  ;;  %v3053_v49 = vld [vmem:[%s4145_s11 + $0xf0] sm:$0xff] }
 0x585   : > { %v3044_v8 = vld [vmem:[%s4145_s11 + $0xa8] sm:$0xff]  ;;  %v3043_v18 = vld [vmem:[%s4145_s11 + $0xa0] sm:$0xff] }
 0x586   : > { %v912_v57 = vpop.permute.xlu1 %911 }
 0x587   : > { %v1188_v28 = vadd.f32 %v3615_v54, %v912_v57  ;;  %v2984_v54 = vld [vmem:[%s4139_s5 + $0x8] sm:$0xff]  ;;  %v3009_v57 = vld [vmem:[%s4143_s9 + $0x8c] sm:$0xf0] }
 0x589   : > { %v1625_v32 = vpack.c.bf16 %v1190_v26, %v1188_v28  ;;  %v2736_v26 = vor.u32 %v3009_v57, %v2735_v47 }
 0x58b   : > { %2614 = vmatmul.msk.bf16.vlgmr.msrb.gmra.mxu2 %vm1245_vm5, %v1257_v33  ;;  %v1633_v1 = vsel %vm1245_vm5, %v1625_v32, 0 }
 0x58c   : > { %1641 = vmatpush.bf16.xpose.msra.mxu3 %v1633_v1  ;;  %1430 = vmatpush.bf16.msra.mxu2 %v2984_v54  ;;  %v3005_v1 = vld [vmem:[%s4143_s9 + $0x6c] sm:$0xf0]  ;;  %v2775_v54 = vld [vmem:[%s4143_s9 + $0xc8] sm:$0xf] }
 0x58d   : > { %v2720_v46 = vor.u32 %v3005_v1, %v2719_v38  ;;  %v2994_v38 = vld [vmem:[%s4143_s9 + $0x14] sm:$0xf0]  ;;  %v3008_v1 = vld [vmem:[%s4143_s9 + $0x8c] sm:$0xf] }
 0x590   : > { %1431 = vmatpush.bf16.msra.mxu2 %v2983_v36  ;;  %v2759_v36 = vld [vmem:[%s4143_s9 + $0xa8] sm:$0xf] }
 0x594   : > { %1642 = vmatpush.bf16.xpose.msra.mxu3 %v1630_v25  ;;  %1552 = vmatpush.bf16.msrb.mxu2 %v2988_v39  ;;  %v2769_v25 = vld [vmem:[%s4143_s9 + $0xd0] sm:$0xf0] }
 0x598   : > { %1553 = vmatpush.bf16.msrb.mxu2 %v2987_v50  ;;  %v2997_v50 = vld [vmem:[%s4143_s9 + $0x2c] sm:$0xf0] }
 0x5bd   : > { %v1497_v55 = vpop.xlane.xlu2 %1496 }
 0x5be   : > { %3135 = vrcp.f32 %v1497_v55  ;;  %v2772_v55 = vor.u32 %v3015_v3, %v2769_v25 }
 0x5c4   : > { %v3136_v34 = vpop.eup %3135 }
 0x5c5   : > { %v1499_v10 = vmul.f32 %v3136_v34, %v3130_v52  ;;  %v2989_v52 = vld [vmem:[%s4139_s5 + $0x30] sm:$0xff]  ;;  %v3018_v34 = vld [vmem:[%s4143_s9 + $0xd4] sm:$0xf0] }
 0x5c7   : > { %v1500_v35 = vpack.c.bf16 %v1499_v10, %v1499_v10  ;;  %v2776_v10 = vor.u32 %v3018_v34, %v2775_v54  ;;  %v3004_v54 = vld [vmem:[%s4143_s9 + $0x6c] sm:$0xf] }
 0x5c9   : > { %2640 = vmatmul.msk.bf16.vlgmr.msrb.gmra.mxu3 %vm1245_vm5, %v1500_v35  ;;  %v2703_v35 = vld [vmem:[%s4143_s9 + $0x40] sm:$0xf] }
 0x5ca   : > { %1935 = vmatpush.bf16.msrb.mxu3 %v2788_v24  ;;  %v2998_v24 = vld [vmem:[%s4143_s9 + $0x34] sm:$0xf0] }
 0x5cb   : > { %v2696_v47 = vor.u32 %v2998_v24, %v2695_v63  ;;  %v3034_v63 = vld [vmem:[%s4145_s11 + $0x58] sm:$0xff]  ;;  %v3052_v24 = vld [vmem:[%s4145_s11 + $0xe8] sm:$0xff] }
 0x5cd   : > { %v1620_v40 = vpop.xlane.xlu1 %1619 }
 0x5ce   : > { %3137 = vrcp.f32 %v1620_v40  ;;  %1936 = vmatpush.bf16.msrb.mxu3 %v2772_v55  ;;  %v3001_v40 = vld [vmem:[%s4143_s9 + $0x4c] sm:$0xf0]  ;;  %v2729_v55 = vld [vmem:[%s4143_s9 + $0x78] sm:$0xf0] }
 0x5cf   : > { %v2732_v34 = vor.u32 %v3004_v54, %v2729_v55 }
 0x5d4   : > { %v3138_v41 = vpop.eup %3137 }
 0x5d5   : > { %v1622_v6 = vmul.f32 %v3138_v41, %v3132_v59  ;;  %v2704_v41 = vor.u32 %v3001_v40, %v2703_v35  ;;  %v3000_v35 = vld [vmem:[%s4143_s9 + $0x4c] sm:$0xf]  ;;  %v2713_v40 = vld [vmem:[%s4143_s9 + $0x58] sm:$0xf0] }
 0x5d7   : > { %v1623_v29 = vpack.c.bf16 %v1622_v6, %v1622_v6  ;;  %v3011_v6 = vld [vmem:[%s4143_s9 + $0xa4] sm:$0xf] }
 0x5d9   : > { %2655 = vmatmul.msk.bf16.vlgmr.msra.gmra.mxu3 %vm1245_vm5, %v1623_v29  ;;  %v2753_v29 = vld [vmem:[%s4143_s9 + $0xb0] sm:$0xf0] }
 0x5da   : > { %v2756_v39 = vor.u32 %v3011_v6, %v2753_v29  ;;  %v2716_v6 = vor.u32 %v3000_v35, %v2713_v40 }
 0x5dc   : > { %1937 = vmatpush.bf16.msrb.mxu3 %v2756_v39  ;;  %v2697_v39 = vld [vmem:[%s4143_s9 + $0x38] sm:$0xf0] }
 0x60e   : > { %v1278_v42 = vpop.f32.mrf.mxu2 }
 0x60f   : > { %v1286_v45 = vpack.c.bf16 %v1278_v42, %v1278_v42  ;;  %v3014_v42 = vld [vmem:[%s4143_s9 + $0xb4] sm:$0xf0] }
 0x611   : > { %2638 = vmatmul.msk.bf16.vlgmr.msra.gmra.mxu2 %vm1227_vm4, %v1286_v45  ;;  %v2760_v45 = vor.u32 %v3014_v42, %v2759_v36  ;;  %v2996_v36 = vld [vmem:[%s4143_s9 + $0x2c] sm:$0xf] }
 0x612   : > { %1675 = vmatpush.bf16.msra.mxu2 %v2990_v51  ;;  %v2700_v42 = vor.u32 %v2996_v36, %v2697_v39 }
 0x616   : > { %v1280_v31 = vpop.f32.mrf.mxu2  ;;  %1676 = vmatpush.bf16.msra.mxu2 %v2989_v52  ;;  %v3007_v52 = vld [vmem:[%s4143_s9 + $0x84] sm:$0xf] }
 0x617   : > { %v2687_v31 = vld [vmem:[%s4143_s9 + $0x20] sm:$0xf] }
 0x618   : > { %v2688_v51 = vor.u32 %v2997_v50, %v2687_v31  ;;  %v2681_v31 = vld [vmem:[%s4143_s9 + $0x18] sm:$0xf0] }
 0x64c   : > { %v1521_v53 = vpop.f32.mrf.mxu3 }
 0x64d   : > { %v1530_v56 = vpack.c.bf16 %v1521_v53, %v1521_v53  ;;  %v2737_v53 = vld [vmem:[%s4143_s9 + $0x90] sm:$0xf0] }
 0x64f   : > { %2653 = vmatmul.msk.bf16.vlgmr.msrb.gmra.mxu2 %vm1227_vm4, %v1530_v56  ;;  %v2743_v56 = vld [vmem:[%s4143_s9 + $0x88] sm:$0xf] }
 0x650   : > { %1948 = vmatpush.bf16.msrb.mxu2 %v2792_v37  ;;  %v3012_v37 = vld [vmem:[%s4143_s9 + $0xac] sm:$0xf] }
 0x654   : > { %v1523_v58 = vpop.f32.mrf.mxu3  ;;  %1949 = vmatpush.bf16.msrb.mxu2 %v2776_v10 }
 0x655   : > { %v2740_v58 = vor.u32 %v3007_v52, %v2737_v53 }
 0x657   : > { %1938 = vmatpush.bf16.msrb.mxu3 %v2740_v58 }
 0x658   : > { %1950 = vmatpush.bf16.msrb.mxu2 %v2760_v45  ;;  %v2992_v45 = vld [vmem:[%s4143_s9 + $0xc] sm:$0xf] }
 0x659   : > { %v2684_v50 = vor.u32 %v2992_v45, %v2681_v31 }
 0x65c   : > { %v1644_v43 = vpop.f32.mrf.mxu3 }
 0x65d   : > { %v1653_v60 = vpack.c.bf16 %v1644_v43, %v1644_v43  ;;  %v3010_v43 = vld [vmem:[%s4143_s9 + $0x94] sm:$0xf0] }
 0x65f   : > { %2668 = vmatmul.msk.bf16.vlgmr.msra.gmra.mxu2 %vm1227_vm4, %v1653_v60  ;;  %v2744_v60 = vor.u32 %v3010_v43, %v2743_v56  ;;  %v3030_v56 = vld [vmem:[%s4145_s11 + $0x38] sm:$0xff]  ;;  %v3029_v43 = vld [vmem:[%s4145_s11 + $0x30] sm:$0xff] }
 0x661   : > { %1951 = vmatpush.bf16.msrb.mxu2 %v2744_v60 }
 0x664   : > { %v1646_v44 = vpop.f32.mrf.mxu3 }
 0x665   : > { %v2671_v44 = vld [vmem:[%s4143_s9] sm:$0xf] }
 0x694   : > { %v1433_v0 = vpop.f32.mrf.mxu2 }
 0x695   : > { %v1434_v12 = vadd.f32 %v1433_v0, %v3691_v27  ;;  %v3021_v27 = vld [vmem:[%s4143_s9 + $0xec] sm:$0xf0] }
 0x696   : > { %v2784_v22 = vor.u32 %v3021_v27, %v2783_v5  ;;  %v2993_v0 = vld [vmem:[%s4143_s9 + $0xc] sm:$0xf0]  ;;  %v2705_v5 = vld [vmem:[%s4143_s9 + $0x50] sm:$0xf0]  ;;  %v2711_v27 = vld [vmem:[%s4143_s9 + $0x48] sm:$0xf] }
 0x698   : > { %1922 = vmatpush.bf16.msrb.mxu1 %v2784_v22  ;;  %v3002_v22 = vld [vmem:[%s4143_s9 + $0x54] sm:$0xf0] }
 0x69c   : > { %v1435_v2 = vpop.f32.mrf.mxu2  ;;  %1923 = vmatpush.bf16.msrb.mxu1 %v2768_v11  ;;  %v2712_v11 = vor.u32 %v3002_v22, %v2711_v27  ;;  %v3045_v27 = vld [vmem:[%s4145_s11 + $0xb0] sm:$0xff]  ;;  %v3036_v22 = vld [vmem:[%s4145_s11 + $0x68] sm:$0xff] }
 0x69d   : > { %v2672_v2 = vor.u32 %v2993_v0, %v2671_v44  ;;  %v3114_v0 = vld [vmem:[%s4141_s7] ss:$0 sm:$0xff] }
 0x6a0   : > { %1924 = vmatpush.bf16.msrb.mxu1 %v2752_v9  ;;  %v2761_v9 = vld [vmem:[%s4143_s9 + $0xb8] sm:$0xf0] }
 0x6a1   : > { %v2764_v57 = vor.u32 %v3012_v37, %v2761_v9  ;;  %v3033_v37 = vld [vmem:[%s4145_s11 + $0x50] sm:$0xff] }
 0x6a2   : > { %v3041_v9 = vld [vmem:[%s4145_s11 + $0x90] sm:$0xff] }
 0x6a4   : > { %1925 = vmatpush.bf16.msrb.mxu1 %v2736_v26  ;;  %v2991_v26 = vld [vmem:[%s4143_s9 + $0x4] sm:$0xf] }
 0x6a8   : > { %1926 = vmatpush.bf16.msrb.mxu1 %v2720_v46  ;;  %v2745_v46 = vld [vmem:[%s4143_s9 + $0x98] sm:$0xf0] }
 0x6a9   : > { %v2748_v25 = vor.u32 %v3008_v1, %v2745_v46  ;;  %v3039_v1 = vld [vmem:[%s4145_s11 + $0x80] sm:$0xff]  ;;  %v3049_v46 = vld [vmem:[%s4145_s11 + $0xd0] sm:$0xff] }
 0x6ac   : > { %1927 = vmatpush.bf16.msrb.mxu1 %v2704_v41 }
 0x6b0   : > { %1928 = vmatpush.bf16.msrb.mxu1 %v2688_v51 }
 0x6b4   : > { %1929 = vmatpush.bf16.msrb.mxu1 %v2672_v2  ;;  %v3028_v2 = vld [vmem:[%s4145_s11 + $0x28] sm:$0xff] }
 0x6d2   : > { %v1555_v59 = vpop.f32.mrf.mxu2 }
 0x6d3   : > { %v1559_v13 = vadd.f32 %v1555_v59, %v1434_v12  ;;  %v3003_v59 = vld [vmem:[%s4143_s9 + $0x64] sm:$0xf]  ;;  %v2727_v12 = vld [vmem:[%s4143_s9 + $0x68] sm:$0xf] }
 0x6da   : > { %v1557_v61 = vpop.f32.mrf.mxu2 }
 0x6db   : > { %v2721_v61 = vld [vmem:[%s4143_s9 + $0x70] sm:$0xf0] }
 0x6e2   : > { %v1678_v48 = vpop.f32.mrf.mxu2 }
 0x6e3   : > { %v1682_v14 = vadd.f32 %v1678_v48, %v1559_v13  ;;  %v2724_v13 = vor.u32 %v3003_v59, %v2721_v61  ;;  %v3006_v48 = vld [vmem:[%s4143_s9 + $0x74] sm:$0xf0] }
 0x6e5   : > { %v1683_v19 = vadd.f32 %v3151_v17, %v1682_v14  ;;  %v3020_v14 = vld [vmem:[%s4143_s9 + $0xec] sm:$0xf]  ;;  %v2728_v17 = vor.u32 %v3006_v48, %v2727_v12  ;;  %1939 = vmatpush.bf16.msrb.mxu3 %v2724_v13  ;;  %v3115_v12 = vld [vmem:[%s4142_s8] ss:$0 sm:$0xff] }
 0x6e6   : > { %v3027_v48 = vld [vmem:[%s4145_s11 + $0x20] sm:$0xff] }
 0x6e7   : > { %v3755_v20 = vadd.f32 %v3113_v15, %v1683_v19  ;;  %v2793_v15 = vld [vmem:[%s4143_s9 + $0xf8] sm:$0xf0]  ;;  %1952 = vmatpush.bf16.msrb.mxu2 %v2728_v17 }
 0x6e8   : > { %v2796_v19 = vor.u32 %v3020_v14, %v2793_v15  ;;  %v3038_v17 = vld [vmem:[%s4145_s11 + $0x78] sm:$0xff] }
 0x6e9   : > { %1689 = vadd.xlane.f32.xlu0 %v3755_v20 }
 0x6ea   : > { %v1680_v4 = vpop.f32.mrf.mxu2  ;;  %1961 = vmatpush.bf16.msra.mxu1 %v2796_v19  ;;  %v3046_v19 = vld [vmem:[%s4145_s11 + $0xb8] sm:$0xff] }
 0x6eb   : > { %v2999_v4 = vld [vmem:[%s4143_s9 + $0x44] sm:$0xf]  ;;  %1953 = vmatpush.bf16.msrb.mxu2 %v2712_v11  ;;  %v3054_v11 = vld [vmem:[%s4145_s11 + $0xf8] sm:$0xff] }
 0x6ec   : > { %v2708_v21 = vor.u32 %v2999_v4, %v2705_v5  ;;  %v3025_v4 = vld [vmem:[%s4145_s11 + $0x10] sm:$0xff] }
 0x6ed   : > { %v3037_v5 = vld [vmem:[%s4145_s11 + $0x70] sm:$0xff] }
 0x6ee   : > { %1940 = vmatpush.bf16.msrb.mxu3 %v2708_v21  ;;  %1962 = vmatpush.bf16.msra.mxu1 %v2780_v16  ;;  %v3024_v21 = vld [vmem:[%s4145_s11 + $0x8] sm:$0xff]  ;;  %v3035_v16 = vld [vmem:[%s4145_s11 + $0x60] sm:$0xff] }
 0x6ef   : > { %1954 = vmatpush.bf16.msrb.mxu2 %v2696_v47  ;;  %v3051_v47 = vld [vmem:[%s4145_s11 + $0xe0] sm:$0xff] }
 0x6f2   : > { %1941 = vmatpush.bf16.msrb.mxu3 %v2692_v23  ;;  %1963 = vmatpush.bf16.msra.mxu1 %v2764_v57  ;;  %v3042_v23 = vld [vmem:[%s4145_s11 + $0x98] sm:$0xff]  ;;  %v1752_v57 = vld [vmem:[%s4144_s10] sm:$0xf] }
 0x6f3   : > { %v1755_v55 = vperm.slane %v1752_v57, 1 }
 0x6f6   : > { %1964 = vmatpush.bf16.msra.mxu1 %v2748_v25 }
 0x6fa   : > { %1965 = vmatpush.bf16.msra.mxu1 %v2732_v34  ;;  %v3048_v34 = vld [vmem:[%s4145_s11 + $0xc8] sm:$0xff] }
 0x6fe   : > { %1966 = vmatpush.bf16.msra.mxu1 %v2716_v6 }
 0x702   : > { %1967 = vmatpush.bf16.msra.mxu1 %v2700_v42 }
 0x706   : > { %1968 = vmatpush.bf16.msra.mxu1 %v2684_v50 }
 0x75c   : > { %v1690_v28 = vpop.xlane.xlu0 %1689 }
 0x75d   : > { %v1691_v30 = vmul.f32 %v1690_v28, %v3364_v7  ;;  %v2673_v28 = vld [vmem:[%s4143_s9 + $0x10] sm:$0xf0] }
 0x75f   : > { %v3796_v32 = vsub.f32 %v3755_v20, %v1691_v30  ;;  %v2679_v30 = vld [vmem:[%s4143_s9 + $0x8] sm:$0xf] }
 0x760   : > { %v2680_v3 = vor.u32 %v2994_v38, %v2679_v30  ;;  %v3050_v30 = vld [vmem:[%s4145_s11 + $0xd8] sm:$0xff]  ;;  %v3031_v38 = vld [vmem:[%s4145_s11 + $0x40] sm:$0xff] }
 0x761   : > { %v1693_v33 = vmul.f32 %v3796_v32, %v3796_v32 }
 0x762   : > { %1955 = vmatpush.bf16.msrb.mxu2 %v2680_v3 }
 0x763   : > { %1694 = vadd.xlane.f32.xlu2 %v1693_v33  ;;  %v2676_v33 = vor.u32 %v2991_v26, %v2673_v28  ;;  %v3032_v26 = vld [vmem:[%s4145_s11 + $0x48] sm:$0xff] }
 0x764   : > { %v3040_v28 = vld [vmem:[%s4145_s11 + $0x88] sm:$0xff] }
 0x765   : > { %1942 = vmatpush.bf16.msrb.mxu3 %v2676_v33  ;;  %v1754_v33 = vperm.slane %v1752_v57, 0 }
 0x766   : > { %2283 = vmatpush.bf16.msra.mxu2 %v3038_v17 }
 0x769   : > { %2270 = vmatpush.bf16.msra.mxu3 %v3030_v56 }
 0x76a   : > { %2284 = vmatpush.bf16.msra.mxu2 %v3037_v5 }
 0x76d   : > { %2271 = vmatpush.bf16.msra.mxu3 %v3029_v43 }
 0x76e   : > { %2285 = vmatpush.bf16.msra.mxu2 %v3036_v22 }
 0x771   : > { %2272 = vmatpush.bf16.msra.mxu3 %v3028_v2 }
 0x772   : > { %2286 = vmatpush.bf16.msra.mxu2 %v3035_v16 }
 0x775   : > { %2273 = vmatpush.bf16.msra.mxu3 %v3027_v48 }
 0x776   : > { %2287 = vmatpush.bf16.msra.mxu2 %v3034_v63 }
 0x77a   : > { %2288 = vmatpush.bf16.msra.mxu2 %v3033_v37 }
 0x77e   : > { %2289 = vmatpush.bf16.msra.mxu2 %v3032_v26 }
 0x782   : > { %2290 = vmatpush.bf16.msra.mxu2 %v3031_v38 }
 0x7d6   : > { %v1695_v10 = vpop.xlane.xlu2 %1694 }
 0x7d7   : > { %v1696_v41 = vmul.f32 %v1695_v10, %v3364_v7  ;;  %v1756_v10 = vperm.slane %v1752_v57, 2 }
 0x7d9   : > { %v1697_v29 = vadd.f32 1e-05, %v1696_v41  ;;  %v3047_v41 = vld [vmem:[%s4145_s11 + $0xc0] sm:$0xff] }
 0x7db   : > { %3139 = vrsqrt.f32 %v1697_v29  ;;  %vm1704_vm7 = vweird.f32 %v1697_v29 }
 0x7e1   : > { %v3140_v51 = vpop.eup %3139 }
 0x7e2   : > { %v1699_v52 = vmul.f32 %v3140_v51, %v1697_v29  ;;  %vm1705_vm6 = vweird.f32 %v3140_v51 }
 0x7e3   : > { %vm1706_vm8 = vmor %vm1704_vm7, %vm1705_vm6 }
 0x7e4   : > { %v1700_v53 = vmul.f32 %v3140_v51, %v1699_v52 }
 0x7e6   : > { %v1701_v58 = vmul.f32 0.5, %v1700_v53 }
 0x7e8   : > { %v1702_v60 = vsub.f32 1.5, %v1701_v58  ;;  %v1757_v58 = vperm.slane %v1752_v57, 3 }
 0x7ea   : > { %v1703_v44 = vmul.f32 %v3140_v51, %v1702_v60 }
 0x7ec   : > { %v1707_v59 = vsel %vm1706_vm8, %v3140_v51, %v1703_v44 }
 0x7ed   : > { %v1708_v61 = vmul.f32 %v1707_v59, %v3796_v32  ;;  %v3026_v32 = vld [vmem:[%s4145_s11 + $0x18] sm:$0xff] }
 0x7ee   : > { %2274 = vmatpush.bf16.msra.mxu3 %v3026_v32 }
 0x7ef   : > { %v1713_v13 = vmul.f32 %v3114_v0, %v1708_v61 }
 0x7f1   : > { %v1718_v14 = vadd.f32 %v3115_v12, %v1713_v13 }
 0x7f2   : > { %2275 = vmatpush.bf16.msra.mxu3 %v3025_v4 }
 0x7f3   : > { %v1751_v15 = vpack.c.bf16 %v1718_v14, %v1718_v14 }
 0x7f5   : > { %1930 = vmatmul.bf16.vlgmr.msrb.gmra.mxu1 %v1751_v15  ;;  %1943 = vmatmul.bf16.vlgmr.msrb.gmra.mxu3 %v1751_v15 }
 0x7f6   : > { %1956 = vmatmul.bf16.vlgmr.msrb.gmra.mxu2 %v1751_v15  ;;  %2296 = vmatpush.bf16.msrb.mxu1 %v3046_v19 }
 0x7f7   : > { %2276 = vmatpush.bf16.msra.mxu3 %v3024_v21 }
 0x7fa   : > { %2297 = vmatpush.bf16.msrb.mxu1 %v3045_v27 }
 0x7fb   : > { %2277 = vmatpush.bf16.msra.mxu3 %v3023_v62 }
 0x7fe   : > { %2298 = vmatpush.bf16.msrb.mxu1 %v3044_v8 }
 0x7ff   : > { %2309 = vmatpush.bf16.msrb.mxu3 %v3054_v11 }
 0x802   : > { %2299 = vmatpush.bf16.msrb.mxu1 %v3043_v18 }
 0x803   : > { %2310 = vmatpush.bf16.msrb.mxu3 %v3053_v49 }
 0x805   : > { %1969 = vmatmul.bf16.vlgmr.msra.gmra.mxu1 %v1751_v15 }
 0x806   : > { %2300 = vmatpush.bf16.msrb.mxu1 %v3042_v23 }
 0x807   : > { %2311 = vmatpush.bf16.msrb.mxu3 %v3052_v24 }
 0x80a   : > { %2301 = vmatpush.bf16.msrb.mxu1 %v3041_v9 }
 0x80b   : > { %2312 = vmatpush.bf16.msrb.mxu3 %v3051_v47 }
 0x80e   : > { %2302 = vmatpush.bf16.msrb.mxu1 %v3040_v28 }
 0x80f   : > { %2313 = vmatpush.bf16.msrb.mxu3 %v3050_v30 }
 0x812   : > { %2303 = vmatpush.bf16.msrb.mxu1 %v3039_v1 }
 0x813   : > { %2314 = vmatpush.bf16.msrb.mxu3 %v3049_v46 }
 0x817   : > { %2315 = vmatpush.bf16.msrb.mxu3 %v3048_v34 }
 0x81b   : > { %2316 = vmatpush.bf16.msrb.mxu3 %v3047_v41 }
 0x872   : > { %v1931_v3 = vpop.f32.mrf.mxu1 }
 0x873   : > { %v1932_v25 = vadd.f32 %v1931_v3, %v1754_v33 }
 0x875   : > { %v1974_v54 = vmul.f32 %v1932_v25, %v1932_v25 }
 0x877   : > { %v1978_v35 = vmul.f32 %v1974_v54, %v1932_v25 }
 0x878   : > { %v1944_v40 = vpop.f32.mrf.mxu3 }
 0x879   : > { %v1982_v6 = vmul.f32 0.044715, %v1978_v35  ;;  %v1945_v29 = vadd.f32 %v1944_v40, %v1755_v55  ;;  %v1957_v36 = vpop.f32.mrf.mxu2 }
 0x87a   : > { %v1958_v39 = vadd.f32 %v1957_v36, %v1756_v10  ;;  %v1933_v42 = vpop.f32.mrf.mxu1  ;;  %v3116_v10 = vld [vmem:[%s4146_s12] ss:$0 sm:$0xff] }
 0x87b   : > { %v1986_v45 = vadd.f32 %v1982_v6, %v1932_v25  ;;  %v1975_v31 = vmul.f32 %v1945_v29, %v1945_v29 }
 0x87c   : > { %v1976_v50 = vmul.f32 %v1958_v39, %v1958_v39 }
 0x87d   : > { %v1990_v51 = vmul.f32 0.7978846, %v1986_v45  ;;  %v1979_v52 = vmul.f32 %v1975_v31, %v1945_v29  ;;  %v3062_v31 = vld [vmem:[%s4149_s15 + $0x38] sm:$0xff] }
 0x87e   : > { %v1980_v53 = vmul.f32 %v1976_v50, %v1958_v39  ;;  %2430 = vmatpush.bf16.msrb.mxu2 %v3062_v31  ;;  %v3060_v50 = vld [vmem:[%s4149_s15 + $0x28] sm:$0xff] }
 0x87f   : > { %3141 = vtanh.f32 %v1990_v51  ;;  %v1983_v56 = vmul.f32 0.044715, %v1979_v52  ;;  %v3059_v51 = vld [vmem:[%s4149_s15 + $0x20] sm:$0xff]  ;;  %v3058_v52 = vld [vmem:[%s4149_s15 + $0x18] sm:$0xff] }
 0x880   : > { %v1984_v43 = vmul.f32 0.044715, %v1980_v53  ;;  %v1946_v60 = vpop.f32.mrf.mxu3  ;;  %v3057_v53 = vld [vmem:[%s4149_s15 + $0x10] sm:$0xff] }
 0x881   : > { %v1987_v44 = vadd.f32 %v1983_v56, %v1945_v29  ;;  %v1959_v0 = vpop.f32.mrf.mxu2  ;;  %v3056_v56 = vld [vmem:[%s4149_s15 + $0x8] sm:$0xff] }
 0x882   : > { %v1988_v2 = vadd.f32 %v1984_v43, %v1958_v39  ;;  %v1970_v59 = vpop.f32.mrf.mxu1 }
 0x883   : > { %v1991_v61 = vmul.f32 0.7978846, %v1987_v44  ;;  %v1971_v12 = vadd.f32 %v1970_v59, %v1757_v58  ;;  %v3055_v58 = vld [vmem:[%s4149_s15] sm:$0xff] }
 0x884   : > { %v1992_v13 = vmul.f32 0.7978846, %v1988_v2 }
 0x885   : > { %v3142_v48 = vpop.eup %3141  ;;  %3143 = vtanh.f32 %v1991_v61  ;;  %v1977_v14 = vmul.f32 %v1971_v12, %v1971_v12 }
 0x886   : > { %3145 = vtanh.f32 %v1992_v13  ;;  %v1998_v15 = vadd.f32 1.0, %v3142_v48  ;;  %v3117_v48 = vld [vmem:[%s4147_s13] ss:$0 sm:$0xff] }
 0x887   : > { %v1981_v32 = vmul.f32 %v1977_v14, %v1971_v12 }
 0x888   : > { %v2002_v17 = vmul.f32 0.5, %v1998_v15 }
 0x889   : > { %v1985_v19 = vmul.f32 0.044715, %v1981_v32 }
 0x88a   : > { %v1972_v4 = vpop.f32.mrf.mxu1  ;;  %v2006_v5 = vmul.f32 %v2002_v17, %v1932_v25 }
 0x88b   : > { %v3144_v27 = vpop.eup %3143  ;;  %v1989_v21 = vadd.f32 %v1985_v19, %v1971_v12 }
 0x88c   : > { %v3146_v22 = vpop.eup %3145  ;;  %v2074_v8 = vpack.c.bf16 %v2006_v5, %v2006_v5  ;;  %v1999_v62 = vadd.f32 1.0, %v3144_v27  ;;  %v2378_v5 = vld [vmem:[%s4150_s16] sm:$0x1] }
 0x88d   : > { %v1993_v11 = vmul.f32 0.7978846, %v1989_v21  ;;  %v2000_v16 = vadd.f32 1.0, %v3146_v22 }
 0x88e   : > { %2278 = vmatmul.bf16.vlgmr.msra.gmra.mxu3 %v2074_v8  ;;  %v2003_v18 = vmul.f32 0.5, %v1999_v62 }
 0x88f   : > { %3147 = vtanh.f32 %v1993_v11  ;;  %v2004_v49 = vmul.f32 0.5, %v2000_v16 }
 0x890   : > { %v2007_v63 = vmul.f32 %v2003_v18, %v1945_v29 }
 0x891   : > { %v2008_v23 = vmul.f32 %v2004_v49, %v1958_v39 }
 0x892   : > { %v2075_v24 = vpack.c.bf16 %v2007_v63, %v2007_v63 }
 0x893   : > { %v2076_v37 = vpack.c.bf16 %v2008_v23, %v2008_v23 }
 0x894   : > { %2291 = vmatmul.bf16.vlgmr.msra.gmra.mxu2 %v2075_v24 }
 0x895   : > { %v3148_v9 = vpop.eup %3147  ;;  %2304 = vmatmul.bf16.vlgmr.msrb.gmra.mxu1 %v2076_v37 }
 0x896   : > { %v2001_v47 = vadd.f32 1.0, %v3148_v9 }
 0x898   : > { %v2005_v57 = vmul.f32 0.5, %v2001_v47 }
 0x89a   : > { %v2009_v26 = vmul.f32 %v2005_v57, %v1971_v12 }
 0x89c   : > { %v2077_v28 = vpack.c.bf16 %v2009_v26, %v2009_v26 }
 0x89e   : > { %2317 = vmatmul.bf16.vlgmr.msrb.gmra.mxu3 %v2077_v28 }
 0x911   : > { %v2279_v30 = vpop.f32.mrf.mxu3 }
 0x912   : > { %v2305_v33 = vpop.f32.mrf.mxu1 }
 0x917   : > { %v2292_v38 = vpop.f32.mrf.mxu2 }
 0x918   : > { %v2293_v3 = vadd.f32 %v2292_v38, %v2279_v30 }
 0x919   : > { %v2281_v1 = vpop.f32.mrf.mxu3 }
 0x91a   : > { %v2307_v46 = vpop.f32.mrf.mxu1  ;;  %v2306_v54 = vadd.f32 %v2305_v33, %v2293_v3 }
 0x91f   : > { %v2294_v25 = vpop.f32.mrf.mxu2 }
 0x921   : > { %v2318_v55 = vpop.f32.mrf.mxu3 }
 0x922   : > { %v2319_v34 = vadd.f32 %v2318_v55, %v2306_v54 }
 0x924   : > { %v2322_v35 = vadd.f32 %v2319_v34, %v3755_v20  ;;  %v3061_v20 = vld [vmem:[%s4149_s15 + $0x30] sm:$0xff] }
 0x925   : > { %2431 = vmatpush.bf16.msrb.mxu2 %v3061_v20 }
 0x926   : > { %v2327_v40 = vadd.f32 %v3116_v10, %v2322_v35 }
 0x928   : > { %v2329_v41 = vsel %vm2328_vm9, %v2327_v40, 0.0 }
 0x929   : > { %v2320_v6 = vpop.f32.mrf.mxu3  ;;  %2330 = vadd.xlane.f32.xlu2 %v2329_v41  ;;  %2432 = vmatpush.bf16.msrb.mxu2 %v3060_v50 }
 0x92d   : > { %2433 = vmatpush.bf16.msrb.mxu2 %v3059_v51 }
 0x931   : > { %2434 = vmatpush.bf16.msrb.mxu2 %v3058_v52 }
 0x935   : > { %2435 = vmatpush.bf16.msrb.mxu2 %v3057_v53 }
 0x939   : > { %2436 = vmatpush.bf16.msrb.mxu2 %v3056_v56 }
 0x93d   : > { %2437 = vmatpush.bf16.msrb.mxu2 %v3055_v58 }
 0x99c   : > { %v2331_v29 = vpop.xlane.xlu2 %2330 }
 0x99d   : > { %v2332_v36 = vmul.f32 %v2331_v29, %v3364_v7 }
 0x99f   : > { %v2333_v39 = vsub.f32 %v2327_v40, %v2332_v36 }
 0x9a1   : > { %v2334_v42 = vmul.f32 %v2333_v39, %v2333_v39 }
 0x9a3   : > { %v2335_v45 = vsel %vm2328_vm9, %v2334_v42, 0.0 }
 0x9a4   : > { %2336 = vadd.xlane.f32.xlu2 %v2335_v45 }
 0xa17   : > { %v2337_v43 = vpop.xlane.xlu2 %2336 }
 0xa18   : > { %v2338_v60 = vmul.f32 %v2337_v43, %v3364_v7  ;;  %v3118_v7 = vld [vmem:[%s4148_s14] ss:$0 sm:$0xff] }
 0xa1a   : > { %v2339_v44 = vadd.f32 1e-05, %v2338_v60 }
 0xa1c   : > { %3149 = vrsqrt.f32 %v2339_v44  ;;  %vm2346_vm11 = vweird.f32 %v2339_v44 }
 0xa22   : > { %v3150_v0 = vpop.eup %3149 }
 0xa23   : > { %v2341_v2 = vmul.f32 %v3150_v0, %v2339_v44  ;;  %vm2347_vm10 = vweird.f32 %v3150_v0 }
 0xa24   : > { %vm2348_vm12 = vmor %vm2346_vm11, %vm2347_vm10 }
 0xa25   : > { %v2342_v59 = vmul.f32 %v3150_v0, %v2341_v2 }
 0xa27   : > { %v2343_v61 = vmul.f32 0.5, %v2342_v59 }
 0xa29   : > { %v2344_v12 = vsub.f32 1.5, %v2343_v61 }
 0xa2b   : > { %v2345_v13 = vmul.f32 %v3150_v0, %v2344_v12 }
 0xa2d   : > { %v2349_v14 = vsel %vm2348_vm12, %v3150_v0, %v2345_v13 }
 0xa2e   : > { %v2350_v15 = vmul.f32 %v2349_v14, %v2333_v39 }
 0xa30   : > { %v2355_v32 = vmul.f32 %v3117_v48, %v2350_v15 }
 0xa32   : > { %v2360_v17 = vadd.f32 %v3118_v7, %v2355_v32 }
 0xa34   : > { %v2377_v19 = vpack.c.bf16 %v2360_v17, %v2360_v17 }
 0xa36   : > { %v2380_v4 = vrot.slane %v2377_v19, 2 }
 0xa38   : > { %2438 = vmatmul.bf16.vlgmr.msrb.gmra.mxu2 %v2380_v4 }
 0xabb   : > { %v2439_v27 = vpop.f32.mrf.mxu2 }
 0xabc   : > { %v2440_v21 = vadd.f32 %v2439_v27, %v2378_v5 }
 0xabe   : > { %2443 = vst [vmem:[%s538_s18] sm:$0x1] %v2440_v21 }
 0xabf   : > { %3179 = shalt.err (!%p3176_p3)
}
 0xac0   : > { %3066 = dma.vmem_to_hbm [thread:$0]  (%p3346_p5), %s2456_s29, 16, %s2458_s19, %s2445_s30  }
 0xac3   : > { %v2441_v22 = vpop.f32.mrf.mxu2 }
 0xac4 PF: > { %s4170_s24 = sld [smem:[#allocation5_spill]]  ;;  %p3072_p4 = scmp.ge.s32.totalorder %s3214_s27, 2 }
 0xac6   : > { %p3069_p7 = pnand %p3072_p4, %p3350_p6 }
 0xac8   : > { %p3070_p8 = pneg %p3069_p7 }
 0xaca   : > { %s2469_s18 = sand.u32 1, %s4170_s24  }
 0xacb   : > { %s2470_s28 = scalar_lea.sflag [#allocation3], %s2469_s18 }
 0xacc   : > { %3197 = dma.done.wait (%p3070_p8), %s2470_s28, 16  }
 0xacd   : > { %3199 = vsyncadd (%p3070_p8), %s2470_s28, 4294967280  ;;  %s4172_s27 = sld [smem:[#allocation7_spill]]  ;;  %s4175_s24 = smov %s3206_s25 }
 0xace   : > { %s4173_s2 = sld [smem:[#allocation6_spill]] }
 0xacf   : > { %s4174_s26 = sld [smem:[#allocation8_spill]] }
 0xad3   : > { %p27_p9 = scmp.ge.s32.totalorder %s4172_s27, 4  }
 0xad4   : > { %s4176_s25 = smov %s4173_s2 }
 0xad5   :  { %29 = sbr.rel (!%p27_p9) target bundleno = 7 (0x7), region = 126 }
 0xada   :  { %2475 = vsyncpa [#allocation3], 1 }
 0xadb   :  { %2477 = vsyncpa [#allocation3 + $0x1], 1 }

</bundles_post_ra>
